<compile_context>
chip_gen: v7x
topology: tpu7x:2x2x1
jax: 0.10.0
libtpu: 0.0.40
codegen_flags: <defaults>
</compile_context>

<pallas_src>
import functools

import jax
import jax.numpy as jnp
from jax.experimental import pallas as pl
from jax.experimental.pallas import tpu as pltpu


def _round_up(x, m):
    return (x + m - 1) // m * m


# ----------------------------- Pallas kernel ------------------------------- #
def _fused_stack_kernel(*refs, slope):
    """refs = (x, w0, s0, w1, s1, ..., w{L-1}, s{L-1}, out).

    x  : (TB, K0)     bf16  flattened-NHWC input block (one image batch)
    wl : (Kl, Nl)     bf16  unrolled conv matrix (bias + BN folded), zero-padded
    sl : (1,  Nl)     f32   per-(position, channel) shift row
    out: (TB, N_last) f32   flattened final features
    """
    x_ref, o_ref = refs[0], refs[-1]
    layer_refs = refs[1:-1]
    n_layers = len(layer_refs) // 2

    h = x_ref[...]                                    # bf16 activations
    y = None
    for l in range(n_layers):
        w_ref = layer_refs[2 * l]
        s_ref = layer_refs[2 * l + 1]
        y = jnp.dot(h, w_ref[...], preferred_element_type=jnp.float32)
        y = y + s_ref[...]                            # folded conv bias + BN shift
        y = jnp.maximum(y, slope * y)                 # LeakyReLU, f32 epilogue
        if l + 1 < n_layers:
            h = y.astype(jnp.bfloat16)                # next MXU matmul input
    o_ref[...] = y


def fused_conv_stack(x, mats, shifts, *, slope=0.2):
    """Runs the whole conv stack in a single Pallas launch.

    x: (2*TB, K0) bf16 — rows [0:TB) are image1's (padded) batch, [TB:2TB) image2's.
    Returns (2*TB, N_last) f32 flattened-NHWC features.
    """
    rows, K0 = x.shape
    TB = rows // 2                                    # one grid block per image batch
    assert rows == 2 * TB and TB % 8 == 0 and K0 % 128 == 0
    N_last = mats[-1].shape[1]

    operands = [x]
    in_specs = [pl.BlockSpec((TB, K0), lambda i: (i, 0))]
    for m, s in zip(mats, shifts):
        assert m.shape[0] % 8 == 0 and m.shape[1] % 128 == 0
        operands += [m, s]
        in_specs += [pl.BlockSpec(m.shape, lambda i: (0, 0)),   # resident across steps
                     pl.BlockSpec(s.shape, lambda i: (0, 0))]

    # Explicit VMEM budget from the actual (double-buffered) block footprint,
    # capped to leave >= 16 MiB headroom under v7x's 64 MiB per-core VMEM.
    blk_bytes = 2 * (TB * K0 * 2 + TB * N_last * 4)
    blk_bytes += 2 * sum(m.size * 2 + s.size * 4 for m, s in zip(mats, shifts))
    interm_bytes = 4 * TB * max(m.shape[1] for m in mats) * 4
    vmem_limit = int(min(48 * 1024 * 1024, blk_bytes + interm_bytes + (8 << 20)))

    return pl.pallas_call(
        functools.partial(_fused_stack_kernel, slope=slope),
        out_shape=jax.ShapeDtypeStruct((rows, N_last), jnp.float32),
        grid=(2,),                                     # image1 block / image2 block
        in_specs=in_specs,
        out_specs=pl.BlockSpec((TB, N_last), lambda i: (i, 0)),
        compiler_params=pltpu.CompilerParams(
            dimension_semantics=("parallel",),         # second TensorCore on v7x
            vmem_limit_bytes=vmem_limit),
    )(*operands)


# ----------------------- one-time parameter preparation --------------------- #
def prepare_fused_params(conv_params, image_size, channels):
    """Outside-jit prep: fold eval-mode BN + conv bias, lower each conv to a dense
    flattened-NHWC matrix, pad to lane/sublane multiples carried through the
    stack, and cast matmul weights to bf16."""
    mats, shifts = [], []
    h = w = image_size
    c = channels
    k_pad = _round_up(h * w * c, 128)
    for (wconv, bias, scale, shift) in conv_params:
        cout = wconv.shape[-1]
        oh = (h + 2 - 3) // 2 + 1
        ow = (w + 2 - 3) // 2 + 1
        in_dim, out_dim = h * w * c, oh * ow * cout

        # Fold BN scale into the HWIO weights; build the unrolled conv matrix by
        # pushing the identity basis through the (linear) strided conv.
        w_folded = wconv * scale
        eye = jnp.eye(in_dim, dtype=jnp.float32).reshape(in_dim, h, w, c)
        t = jax.lax.conv_general_dilated(
            eye, w_folded, window_strides=(2, 2), padding=((1, 1), (1, 1)),
            dimension_numbers=("NHWC", "HWIO", "NHWC"),
            preferred_element_type=jnp.float32).reshape(in_dim, out_dim)
        shift_vec = jnp.tile(bias * scale + shift, oh * ow)   # NHWC flatten order

        n_pad = _round_up(out_dim, 128)
        t_pad = jnp.zeros((k_pad, n_pad), jnp.float32).at[:in_dim, :out_dim].set(t)
        s_pad = jnp.zeros((1, n_pad), jnp.float32).at[0, :out_dim].set(shift_vec)
        mats.append(t_pad.astype(jnp.bfloat16))
        shifts.append(s_pad)

        h, w, c = oh, ow, cout
        k_pad = n_pad                                          # carry lane padding
    return tuple(mats), tuple(shifts)


# ------------------------------ forward pass -------------------------------- #
def coupled_discriminators_forward(image1_nchw, image2_nchw, mats, shifts, lin1, lin2):
    b, _, hh, _ = image1_nchw.shape
    K0 = mats[0].shape[0]
    TB = _round_up(b, 8)                               # sublane-aligned rows per block

    def flat_pad(img):                                 # NCHW -> flattened NHWC, bf16
        x = jnp.transpose(img, (0, 2, 3, 1)).reshape(b, -1).astype(jnp.bfloat16)
        return jnp.pad(x, ((0, TB - b), (0, K0 - x.shape[1])))

    x = jnp.concatenate([flat_pad(image1_nchw), flat_pad(image2_nchw)], axis=0)
    feats = fused_conv_stack(x, mats, shifts, slope=0.2)       # (2*TB, N_last) f32

    # torch `.view(B, -1)` flattens NCHW (C,H,W); kernel output is NHWC order.
    flat_features = lin1[0].shape[0]
    sp = hh // 2 ** 4                                  # spatial after 4 stride-2 convs
    c_final = flat_features // (sp * sp)

    def to_torch_order(rows):
        f = rows[:, :flat_features].reshape(b, sp, sp, c_final)
        return jnp.transpose(f, (0, 3, 1, 2)).reshape(b, flat_features)

    s1 = to_torch_order(feats[:b])
    s2 = to_torch_order(feats[TB:TB + b])
    # Tiny Linear heads in plain XLA (an N=1 Pallas store buys nothing here).
    v1 = s1 @ lin1[0] + lin1[1]
    v2 = s2 @ lin2[0] + lin2[1]
    return v1, v2


forward_jit = jax.jit(coupled_discriminators_forward)


# --------------------------- parameter construction ------------------------- #
def init_params(key, channels=3):
    """Deterministic synthetic parameters (shapes follow the PyTorch __init__)."""
    conv_params = []
    in_c = channels
    out_c = channels * 5 + 1
    eps = 1e-5
    for index in range(4):
        key, kw, kb, kg, kbe, km, kv = jax.random.split(key, 7)
        w = jax.random.normal(kw, (3, 3, in_c, out_c), jnp.float32) * 0.05  # HWIO
        b = jax.random.normal(kb, (out_c,), jnp.float32) * 0.05
        if index != 0:  # BatchNorm2d folded to per-channel scale/shift (eval mode)
            gamma = 1.0 + 0.1 * jax.random.normal(kg, (out_c,), jnp.float32)
            beta = 0.1 * jax.random.normal(kbe, (out_c,), jnp.float32)
            rmean = 0.1 * jax.random.normal(km, (out_c,), jnp.float32)
            rvar = 1.0 + 0.1 * jnp.abs(jax.random.normal(kv, (out_c,), jnp.float32))
            scale = gamma / jnp.sqrt(rvar + eps)
            shift = beta - rmean * scale
        else:
            scale = jnp.ones((out_c,), jnp.float32)
            shift = jnp.zeros((out_c,), jnp.float32)
        conv_params.append((w, b, scale, shift))
        in_c = out_c
        out_c = in_c * 2
    return conv_params, key, in_c


# ------------------------------ pure-JAX references -------------------------- #
def reference_forward(image1, image2, conv_params, lin1, lin2, *, bf16_matmul):
    def shared(x_nchw):
        x = jnp.transpose(x_nchw, (0, 2, 3, 1)).astype(jnp.float32)
        for (w, bias, sc, sh) in conv_params:
            shift = bias * sc + sh
            if bf16_matmul:   # same folded bf16 weights / bf16 activations as the kernel
                w_used = (w * sc).astype(jnp.bfloat16)
                x_used = x.astype(jnp.bfloat16)
            else:             # original full-f32 module semantics
                w_used = w * sc
                x_used = x
            y = jax.lax.conv_general_dilated(
                x_used, w_used, window_strides=(2, 2), padding=((1, 1), (1, 1)),
                dimension_numbers=("NHWC", "HWIO", "NHWC"),
                preferred_element_type=jnp.float32)
            y = y + shift
            x = jnp.where(y >= 0, y, 0.2 * y)
        x = jnp.transpose(x, (0, 3, 1, 2))
        return x.reshape(x.shape[0], -1)

    s1, s2 = shared(image1), shared(image2)
    return s1 @ lin1[0] + lin1[1], s2 @ lin2[0] + lin2[1]


# ---------------------------------- main ------------------------------------ #
if __name__ == "__main__":
    batch, channels, image_size, constant = 2, 3, 16, 128

    key = jax.random.PRNGKey(0)
    conv_params, key, final_c = init_params(key, channels=channels)

    flat_features = constant * (image_size // 2 ** 4) ** 2   # == final_c * (H/16)^2
    key, k1w, k1b, k2w, k2b, ki1, ki2 = jax.random.split(key, 7)
    lin1 = (jax.random.normal(k1w, (flat_features, 1), jnp.float32) * 0.05,
            jax.random.normal(k1b, (1,), jnp.float32) * 0.05)
    lin2 = (jax.random.normal(k2w, (flat_features, 1), jnp.float32) * 0.05,
            jax.random.normal(k2b, (1,), jnp.float32) * 0.05)

    image1 = jax.random.normal(ki1, (batch, channels, image_size, image_size), jnp.float32)
    image2 = jax.random.normal(ki2, (batch, channels, image_size, image_size), jnp.float32)

    # One-time parameter prep (BN folding, conv lowering, padding, bf16 cast).
    mats, shifts = prepare_fused_params(conv_params, image_size, channels)

    v1, v2 = forward_jit(image1, image2, mats, shifts, lin1, lin2)
    v1, v2 = jax.block_until_ready(v1), jax.block_until_ready(v2)
    assert v1.shape == (batch, 1) and v2.shape == (batch, 1)

    # Tight check against a reference using identical bf16 matmul inputs.
    r1, r2 = reference_forward(image1, image2, conv_params, lin1, lin2, bf16_matmul=True)
    assert jnp.allclose(v1, r1, rtol=1e-3, atol=1e-3), (v1, r1)
    assert jnp.allclose(v2, r2, rtol=1e-3, atol=1e-3), (v2, r2)

    # Loose sanity check against the full-f32 reference (original semantics).
    f1, f2 = reference_forward(image1, image2, conv_params, lin1, lin2, bf16_matmul=False)
    assert jnp.allclose(v1, f1, rtol=5e-2, atol=5e-2), (v1, f1)
    assert jnp.allclose(v2, f2, rtol=5e-2, atol=5e-2), (v2, f2)

    print("KERNEL_OK")
</pallas_src>

<mosaic_0001>
module attributes {stable_mosaic.version = 11 : i64} {
  func.func @_fused_stack_kernel(%arg0: i32, %arg1: memref<8x768xbf16, #tpu.memory_space<vmem>>, %arg2: memref<768x1024xbf16, #tpu.memory_space<vmem>>, %arg3: memref<1x1024xf32, #tpu.memory_space<vmem>>, %arg4: memref<1024x512xbf16, #tpu.memory_space<vmem>>, %arg5: memref<1x512xf32, #tpu.memory_space<vmem>>, %arg6: memref<512x256xbf16, #tpu.memory_space<vmem>>, %arg7: memref<1x256xf32, #tpu.memory_space<vmem>>, %arg8: memref<256x128xbf16, #tpu.memory_space<vmem>>, %arg9: memref<1x128xf32, #tpu.memory_space<vmem>>, %arg10: memref<8x128xf32, #tpu.memory_space<vmem>>) attributes {dimension_semantics = [#tpu.dimension_semantics<parallel>], iteration_bounds = array<i64: 2>, scalar_prefetch = 0 : i64, scratch_operands = 0 : i64, tpu.core_type = #tpu.core_type<tc>, window_params = [{transform_indices = @transform_0, window_bounds = array<i64: 8, 768>}, {pipeline_mode = #tpu.pipeline_mode<synchronous>, transform_indices = @transform_1, window_bounds = array<i64: 768, 1024>}, {pipeline_mode = #tpu.pipeline_mode<synchronous>, transform_indices = @transform_2, window_bounds = array<i64: 1, 1024>}, {pipeline_mode = #tpu.pipeline_mode<synchronous>, transform_indices = @transform_3, window_bounds = array<i64: 1024, 512>}, {pipeline_mode = #tpu.pipeline_mode<synchronous>, transform_indices = @transform_4, window_bounds = array<i64: 1, 512>}, {pipeline_mode = #tpu.pipeline_mode<synchronous>, transform_indices = @transform_5, window_bounds = array<i64: 512, 256>}, {pipeline_mode = #tpu.pipeline_mode<synchronous>, transform_indices = @transform_6, window_bounds = array<i64: 1, 256>}, {pipeline_mode = #tpu.pipeline_mode<synchronous>, transform_indices = @transform_7, window_bounds = array<i64: 256, 128>}, {pipeline_mode = #tpu.pipeline_mode<synchronous>, transform_indices = @transform_8, window_bounds = array<i64: 1, 128>}, {transform_indices = @transform_9, window_bounds = array<i64: 8, 128>}]} {
    %c0 = arith.constant 0 : index
    %c0_0 = arith.constant 0 : index
    %0 = vector.load %arg1[%c0, %c0_0] : memref<8x768xbf16, #tpu.memory_space<vmem>>, vector<8x768xbf16>
    %c0_1 = arith.constant 0 : index
    %c0_2 = arith.constant 0 : index
    %1 = vector.load %arg2[%c0_1, %c0_2] : memref<768x1024xbf16, #tpu.memory_space<vmem>>, vector<768x1024xbf16>
    %cst = arith.constant dense<0.000000e+00> : vector<8x1024xf32>
    %2 = tpu.matmul %0, %1, %cst {dimension_numbers = #tpu.dot_dimension_numbers<[1], [0], [0], [1], [0, 0, 1, 1], [], []>} : vector<8x768xbf16>, vector<768x1024xbf16>, vector<8x1024xf32> -> vector<8x1024xf32>
    %c0_3 = arith.constant 0 : index
    %c0_4 = arith.constant 0 : index
    %3 = vector.load %arg3[%c0_3, %c0_4] : memref<1x1024xf32, #tpu.memory_space<vmem>>, vector<1x1024xf32>
    %4 = vector.broadcast %3 : vector<1x1024xf32> to vector<8x1024xf32>
    %5 = arith.addf %2, %4 : vector<8x1024xf32>
    %cst_5 = arith.constant 2.000000e-01 : f32
    %6 = vector.broadcast %cst_5 : f32 to vector<8x1024xf32>
    %7 = arith.mulf %6, %5 : vector<8x1024xf32>
    %8 = arith.maximumf %5, %7 : vector<8x1024xf32>
    %9 = arith.truncf %8 : vector<8x1024xf32> to vector<8x1024xbf16>
    %c0_6 = arith.constant 0 : index
    %c0_7 = arith.constant 0 : index
    %10 = vector.load %arg4[%c0_6, %c0_7] : memref<1024x512xbf16, #tpu.memory_space<vmem>>, vector<1024x512xbf16>
    %cst_8 = arith.constant dense<0.000000e+00> : vector<8x512xf32>
    %11 = tpu.matmul %9, %10, %cst_8 {dimension_numbers = #tpu.dot_dimension_numbers<[1], [0], [0], [1], [0, 0, 1, 1], [], []>} : vector<8x1024xbf16>, vector<1024x512xbf16>, vector<8x512xf32> -> vector<8x512xf32>
    %c0_9 = arith.constant 0 : index
    %c0_10 = arith.constant 0 : index
    %12 = vector.load %arg5[%c0_9, %c0_10] : memref<1x512xf32, #tpu.memory_space<vmem>>, vector<1x512xf32>
    %13 = vector.broadcast %12 : vector<1x512xf32> to vector<8x512xf32>
    %14 = arith.addf %11, %13 : vector<8x512xf32>
    %cst_11 = arith.constant 2.000000e-01 : f32
    %15 = vector.broadcast %cst_11 : f32 to vector<8x512xf32>
    %16 = arith.mulf %15, %14 : vector<8x512xf32>
    %17 = arith.maximumf %14, %16 : vector<8x512xf32>
    %18 = arith.truncf %17 : vector<8x512xf32> to vector<8x512xbf16>
    %c0_12 = arith.constant 0 : index
    %c0_13 = arith.constant 0 : index
    %19 = vector.load %arg6[%c0_12, %c0_13] : memref<512x256xbf16, #tpu.memory_space<vmem>>, vector<512x256xbf16>
    %cst_14 = arith.constant dense<0.000000e+00> : vector<8x256xf32>
    %20 = tpu.matmul %18, %19, %cst_14 {dimension_numbers = #tpu.dot_dimension_numbers<[1], [0], [0], [1], [0, 0, 1, 1], [], []>} : vector<8x512xbf16>, vector<512x256xbf16>, vector<8x256xf32> -> vector<8x256xf32>
    %c0_15 = arith.constant 0 : index
    %c0_16 = arith.constant 0 : index
    %21 = vector.load %arg7[%c0_15, %c0_16] : memref<1x256xf32, #tpu.memory_space<vmem>>, vector<1x256xf32>
    %22 = vector.broadcast %21 : vector<1x256xf32> to vector<8x256xf32>
    %23 = arith.addf %20, %22 : vector<8x256xf32>
    %cst_17 = arith.constant 2.000000e-01 : f32
    %24 = vector.broadcast %cst_17 : f32 to vector<8x256xf32>
    %25 = arith.mulf %24, %23 : vector<8x256xf32>
    %26 = arith.maximumf %23, %25 : vector<8x256xf32>
    %27 = arith.truncf %26 : vector<8x256xf32> to vector<8x256xbf16>
    %c0_18 = arith.constant 0 : index
    %c0_19 = arith.constant 0 : index
    %28 = vector.load %arg8[%c0_18, %c0_19] : memref<256x128xbf16, #tpu.memory_space<vmem>>, vector<256x128xbf16>
    %cst_20 = arith.constant dense<0.000000e+00> : vector<8x128xf32>
    %29 = tpu.matmul %27, %28, %cst_20 {dimension_numbers = #tpu.dot_dimension_numbers<[1], [0], [0], [1], [0, 0, 1, 1], [], []>} : vector<8x256xbf16>, vector<256x128xbf16>, vector<8x128xf32> -> vector<8x128xf32>
    %c0_21 = arith.constant 0 : index
    %c0_22 = arith.constant 0 : index
    %30 = vector.load %arg9[%c0_21, %c0_22] : memref<1x128xf32, #tpu.memory_space<vmem>>, vector<1x128xf32>
    %31 = vector.broadcast %30 : vector<1x128xf32> to vector<8x128xf32>
    %32 = arith.addf %29, %31 : vector<8x128xf32>
    %cst_23 = arith.constant 2.000000e-01 : f32
    %33 = vector.broadcast %cst_23 : f32 to vector<8x128xf32>
    %34 = arith.mulf %33, %32 : vector<8x128xf32>
    %35 = arith.maximumf %32, %34 : vector<8x128xf32>
    %c0_24 = arith.constant 0 : index
    %c0_25 = arith.constant 0 : index
    %36 = vector.load %arg10[%c0_24, %c0_25] : memref<8x128xf32, #tpu.memory_space<vmem>>, vector<8x128xf32>
    tpu.vector_store %arg10[%c0_24, %c0_25], %35 {strides = array<i32>} : memref<8x128xf32, #tpu.memory_space<vmem>>, vector<8x128xf32>,
    return
  }
  func.func @transform_0(%arg0: i32) -> (i32, i32) {
    %c0_i32 = arith.constant 0 : i32
    %c0_i32_0 = arith.constant 0 : i32
    return %arg0, %c0_i32 : i32, i32
  }
  func.func @transform_1(%arg0: i32) -> (i32, i32) {
    %c0_i32 = arith.constant 0 : i32
    %c0_i32_0 = arith.constant 0 : i32
    %c0_i32_1 = arith.constant 0 : i32
    return %c0_i32, %c0_i32_0 : i32, i32
  }
  func.func @transform_2(%arg0: i32) -> (i32, i32) {
    %c0_i32 = arith.constant 0 : i32
    %c0_i32_0 = arith.constant 0 : i32
    %c0_i32_1 = arith.constant 0 : i32
    return %c0_i32, %c0_i32_0 : i32, i32
  }
  func.func @transform_3(%arg0: i32) -> (i32, i32) {
    %c0_i32 = arith.constant 0 : i32
    %c0_i32_0 = arith.constant 0 : i32
    %c0_i32_1 = arith.constant 0 : i32
    return %c0_i32, %c0_i32_0 : i32, i32
  }
  func.func @transform_4(%arg0: i32) -> (i32, i32) {
    %c0_i32 = arith.constant 0 : i32
    %c0_i32_0 = arith.constant 0 : i32
    %c0_i32_1 = arith.constant 0 : i32
    return %c0_i32, %c0_i32_0 : i32, i32
  }
  func.func @transform_5(%arg0: i32) -> (i32, i32) {
    %c0_i32 = arith.constant 0 : i32
    %c0_i32_0 = arith.constant 0 : i32
    %c0_i32_1 = arith.constant 0 : i32
    return %c0_i32, %c0_i32_0 : i32, i32
  }
  func.func @transform_6(%arg0: i32) -> (i32, i32) {
    %c0_i32 = arith.constant 0 : i32
    %c0_i32_0 = arith.constant 0 : i32
    %c0_i32_1 = arith.constant 0 : i32
    return %c0_i32, %c0_i32_0 : i32, i32
  }
  func.func @transform_7(%arg0: i32) -> (i32, i32) {
    %c0_i32 = arith.constant 0 : i32
    %c0_i32_0 = arith.constant 0 : i32
    %c0_i32_1 = arith.constant 0 : i32
    return %c0_i32, %c0_i32_0 : i32, i32
  }
  func.func @transform_8(%arg0: i32) -> (i32, i32) {
    %c0_i32 = arith.constant 0 : i32
    %c0_i32_0 = arith.constant 0 : i32
    %c0_i32_1 = arith.constant 0 : i32
    return %c0_i32, %c0_i32_0 : i32, i32
  }
  func.func @transform_9(%arg0: i32) -> (i32, i32) {
    %c0_i32 = arith.constant 0 : i32
    %c0_i32_0 = arith.constant 0 : i32
    return %arg0, %c0_i32 : i32, i32
  }
}

</mosaic_0001>

<bundles_post_ra>
// kernel: coupled_discriminators_forward.1
= control target key start
LH: loop header
LB: loop body
LE: loop exit
PB: predicated region body
PF: predicated region fallthrough
CT: control target
= control target key end

     0   :  { %14 = vsyncpa [#allocation3], 0  ;;  %s8161_s0 = inlined_call_operand.vmem [shape: bf16[16,768], index: 0, kind: input, shape index: {}]   ;;  %s8162_s1 = inlined_call_operand.hbm [shape: bf16[768,1024], index: 1, kind: input, shape index: {}]   ;;  %s8163_s2 = inlined_call_operand.hbm [shape: f32[1,1024], index: 2, kind: input, shape index: {}]   ;;  %s8164_s3 = inlined_call_operand.hbm [shape: bf16[1024,512], index: 3, kind: input, shape index: {}]   ;;  %s8165_s4 = inlined_call_operand.hbm [shape: f32[1,512], index: 4, kind: input, shape index: {}]   ;;  %s8166_s5 = inlined_call_operand.hbm [shape: bf16[512,256], index: 5, kind: input, shape index: {}]   ;;  %s8167_s6 = inlined_call_operand.hbm [shape: f32[1,256], index: 6, kind: input, shape index: {}]   ;;  %s8168_s7 = inlined_call_operand.hbm [shape: bf16[256,128], index: 7, kind: input, shape index: {}]   ;;  %s8169_s8 = inlined_call_operand.hbm [shape: f32[1,128], index: 8, kind: input, shape index: {}]   ;;  %s8170_s9 = inlined_call_operand.vmem [shape: f32[16,128], index: 9, kind: output, shape index: {}]  }
   0x1   :  { %15 = vsyncpa [#allocation5], 0 }
   0x2   :  { %16 = vsyncpa [#allocation8], 0 }
   0x3   :  { %17 = vsyncpa [#allocation11], 0 }
   0x4   :  { %18 = vsyncpa [#allocation14], 0  ;;  %s7784_s30 = smov 0  }
   0x5 LB: > { %s7718_s10 = smov [#allocation4]   ;;  %s7790_s12 = sadd.s32 4294967295, %s7716_s30   ;;  %s7716_s30 = sphi %s7784_s30, %s24_s30  }
   0x6   : > { %s275_s11 = sshll.u32 %s7718_s10, 4  ;;  %p6021_p0 = scmp.ge.s32.totalorder %s7716_s30, 1  ;;  %s7795_s11 = int_to_ptr.vmem [resolvable:$true] %s275_s11 }
   0x7   : > { %p249_p1 = scmp.lt.s32.totalorder %s7716_s30, 3  ;;  %p8171_p2 = scmp.eq.s32.totalorder %s7790_s12, 0 }
   0x8   : > { %s7719_s14 = smov [#allocation7]   ;;  %s7720_s16 = smov [#allocation10]  }
   0x9   : > { %p7797_p3 = pnand %p6021_p0, %p249_p1  ;;  %s299_s15 = sshll.u32 %s7719_s14, 4  ;;  %s7803_s15 = int_to_ptr.vmem [resolvable:$true] %s299_s15 }
   0xa   : > { %s323_s17 = sshll.u32 %s7720_s16, 4  ;;  %s7721_s19 = smov [#allocation2]   ;;  %s7811_s17 = int_to_ptr.vmem [resolvable:$true] %s323_s17 }
   0xb   : > { %s8173_s13 = scalar_select %p7797_p3, 1, 0 }
   0xc   : > { %p6898_p4 = pneg %p7797_p3  ;;  %s261_s20 = sshll.u32 %s7721_s19, 4  ;;  %s7813_s20 = int_to_ptr.vmem [resolvable:$true] %s261_s20 }
   0xd   : > { %s7466_s23 = scalar_lea.hbm %s8163_s2, 128 }
   0xe   : > { %p7807_p5 = pnand %p8171_p2, %p6898_p4  ;;  %p7467_p6 = scmp.ne.s32.totalorder %s8163_s2, %s7466_s23 }
   0xf   : > { %p7473_p10 = scmp.lt.u32.totalorder %s7466_s23, %s8163_s2 }
  0x10   : > { %p7823_p7 = pneg %p7807_p5 }
  0x12   : > { %p7469_p8 = pnand %p7823_p7, %p7467_p6 }
  0x14   : > { %p7470_p9 = pneg %p7469_p8 }
  0x16   : > { %p7475_p11 = pnand %p7473_p10, %p7470_p9 }
  0x18   : > { %7478 = shalt.err (!%p7475_p11)
}
  0x19   : > { %s7479_s29 = scalar_lea.vmem %s7795_s11, 128  ;;  %p7487_p1 = scmp.lt.s32.totalorder %s7795_s11, %s7795_s11 }
  0x1a   : > { %p7480_p12 = scmp.ne.s32.totalorder %s7795_s11, %s7479_s29  ;;  %p7488_p4 = scmp.lt.s32.totalorder %s7479_s29, %s7479_s29 }
  0x1c   : > { %p7482_p13 = pnand %p7480_p12, %p7823_p7  ;;  %p7489_p6 = por %p7488_p4, %p7487_p1 }
  0x1e   : > { %p7483_p0 = pneg %p7482_p13 }
  0x20   : > { %p7490_p8 = pnand %p7489_p6, %p7483_p0 }
  0x22   : > { %7493 = shalt.err (!%p7490_p8)
}
  0x23   : > { %6904 = dma.hbm_to_vmem [thread:$0]  (!%p7807_p5), %s8163_s2, 128, %s7795_s11, [#allocation5]  }
  0x24   : > { %s7494_s21 = scalar_lea.hbm %s8165_s4, 64 }
  0x25   : > { %p7495_p9 = scmp.ne.s32.totalorder %s8165_s4, %s7494_s21  ;;  %p7501_p12 = scmp.lt.u32.totalorder %s7494_s21, %s8165_s4 }
  0x27   : > { %p7497_p10 = pnand %p7495_p9, %p7823_p7 }
  0x29   : > { %p7498_p11 = pneg %p7497_p10 }
  0x2b   : > { %p7503_p13 = pnand %p7501_p12, %p7498_p11 }
  0x2d   : > { %7506 = shalt.err (!%p7503_p13)
}
  0x2e   : > { %s7507_s11 = scalar_lea.vmem %s7803_s15, 64  ;;  %p7515_p6 = scmp.lt.s32.totalorder %s7803_s15, %s7803_s15 }
  0x2f   : > { %p7508_p0 = scmp.ne.s32.totalorder %s7803_s15, %s7507_s11  ;;  %p7516_p8 = scmp.lt.s32.totalorder %s7507_s11, %s7507_s11 }
  0x31   : > { %p7510_p1 = pnand %p7508_p0, %p7823_p7  ;;  %p7517_p9 = por %p7516_p8, %p7515_p6 }
  0x33   : > { %p7511_p4 = pneg %p7510_p1 }
  0x35   : > { %p7518_p10 = pnand %p7517_p9, %p7511_p4 }
  0x37   : > { %7521 = shalt.err (!%p7518_p10)
}
  0x38   : > { %6910 = dma.hbm_to_vmem [thread:$0]  (!%p7807_p5), %s8165_s4, 64, %s7803_s15, [#allocation8]  }
  0x39   : > { %s7522_s14 = scalar_lea.hbm %s8167_s6, 32 }
  0x3a   : > { %p7523_p11 = scmp.ne.s32.totalorder %s8167_s6, %s7522_s14  ;;  %p7529_p0 = scmp.lt.u32.totalorder %s7522_s14, %s8167_s6 }
  0x3c   : > { %p7525_p12 = pnand %p7523_p11, %p7823_p7 }
  0x3e   : > { %p7526_p13 = pneg %p7525_p12 }
  0x40   : > { %p7531_p1 = pnand %p7529_p0, %p7526_p13 }
  0x42   : > { %7534 = shalt.err (!%p7531_p1)
}
  0x43   : > { %s7535_s15 = scalar_lea.vmem %s7811_s17, 32  ;;  %p7543_p9 = scmp.lt.s32.totalorder %s7811_s17, %s7811_s17 }
  0x44   : > { %p7536_p4 = scmp.ne.s32.totalorder %s7811_s17, %s7535_s15  ;;  %p7544_p10 = scmp.lt.s32.totalorder %s7535_s15, %s7535_s15 }
  0x46   : > { %p7538_p6 = pnand %p7536_p4, %p7823_p7  ;;  %p7545_p11 = por %p7544_p10, %p7543_p9 }
  0x48   : > { %p7539_p8 = pneg %p7538_p6 }
  0x4a   : > { %p7546_p12 = pnand %p7545_p11, %p7539_p8 }
  0x4c   : > { %7549 = shalt.err (!%p7546_p12)
}
  0x4d   : > { %6916 = dma.hbm_to_vmem [thread:$0]  (!%p7807_p5), %s8167_s6, 32, %s7811_s17, [#allocation11]  }
  0x4e   : > { %s7550_s27 = scalar_lea.hbm %s8162_s1, 49152 }
  0x4f   : > { %p7551_p13 = scmp.ne.s32.totalorder %s8162_s1, %s7550_s27  ;;  %p7557_p4 = scmp.lt.u32.totalorder %s7550_s27, %s8162_s1 }
  0x51   : > { %p7553_p0 = pnand %p7551_p13, %p7823_p7 }
  0x53   : > { %p7554_p1 = pneg %p7553_p0 }
  0x55   : > { %p7559_p6 = pnand %p7557_p4, %p7554_p1 }
  0x57   : > { %7562 = shalt.err (!%p7559_p6)
}
  0x58   : > { %s7563_s17 = scalar_lea.vmem %s7813_s20, 49152  ;;  %p7571_p11 = scmp.lt.s32.totalorder %s7813_s20, %s7813_s20 }
  0x59   : > { %p7564_p8 = scmp.ne.s32.totalorder %s7813_s20, %s7563_s17  ;;  %p7572_p12 = scmp.lt.s32.totalorder %s7563_s17, %s7563_s17 }
  0x5b   : > { %p7566_p9 = pnand %p7564_p8, %p7823_p7  ;;  %p7573_p13 = por %p7572_p12, %p7571_p11 }
  0x5d   : > { %p7567_p10 = pneg %p7566_p9 }
  0x5f   : > { %p7574_p0 = pnand %p7573_p13, %p7567_p10 }
  0x61   : > { %7577 = shalt.err (!%p7574_p0)
}
  0x62   : > { %s7722_s16 = smov 512   ;;  %s7723_s19 = smov 32  }
  0x63   : > { %6901 = dma.hbm_to_vmem [thread:$0]  (!%p7807_p5), %s8162_s1, 49152, %s7813_s20, [#allocation3], %s7722_s16, %s7722_s16, %s7723_s19  }
  0x64   : > { %s7724_s15 = smov [#allocation6]   ;;  %s7578_s11 = scalar_lea.hbm %s8164_s3, 32768 }
  0x65   : > { %s285_s23 = sshll.u32 %s7724_s15, 4  ;;  %p7579_p1 = scmp.ne.s32.totalorder %s8164_s3, %s7578_s11  ;;  %s286_s23 = int_to_ptr.vmem [resolvable:$true] %s285_s23 }
  0x66   : > { %p7585_p8 = scmp.lt.u32.totalorder %s7578_s11, %s8164_s3 }
  0x67   : > { %p7581_p4 = pnand %p7579_p1, %p7823_p7 }
  0x69   : > { %p7582_p6 = pneg %p7581_p4 }
  0x6b   : > { %p7587_p9 = pnand %p7585_p8, %p7582_p6 }
  0x6d   : > { %7590 = shalt.err (!%p7587_p9)
}
  0x6e   : > { %s7591_s20 = scalar_lea.vmem %s286_s23, 32768  ;;  %p7599_p13 = scmp.lt.s32.totalorder %s286_s23, %s286_s23 }
  0x6f   : > { %p7592_p10 = scmp.ne.s32.totalorder %s286_s23, %s7591_s20  ;;  %p7600_p0 = scmp.lt.s32.totalorder %s7591_s20, %s7591_s20 }
  0x71   : > { %p7594_p11 = pnand %p7592_p10, %p7823_p7  ;;  %p7601_p2 = por %p7600_p0, %p7599_p13 }
  0x73   : > { %p7595_p12 = pneg %p7594_p11 }
  0x75   : > { %p7602_p3 = pnand %p7601_p2, %p7595_p12 }
  0x77   : > { %7605 = shalt.err (!%p7602_p3)
}
  0x78   : > { %s7725_s14 = smov 256   ;;  %s7726_s17 = smov 16  }
  0x79   : > { %6907 = dma.hbm_to_vmem [thread:$0]  (!%p7807_p5), %s8164_s3, 32768, %s286_s23, [#allocation5], %s7725_s14, %s7725_s14, %s7726_s17  }
  0x7a   : > { %s7727_s21 = smov [#allocation9]   ;;  %s7606_s25 = scalar_lea.hbm %s8166_s5, 8192 }
  0x7b   : > { %s309_s22 = sshll.u32 %s7727_s21, 4  ;;  %p7607_p2 = scmp.ne.s32.totalorder %s8166_s5, %s7606_s25  ;;  %s310_s22 = int_to_ptr.vmem [resolvable:$true] %s309_s22 }
  0x7c   : > { %p7613_p4 = scmp.lt.u32.totalorder %s7606_s25, %s8166_s5 }
  0x7d   : > { %p7609_p3 = pnand %p7607_p2, %p7823_p7 }
  0x7f   : > { %p7610_p1 = pneg %p7609_p3 }
  0x81   : > { %p7615_p6 = pnand %p7613_p4, %p7610_p1 }
  0x83   : > { %7618 = shalt.err (!%p7615_p6)
}
  0x84   : > { %s7619_s23 = scalar_lea.vmem %s310_s22, 8192  ;;  %p7627_p11 = scmp.lt.s32.totalorder %s310_s22, %s310_s22 }
  0x85   : > { %p7620_p8 = scmp.ne.s32.totalorder %s310_s22, %s7619_s23  ;;  %p7628_p12 = scmp.lt.s32.totalorder %s7619_s23, %s7619_s23 }
  0x87   : > { %p7622_p9 = pnand %p7620_p8, %p7823_p7  ;;  %p7629_p13 = por %p7628_p12, %p7627_p11 }
  0x89   : > { %p7623_p10 = pneg %p7622_p9 }
  0x8b   : > { %p7630_p0 = pnand %p7629_p13, %p7623_p10 }
  0x8d   : > { %7633 = shalt.err (!%p7630_p0)
}
  0x8e   : > { %s7728_s10 = smov 128   ;;  %s7729_s20 = smov 8  }
  0x8f   : > { %6913 = dma.hbm_to_vmem [thread:$0]  (!%p7807_p5), %s8166_s5, 8192, %s310_s22, [#allocation8], %s7728_s10, %s7728_s10, %s7729_s20  }
  0x90   : > { %s7730_s16 = smov [#allocation12]   ;;  %s7634_s24 = scalar_lea.hbm %s8168_s7, 2048 }
  0x91   : > { %s333_s19 = sshll.u32 %s7730_s16, 4  ;;  %p7635_p2 = scmp.ne.s32.totalorder %s8168_s7, %s7634_s24  ;;  %s334_s19 = int_to_ptr.vmem [resolvable:$true] %s333_s19 }
  0x92   : > { %p7641_p4 = scmp.lt.u32.totalorder %s7634_s24, %s8168_s7 }
  0x93   : > { %p7637_p3 = pnand %p7635_p2, %p7823_p7 }
  0x95   : > { %p7638_p1 = pneg %p7637_p3 }
  0x97   : > { %p7643_p6 = pnand %p7641_p4, %p7638_p1 }
  0x99   : > { %7646 = shalt.err (!%p7643_p6)
}
  0x9a   : > { %s7647_s22 = scalar_lea.vmem %s334_s19, 2048  ;;  %p7655_p11 = scmp.lt.s32.totalorder %s334_s19, %s334_s19 }
  0x9b   : > { %p7648_p8 = scmp.ne.s32.totalorder %s334_s19, %s7647_s22  ;;  %p7656_p12 = scmp.lt.s32.totalorder %s7647_s22, %s7647_s22 }
  0x9d   : > { %p7650_p9 = pnand %p7648_p8, %p7823_p7  ;;  %p7657_p13 = por %p7656_p12, %p7655_p11 }
  0x9f   : > { %p7651_p10 = pneg %p7650_p9 }
  0xa1   : > { %p7658_p0 = pnand %p7657_p13, %p7651_p10 }
  0xa3   : > { %7661 = shalt.err (!%p7658_p0)
}
  0xa4   : > { %s7731_s29 = smov 64   ;;  %s7732_s23 = smov 4  }
  0xa5   : > { %6919 = dma.hbm_to_vmem [thread:$0]  (!%p7807_p5), %s8168_s7, 2048, %s334_s19, [#allocation11], %s7731_s29, %s7731_s29, %s7732_s23  }
  0xa6   : > { %s7733_s14 = smov [#allocation13]   ;;  %s7662_s15 = scalar_lea.hbm %s8169_s8, 16 }
  0xa7   : > { %s347_s17 = sshll.u32 %s7733_s14, 4  ;;  %p7663_p2 = scmp.ne.s32.totalorder %s8169_s8, %s7662_s15  ;;  %s348_s17 = int_to_ptr.vmem [resolvable:$true] %s347_s17 }
  0xa8   : > { %p7669_p4 = scmp.lt.u32.totalorder %s7662_s15, %s8169_s8 }
  0xa9   : > { %p7665_p3 = pnand %p7663_p2, %p7823_p7 }
  0xab   : > { %p7666_p1 = pneg %p7665_p3 }
  0xad   : > { %p7671_p6 = pnand %p7669_p4, %p7666_p1 }
  0xaf   : > { %7674 = shalt.err (!%p7671_p6)
}
  0xb0   : > { %s7675_s19 = scalar_lea.vmem %s348_s17, 16  ;;  %s7682_s28 = scalar_lea.vmem %s348_s17, 32 }
  0xb1   : > { %p7676_p8 = scmp.ne.s32.totalorder %s348_s17, %s7675_s19  ;;  %p7683_p11 = scmp.lt.s32.totalorder %s348_s17, %s348_s17 }
  0xb2   : > { %p7684_p12 = scmp.lt.s32.totalorder %s7682_s28, %s7675_s19 }
  0xb3   : > { %p7678_p9 = pnand %p7676_p8, %p7823_p7 }
  0xb4   : > { %p7685_p13 = por %p7684_p12, %p7683_p11 }
  0xb5   : > { %p7679_p10 = pneg %p7678_p9 }
  0xb7   : > { %p7686_p0 = pnand %p7685_p13, %p7679_p10 }
  0xb9   : > { %7689 = shalt.err (!%p7686_p0)
}
  0xba   : > { %6922 = dma.hbm_to_vmem [thread:$0]  (!%p7807_p5), %s8169_s8, 16, %s348_s17, [#allocation14]  }
  0xbb   : > { %p8176_p2 = scmp.ne.s32.totalorder %s8173_s13, 0 }
  0xbc   : > { %p8177_p3 = scmp.eq.s32.totalorder (!%p8176_p2), %s7790_s12, 0 }
  0xbd   : > { %368 = sbr.rel (%p8176_p2) target bundleno = 1614 (0x64e), region = 56 }
  0xc4   : > { %7695 = dma.done.wait (%p8177_p3), [#allocation3], 49152   ;;  %p8178_p7 = pmov %p8177_p3 }
  0xc5   : > { %p8179_p1 = pmov %p8177_p3 }
  0xc6   : > { %7697 = vsyncadd (%p8178_p7), [#allocation3], 4294918144 }
  0xc7   : > { %7699 = dma.done.wait (%p8179_p1), [#allocation5], 32896   ;;  %p8180_p4 = pmov %p8179_p1 }
  0xc8   : > { %p8181_p6 = pmov %p8179_p1 }
  0xc9   : > { %7701 = vsyncadd (%p8180_p4), [#allocation5], 4294934400 }
  0xca   : > { %7703 = dma.done.wait (%p8181_p6), [#allocation8], 8256   ;;  %p8182_p5 = pmov %p8179_p1 }
  0xcb   : > { %p8183_p8 = pmov %p8179_p1 }
  0xcc   : > { %7705 = vsyncadd (%p8182_p5), [#allocation8], 4294959040 }
  0xcd   : > { %7707 = dma.done.wait (%p8183_p8), [#allocation11], 2080   ;;  %p8184_p9 = pmov %p8179_p1 }
  0xce   : > { %p8185_p10 = pmov %p8179_p1 }
  0xcf   : > { %7709 = vsyncadd (%p8184_p9), [#allocation11], 4294965216 }
  0xd0   : > { %7711 = dma.done.wait (%p8185_p10), [#allocation14], 16   ;;  %p8186_p11 = pmov %p8179_p1 }
  0xd1   : > { %v444_v0 = vld [vmem:[#allocation2] sm:$0xff]  ;;  %p431_p12 = scmp.lt.s32.totalorder %s7790_s12, 1 }
  0xd2   : > { %7713 = vsyncadd (%p8186_p11), [#allocation14], 4294967280  ;;  %v448_v1 = vld [vmem:[#allocation2 + $0x20] sm:$0xff] }
  0xd3   : > { %v572_v2 = vld [vmem:[#allocation2 + $0x400] sm:$0xff]  ;;  %v6049_v3 = vcombine.high %v444_v0, %v448_v1  ;;  %v6048_v5 = vcombine.low %v444_v0, %v448_v1  ;;  %s8188_s12 = smov (!%p431_p12, %s7790_s12), 1 }
  0xd4   : > { %v576_v4 = vld [vmem:[#allocation2 + $0x420] sm:$0xff]  ;;  %s6865_s13 = smul.u32 24, %s8188_s12  ;;  %s6041_s10 = sshll.u32 %s8188_s12, 3 }
  0xd5   : > { %v452_v6 = vld [vmem:[#allocation2 + $0x40] sm:$0xff]  ;;  %v6177_v8 = vcombine.high %v572_v2, %v576_v4  ;;  %v6176_v9 = vcombine.low %v572_v2, %v576_v4  ;;  %2811 = vmatprep.subr.bf16.mxu1 %v6049_v3  ;;  %s439_s17 = scalar_lea.vmem %s8170_s9, %s6041_s10 }
  0xd6   : > { %v456_v7 = vld [vmem:[#allocation2 + $0x60] sm:$0xff]  ;;  %2812 = vmatpush1.bf16.msra.mxu1 %v6048_v5  ;;  %s8015_s23 = scalar_lea.vmem %s8161_s0, %s6865_s13 }
  0xd7   : > { %v6057_v10 = vcombine.high %v452_v6, %v456_v7  ;;  %v580_v11 = vld [vmem:[#allocation2 + $0x440] sm:$0xff]  ;;  %2852 = vmatprep.subr.bf16.mxu0 %v6177_v8  ;;  %v6056_v18 = vcombine.low %v452_v6, %v456_v7  ;;  %v8021_v54 = vld [vmem:[%s8015_s23 + $0x8] sm:$0xff] }
  0xd8   : > { %v584_v12 = vld [vmem:[#allocation2 + $0x460] sm:$0xff]  ;;  %2853 = vmatpush1.bf16.msra.mxu0 %v6176_v9  ;;  %v8029_v61 = vcombine.high %v8021_v54, %v8021_v54 }
  0xd9   : > { %v460_v13 = vld [vmem:[#allocation2 + $0x80] sm:$0xff]  ;;  %v6185_v14 = vcombine.high %v580_v11, %v584_v12  ;;  %2813 = vmatprep.subr.bf16.mxu1 %v6057_v10  ;;  %v6184_v19 = vcombine.low %v580_v11, %v584_v12 }
  0xda   : > { %v464_v15 = vld [vmem:[#allocation2 + $0xa0] sm:$0xff]  ;;  %2814 = vmatpush1.bf16.msra.mxu1 %v6056_v18  ;;  %2884 = vmatprep.mubr.bf16.mxu0 %v8029_v61 }
  0xdb   : > { %v588_v16 = vld [vmem:[#allocation2 + $0x480] sm:$0xff]  ;;  %v6065_v20 = vcombine.high %v460_v13, %v464_v15  ;;  %2854 = vmatprep.subr.bf16.mxu0 %v6185_v14  ;;  %v6064_v26 = vcombine.low %v460_v13, %v464_v15 }
  0xdc   : > { %v592_v17 = vld [vmem:[#allocation2 + $0x4a0] sm:$0xff]  ;;  %2855 = vmatpush1.bf16.msra.mxu0 %v6184_v19 }
  0xdd   : > { %v6193_v21 = vcombine.high %v588_v16, %v592_v17  ;;  %v468_v22 = vld [vmem:[#allocation2 + $0xc0] sm:$0xff]  ;;  %2815 = vmatprep.subr.bf16.mxu1 %v6065_v20  ;;  %v6192_v27 = vcombine.low %v588_v16, %v592_v17 }
  0xde   : > { %v472_v23 = vld [vmem:[#allocation2 + $0xe0] sm:$0xff]  ;;  %2816 = vmatpush1.bf16.msra.mxu1 %v6064_v26 }
  0xdf   : > { %v596_v24 = vld [vmem:[#allocation2 + $0x4c0] sm:$0xff]  ;;  %v6073_v28 = vcombine.high %v468_v22, %v472_v23  ;;  %2856 = vmatprep.subr.bf16.mxu0 %v6193_v21  ;;  %v6072_v34 = vcombine.low %v468_v22, %v472_v23 }
  0xe0   : > { %v600_v25 = vld [vmem:[#allocation2 + $0x4e0] sm:$0xff]  ;;  %2857 = vmatpush1.bf16.msra.mxu0 %v6192_v27 }
  0xe1   : > { %v6201_v29 = vcombine.high %v596_v24, %v600_v25  ;;  %v476_v30 = vld [vmem:[#allocation2 + $0x100] sm:$0xff]  ;;  %2817 = vmatprep.subr.bf16.mxu1 %v6073_v28  ;;  %v6200_v35 = vcombine.low %v596_v24, %v600_v25 }
  0xe2   : > { %v480_v31 = vld [vmem:[#allocation2 + $0x120] sm:$0xff]  ;;  %2818 = vmatpush1.bf16.msra.mxu1 %v6072_v34 }
  0xe3   : > { %v604_v32 = vld [vmem:[#allocation2 + $0x500] sm:$0xff]  ;;  %v6081_v36 = vcombine.high %v476_v30, %v480_v31  ;;  %2858 = vmatprep.subr.bf16.mxu0 %v6201_v29  ;;  %v6080_v42 = vcombine.low %v476_v30, %v480_v31 }
  0xe4   : > { %v608_v33 = vld [vmem:[#allocation2 + $0x520] sm:$0xff]  ;;  %2859 = vmatpush1.bf16.msra.mxu0 %v6200_v35 }
  0xe5   : > { %v6209_v37 = vcombine.high %v604_v32, %v608_v33  ;;  %v484_v38 = vld [vmem:[#allocation2 + $0x140] sm:$0xff]  ;;  %2819 = vmatprep.subr.bf16.mxu1 %v6081_v36  ;;  %v6208_v43 = vcombine.low %v604_v32, %v608_v33 }
  0xe6   : > { %v488_v39 = vld [vmem:[#allocation2 + $0x160] sm:$0xff]  ;;  %2820 = vmatpush1.bf16.msra.mxu1 %v6080_v42 }
  0xe7   : > { %v612_v40 = vld [vmem:[#allocation2 + $0x540] sm:$0xff]  ;;  %v6089_v44 = vcombine.high %v484_v38, %v488_v39  ;;  %2860 = vmatprep.subr.bf16.mxu0 %v6209_v37  ;;  %v6088_v50 = vcombine.low %v484_v38, %v488_v39 }
  0xe8   : > { %v616_v41 = vld [vmem:[#allocation2 + $0x560] sm:$0xff]  ;;  %2861 = vmatpush1.bf16.msra.mxu0 %v6208_v43 }
  0xe9   : > { %v6217_v45 = vcombine.high %v612_v40, %v616_v41  ;;  %v492_v46 = vld [vmem:[#allocation2 + $0x180] sm:$0xff]  ;;  %2821 = vmatprep.subr.bf16.mxu1 %v6089_v44  ;;  %v6216_v51 = vcombine.low %v612_v40, %v616_v41 }
  0xea   : > { %v496_v47 = vld [vmem:[#allocation2 + $0x1a0] sm:$0xff]  ;;  %2822 = vmatpush1.bf16.msra.mxu1 %v6088_v50 }
  0xeb   : > { %v620_v48 = vld [vmem:[#allocation2 + $0x580] sm:$0xff]  ;;  %v6097_v52 = vcombine.high %v492_v46, %v496_v47  ;;  %2862 = vmatprep.subr.bf16.mxu0 %v6217_v45  ;;  %v6096_v62 = vcombine.low %v492_v46, %v496_v47 }
  0xec   : > { %v624_v49 = vld [vmem:[#allocation2 + $0x5a0] sm:$0xff]  ;;  %2863 = vmatpush1.bf16.msra.mxu0 %v6216_v51 }
  0xed   : > { %v8018_v53 = vld [vmem:[%s8015_s23] sm:$0xff]  ;;  %v6225_v55 = vcombine.high %v620_v48, %v624_v49  ;;  %2823 = vmatprep.subr.bf16.mxu1 %v6097_v52  ;;  %v6224_v63 = vcombine.low %v620_v48, %v624_v49 }
  0xee   : > { %v500_v56 = vld [vmem:[#allocation2 + $0x1c0] sm:$0xff]  ;;  %v8025_v58 = vcombine.high %v8018_v53, %v8018_v53  ;;  %2824 = vmatpush1.bf16.msra.mxu1 %v6096_v62 }
  0xef   : > { %v504_v57 = vld [vmem:[#allocation2 + $0x1e0] sm:$0xff]  ;;  %2864 = vmatprep.subr.bf16.mxu0 %v6225_v55 }
  0xf0   : > { %v628_v59 = vld [vmem:[#allocation2 + $0x5c0] sm:$0xff]  ;;  %2843 = vmatprep.mubr.bf16.mxu1 %v8025_v58  ;;  %v6105_v0 = vcombine.high %v500_v56, %v504_v57  ;;  %v6104_v6 = vcombine.low %v500_v56, %v504_v57  ;;  %2865 = vmatpush1.bf16.msra.mxu0 %v6224_v63 }
  0xf1   : > { %v632_v60 = vld [vmem:[#allocation2 + $0x5e0] sm:$0xff] }
  0xf2   : > { %v6233_v1 = vcombine.high %v628_v59, %v632_v60  ;;  %v508_v2 = vld [vmem:[#allocation2 + $0x200] sm:$0xff]  ;;  %2825 = vmatprep.subr.bf16.mxu1 %v6105_v0  ;;  %v6232_v7 = vcombine.low %v628_v59, %v632_v60 }
  0xf3   : > { %v512_v3 = vld [vmem:[#allocation2 + $0x220] sm:$0xff]  ;;  %2826 = vmatpush1.bf16.msra.mxu1 %v6104_v6  ;;  %v445_v6 = vld [vmem:[#allocation2 + $0x8] sm:$0xff] }
  0xf4   : > { %v636_v4 = vld [vmem:[#allocation2 + $0x600] sm:$0xff]  ;;  %v6113_v8 = vcombine.high %v508_v2, %v512_v3  ;;  %2866 = vmatprep.subr.bf16.mxu0 %v6233_v1  ;;  %v6112_v14 = vcombine.low %v508_v2, %v512_v3 }
  0xf5   : > { %v640_v5 = vld [vmem:[#allocation2 + $0x620] sm:$0xff]  ;;  %2867 = vmatpush1.bf16.msra.mxu0 %v6232_v7  ;;  %v449_v7 = vld [vmem:[#allocation2 + $0x28] sm:$0xff] }
  0xf6   : > { %v6241_v9 = vcombine.high %v636_v4, %v640_v5  ;;  %v516_v10 = vld [vmem:[#allocation2 + $0x240] sm:$0xff]  ;;  %2827 = vmatprep.subr.bf16.mxu1 %v6113_v8  ;;  %v6240_v15 = vcombine.low %v636_v4, %v640_v5 }
  0xf7   : > { %v520_v11 = vld [vmem:[#allocation2 + $0x260] sm:$0xff]  ;;  %2828 = vmatpush1.bf16.msra.mxu1 %v6112_v14  ;;  %v453_v14 = vld [vmem:[#allocation2 + $0x48] sm:$0xff] }
  0xf8   : > { %v644_v12 = vld [vmem:[#allocation2 + $0x640] sm:$0xff]  ;;  %v6121_v16 = vcombine.high %v516_v10, %v520_v11  ;;  %2868 = vmatprep.subr.bf16.mxu0 %v6241_v9  ;;  %v6120_v22 = vcombine.low %v516_v10, %v520_v11 }
  0xf9   : > { %v648_v13 = vld [vmem:[#allocation2 + $0x660] sm:$0xff]  ;;  %2869 = vmatpush1.bf16.msra.mxu0 %v6240_v15  ;;  %v457_v15 = vld [vmem:[#allocation2 + $0x68] sm:$0xff] }
  0xfa   : > { %v6249_v17 = vcombine.high %v644_v12, %v648_v13  ;;  %v524_v18 = vld [vmem:[#allocation2 + $0x280] sm:$0xff]  ;;  %2829 = vmatprep.subr.bf16.mxu1 %v6121_v16  ;;  %v6248_v23 = vcombine.low %v644_v12, %v648_v13  ;;  %v6051_v12 = vcombine.high %v445_v6, %v449_v7  ;;  %v8035_v16 = vcombine.low %v8018_v53, %v8018_v53 }
  0xfb   : > { %v528_v19 = vld [vmem:[#allocation2 + $0x2a0] sm:$0xff]  ;;  %2830 = vmatpush1.bf16.msra.mxu1 %v6120_v22 }
  0xfc   : > { %v652_v20 = vld [vmem:[#allocation2 + $0x680] sm:$0xff]  ;;  %v6129_v24 = vcombine.high %v524_v18, %v528_v19  ;;  %2870 = vmatprep.subr.bf16.mxu0 %v6249_v17  ;;  %v6128_v30 = vcombine.low %v524_v18, %v528_v19  ;;  %v8038_v19 = vld [vmem:[%s8015_s23 + $0x10] sm:$0xff] }
  0xfd   : > { %v656_v21 = vld [vmem:[#allocation2 + $0x6a0] sm:$0xff]  ;;  %2871 = vmatpush1.bf16.msra.mxu0 %v6248_v23  ;;  %v6059_v23 = vcombine.high %v453_v14, %v457_v15 }
  0xfe   : > { %v6257_v25 = vcombine.high %v652_v20, %v656_v21  ;;  %v532_v26 = vld [vmem:[#allocation2 + $0x2c0] sm:$0xff]  ;;  %2831 = vmatprep.subr.bf16.mxu1 %v6129_v24  ;;  %v6256_v31 = vcombine.low %v652_v20, %v656_v21  ;;  %v6050_v20 = vcombine.low %v445_v6, %v449_v7  ;;  %v8042_v21 = vcombine.low %v8021_v54, %v8021_v54  ;;  %v505_v7 = vld [vmem:[#allocation2 + $0x1e8] sm:$0xff] }
  0xff   : > { %v536_v27 = vld [vmem:[#allocation2 + $0x2e0] sm:$0xff]  ;;  %2832 = vmatpush1.bf16.msra.mxu1 %v6128_v30  ;;  %v6058_v54 = vcombine.low %v453_v14, %v457_v15  ;;  %v513_v15 = vld [vmem:[#allocation2 + $0x228] sm:$0xff] }
 0x100   : > { %v660_v28 = vld [vmem:[#allocation2 + $0x6c0] sm:$0xff]  ;;  %v6137_v32 = vcombine.high %v532_v26, %v536_v27  ;;  %2872 = vmatprep.subr.bf16.mxu0 %v6257_v25  ;;  %v6136_v38 = vcombine.low %v532_v26, %v536_v27  ;;  %v461_v26 = vld [vmem:[#allocation2 + $0x88] sm:$0xff] }
 0x101   : > { %v664_v29 = vld [vmem:[#allocation2 + $0x6e0] sm:$0xff]  ;;  %2873 = vmatpush1.bf16.msra.mxu0 %v6256_v31  ;;  %v465_v27 = vld [vmem:[#allocation2 + $0xa8] sm:$0xff] }
 0x102   : > { %v6265_v33 = vcombine.high %v660_v28, %v664_v29  ;;  %v540_v34 = vld [vmem:[#allocation2 + $0x300] sm:$0xff]  ;;  %2833 = vmatprep.subr.bf16.mxu1 %v6137_v32  ;;  %v6264_v39 = vcombine.low %v660_v28, %v664_v29  ;;  %v8046_v28 = vcombine.high %v8038_v19, %v8038_v19  ;;  %v6067_v30 = vcombine.high %v461_v26, %v465_v27 }
 0x103   : > { %v544_v35 = vld [vmem:[#allocation2 + $0x320] sm:$0xff]  ;;  %2834 = vmatpush1.bf16.msra.mxu1 %v6136_v38 }
 0x104   : > { %v668_v36 = vld [vmem:[#allocation2 + $0x700] sm:$0xff]  ;;  %v6145_v40 = vcombine.high %v540_v34, %v544_v35  ;;  %2874 = vmatprep.subr.bf16.mxu0 %v6265_v33  ;;  %v6144_v46 = vcombine.low %v540_v34, %v544_v35  ;;  %v469_v33 = vld [vmem:[#allocation2 + $0xc8] sm:$0xff] }
 0x105   : > { %v672_v37 = vld [vmem:[#allocation2 + $0x720] sm:$0xff]  ;;  %2875 = vmatpush1.bf16.msra.mxu0 %v6264_v39  ;;  %v473_v35 = vld [vmem:[#allocation2 + $0xe8] sm:$0xff] }
 0x106   : > { %v6273_v41 = vcombine.high %v668_v36, %v672_v37  ;;  %v548_v42 = vld [vmem:[#allocation2 + $0x340] sm:$0xff]  ;;  %2835 = vmatprep.subr.bf16.mxu1 %v6145_v40  ;;  %v6272_v47 = vcombine.low %v668_v36, %v672_v37  ;;  %v6066_v36 = vcombine.low %v461_v26, %v465_v27  ;;  %v6075_v38 = vcombine.high %v469_v33, %v473_v35  ;;  %v521_v26 = vld [vmem:[#allocation2 + $0x268] sm:$0xff] }
 0x107   : > { %v552_v43 = vld [vmem:[#allocation2 + $0x360] sm:$0xff]  ;;  %2836 = vmatpush1.bf16.msra.mxu1 %v6144_v46 }
 0x108   : > { %v676_v44 = vld [vmem:[#allocation2 + $0x740] sm:$0xff]  ;;  %v6153_v48 = vcombine.high %v548_v42, %v552_v43  ;;  %2876 = vmatprep.subr.bf16.mxu0 %v6273_v41  ;;  %v6152_v56 = vcombine.low %v548_v42, %v552_v43  ;;  %v477_v41 = vld [vmem:[#allocation2 + $0x108] sm:$0xff] }
 0x109   : > { %v680_v45 = vld [vmem:[#allocation2 + $0x760] sm:$0xff]  ;;  %2877 = vmatpush1.bf16.msra.mxu0 %v6272_v47  ;;  %v481_v43 = vld [vmem:[#allocation2 + $0x128] sm:$0xff] }
 0x10a   : > { %v6281_v49 = vcombine.high %v676_v44, %v680_v45  ;;  %v556_v50 = vld [vmem:[#allocation2 + $0x380] sm:$0xff]  ;;  %2837 = vmatprep.subr.bf16.mxu1 %v6153_v48  ;;  %v6280_v57 = vcombine.low %v676_v44, %v680_v45  ;;  %v6074_v44 = vcombine.low %v469_v33, %v473_v35  ;;  %v6083_v46 = vcombine.high %v477_v41, %v481_v43  ;;  %v529_v33 = vld [vmem:[#allocation2 + $0x2a8] sm:$0xff] }
 0x10b   : > { %v560_v51 = vld [vmem:[#allocation2 + $0x3a0] sm:$0xff]  ;;  %2838 = vmatpush1.bf16.msra.mxu1 %v6152_v56 }
 0x10c   : > { %v684_v52 = vld [vmem:[#allocation2 + $0x780] sm:$0xff]  ;;  %v6161_v59 = vcombine.high %v556_v50, %v560_v51  ;;  %2878 = vmatprep.subr.bf16.mxu0 %v6281_v49  ;;  %v6160_v2 = vcombine.low %v556_v50, %v560_v51  ;;  %v485_v49 = vld [vmem:[#allocation2 + $0x148] sm:$0xff] }
 0x10d   : > { %v688_v55 = vld [vmem:[#allocation2 + $0x7a0] sm:$0xff]  ;;  %2879 = vmatpush1.bf16.msra.mxu0 %v6280_v57  ;;  %v489_v51 = vld [vmem:[#allocation2 + $0x168] sm:$0xff] }
 0x10e   : > { %v6289_v60 = vcombine.high %v684_v52, %v688_v55  ;;  %v564_v62 = vld [vmem:[#allocation2 + $0x3c0] sm:$0xff]  ;;  %2839 = vmatprep.subr.bf16.mxu1 %v6161_v59  ;;  %v6288_v3 = vcombine.low %v684_v52, %v688_v55  ;;  %v6082_v52 = vcombine.low %v477_v41, %v481_v43  ;;  %v6091_v56 = vcombine.high %v485_v49, %v489_v51  ;;  %v537_v41 = vld [vmem:[#allocation2 + $0x2e8] sm:$0xff] }
 0x10f   : > { %v568_v63 = vld [vmem:[#allocation2 + $0x3e0] sm:$0xff]  ;;  %2840 = vmatpush1.bf16.msra.mxu1 %v6160_v2 }
 0x110   : > { %v692_v0 = vld [vmem:[#allocation2 + $0x7c0] sm:$0xff]  ;;  %v6169_v4 = vcombine.high %v564_v62, %v568_v63  ;;  %2880 = vmatprep.subr.bf16.mxu0 %v6289_v60  ;;  %v6168_v10 = vcombine.low %v564_v62, %v568_v63  ;;  %v493_v60 = vld [vmem:[#allocation2 + $0x188] sm:$0xff] }
 0x111   : > { %v696_v1 = vld [vmem:[#allocation2 + $0x7e0] sm:$0xff]  ;;  %2881 = vmatpush1.bf16.msra.mxu0 %v6288_v3  ;;  %v497_v63 = vld [vmem:[#allocation2 + $0x1a8] sm:$0xff] }
 0x112   : > { %v6297_v5 = vcombine.high %v692_v0, %v696_v1  ;;  %v700_v8 = vld [vmem:[#allocation2 + $0x800] sm:$0xff]  ;;  %2841 = vmatprep.subr.bf16.mxu1 %v6169_v4  ;;  %v6296_v11 = vcombine.low %v692_v0, %v696_v1  ;;  %v6090_v0 = vcombine.low %v485_v49, %v489_v51  ;;  %v6099_v2 = vcombine.high %v493_v60, %v497_v63  ;;  %v545_v49 = vld [vmem:[#allocation2 + $0x328] sm:$0xff] }
 0x113   : > { %v704_v9 = vld [vmem:[#allocation2 + $0x820] sm:$0xff]  ;;  %2842 = vmatpush1.bf16.msra.mxu1 %v6168_v10 }
 0x114   : > { %2882 = vmatprep.subr.bf16.mxu0 %v6297_v5  ;;  %v6305_v13 = vcombine.high %v700_v8, %v704_v9  ;;  %v708_v17 = vld [vmem:[#allocation2 + $0x840] sm:$0xff]  ;;  %v6304_v22 = vcombine.low %v700_v8, %v704_v9  ;;  %2934 = vmatprep.subr.bf16.mxu1 %v6051_v12  ;;  %v501_v5 = vld [vmem:[#allocation2 + $0x1c8] sm:$0xff]  ;;  %v6098_v8 = vcombine.low %v493_v60, %v497_v63 }
 0x115   : > { %v712_v18 = vld [vmem:[#allocation2 + $0x860] sm:$0xff]  ;;  %2883 = vmatpush1.bf16.msra.mxu0 %v6296_v11  ;;  %v6107_v10 = vcombine.high %v501_v5, %v505_v7  ;;  %v553_v60 = vld [vmem:[#allocation2 + $0x368] sm:$0xff] }
 0x116   : > { %v716_v24 = vld [vmem:[#allocation2 + $0x880] sm:$0xff]  ;;  %2893 = vmatprep.subr.bf16.mxu0 %v6305_v13  ;;  %v6313_v53 = vcombine.high %v708_v17, %v712_v18  ;;  %2844 = vmatmul.mubr.bf16.vlgmr.msra.gmra.mrb[0].mxu1 %v8035_v16  ;;  %v6312_v29 = vcombine.low %v708_v17, %v712_v18  ;;  %v509_v13 = vld [vmem:[#allocation2 + $0x208] sm:$0xff]  ;;  %v6106_v17 = vcombine.low %v501_v5, %v505_v7 }
 0x117   : > { %v720_v25 = vld [vmem:[#allocation2 + $0x8a0] sm:$0xff]  ;;  %2935 = vmatpush1.bf16.msra.mxu1 %v6050_v20  ;;  %2966 = vmatprep.mubr.bf16.mxu1 %v8025_v58  ;;  %v6115_v20 = vcombine.high %v509_v13, %v513_v15  ;;  %v561_v5 = vld [vmem:[#allocation2 + $0x3a8] sm:$0xff] }
 0x118   : > { %2885 = vmatmul.mubr.bf16.vlgmr.msra.gmra.mrb[0].mxu0 %v8042_v21  ;;  %2936 = vmatprep.subr.bf16.mxu1 %v6059_v23  ;;  %v724_v31 = vld [vmem:[#allocation2 + $0x8c0] sm:$0xff]  ;;  %v6321_v34 = vcombine.high %v716_v24, %v720_v25  ;;  %v6320_v37 = vcombine.low %v716_v24, %v720_v25  ;;  %v517_v24 = vld [vmem:[#allocation2 + $0x248] sm:$0xff] }
 0x119   : > { %2894 = vmatpush1.bf16.msra.mxu0 %v6304_v22  ;;  %v728_v32 = vld [vmem:[#allocation2 + $0x8e0] sm:$0xff]  ;;  %2925 = vmatprep.mubr.bf16.mxu0 %v8046_v28 }
 0x11a   : > { %2895 = vmatprep.subr.bf16.mxu0 %v6313_v53  ;;  %v732_v39 = vld [vmem:[#allocation2 + $0x900] sm:$0xff]  ;;  %v6329_v42 = vcombine.high %v724_v31, %v728_v32  ;;  %v6328_v45 = vcombine.low %v724_v31, %v728_v32  ;;  %v6114_v53 = vcombine.low %v509_v13, %v513_v15  ;;  %v525_v31 = vld [vmem:[#allocation2 + $0x288] sm:$0xff] }
 0x11b   : > { %2937 = vmatpush1.bf16.msra.mxu1 %v6058_v54  ;;  %v736_v40 = vld [vmem:[#allocation2 + $0x920] sm:$0xff]  ;;  %v6123_v54 = vcombine.high %v517_v24, %v521_v26  ;;  %v569_v13 = vld [vmem:[#allocation2 + $0x3e8] sm:$0xff] }
 0x11c   : > { %2938 = vmatprep.subr.bf16.mxu1 %v6067_v30  ;;  %v740_v47 = vld [vmem:[#allocation2 + $0x940] sm:$0xff]  ;;  %v6337_v50 = vcombine.high %v732_v39, %v736_v40  ;;  %v6336_v55 = vcombine.low %v732_v39, %v736_v40  ;;  %v533_v39 = vld [vmem:[#allocation2 + $0x2c8] sm:$0xff] }
 0x11d   : > { %2896 = vmatpush1.bf16.msra.mxu0 %v6312_v29  ;;  %v744_v48 = vld [vmem:[#allocation2 + $0x960] sm:$0xff] }
 0x11e   : > { %2897 = vmatprep.subr.bf16.mxu0 %v6321_v34  ;;  %v748_v57 = vld [vmem:[#allocation2 + $0x980] sm:$0xff]  ;;  %v6345_v62 = vcombine.high %v740_v47, %v744_v48  ;;  %v6344_v1 = vcombine.low %v740_v47, %v744_v48  ;;  %v6122_v34 = vcombine.low %v517_v24, %v521_v26  ;;  %v541_v47 = vld [vmem:[#allocation2 + $0x308] sm:$0xff]  ;;  %v450_v24 = vld [vmem:[#allocation2 + $0x30] sm:$0xff] }
 0x11f   : > { %2939 = vmatpush1.bf16.msra.mxu1 %v6066_v36  ;;  %v752_v59 = vld [vmem:[#allocation2 + $0x9a0] sm:$0xff]  ;;  %v6131_v36 = vcombine.high %v525_v31, %v529_v33 }
 0x120   : > { %2940 = vmatprep.subr.bf16.mxu1 %v6075_v38  ;;  %v756_v3 = vld [vmem:[#allocation2 + $0x9c0] sm:$0xff]  ;;  %v6353_v6 = vcombine.high %v748_v57, %v752_v59  ;;  %v6352_v9 = vcombine.low %v748_v57, %v752_v59  ;;  %v549_v57 = vld [vmem:[#allocation2 + $0x348] sm:$0xff] }
 0x121   : > { %2898 = vmatpush1.bf16.msra.mxu0 %v6320_v37  ;;  %v760_v4 = vld [vmem:[#allocation2 + $0x9e0] sm:$0xff] }
 0x122   : > { %2899 = vmatprep.subr.bf16.mxu0 %v6329_v42  ;;  %v764_v11 = vld [vmem:[#allocation2 + $0xa00] sm:$0xff]  ;;  %v6361_v14 = vcombine.high %v756_v3, %v760_v4  ;;  %v6360_v18 = vcombine.low %v756_v3, %v760_v4  ;;  %v6130_v42 = vcombine.low %v525_v31, %v529_v33  ;;  %v557_v3 = vld [vmem:[#allocation2 + $0x388] sm:$0xff]  ;;  %v458_v31 = vld [vmem:[#allocation2 + $0x70] sm:$0xff] }
 0x123   : > { %2941 = vmatpush1.bf16.msra.mxu1 %v6074_v44  ;;  %v768_v12 = vld [vmem:[#allocation2 + $0xa20] sm:$0xff]  ;;  %v6139_v44 = vcombine.high %v533_v39, %v537_v41 }
 0x124   : > { %2942 = vmatprep.subr.bf16.mxu1 %v6083_v46  ;;  %v772_v22 = vld [vmem:[#allocation2 + $0xa40] sm:$0xff]  ;;  %v6369_v25 = vcombine.high %v764_v11, %v768_v12  ;;  %v6368_v27 = vcombine.low %v764_v11, %v768_v12  ;;  %v565_v11 = vld [vmem:[#allocation2 + $0x3c8] sm:$0xff] }
 0x125   : > { %2900 = vmatpush1.bf16.msra.mxu0 %v6328_v45  ;;  %v776_v23 = vld [vmem:[#allocation2 + $0xa60] sm:$0xff] }
 0x126   : > { %2901 = vmatprep.subr.bf16.mxu0 %v6337_v50  ;;  %v780_v29 = vld [vmem:[#allocation2 + $0xa80] sm:$0xff]  ;;  %v6377_v32 = vcombine.high %v772_v22, %v776_v23  ;;  %v6376_v35 = vcombine.low %v772_v22, %v776_v23  ;;  %v6138_v50 = vcombine.low %v533_v39, %v537_v41  ;;  %v446_v22 = vld [vmem:[#allocation2 + $0x10] sm:$0xff] }
 0x127   : > { %2943 = vmatpush1.bf16.msra.mxu1 %v6082_v52  ;;  %v784_v30 = vld [vmem:[#allocation2 + $0xaa0] sm:$0xff]  ;;  %v6147_v52 = vcombine.high %v541_v47, %v545_v49 }
 0x128   : > { %2944 = vmatprep.subr.bf16.mxu1 %v6091_v56  ;;  %v788_v37 = vld [vmem:[#allocation2 + $0xac0] sm:$0xff]  ;;  %v6385_v40 = vcombine.high %v780_v29, %v784_v30  ;;  %v6384_v43 = vcombine.low %v780_v29, %v784_v30  ;;  %v454_v29 = vld [vmem:[#allocation2 + $0x50] sm:$0xff]  ;;  %v6053_v30 = vcombine.high %v446_v22, %v450_v24 }
 0x129   : > { %2902 = vmatpush1.bf16.msra.mxu0 %v6336_v55  ;;  %v792_v38 = vld [vmem:[#allocation2 + $0xae0] sm:$0xff]  ;;  %v6061_v39 = vcombine.high %v454_v29, %v458_v31 }
 0x12a   : > { %2903 = vmatprep.subr.bf16.mxu0 %v6345_v62  ;;  %v796_v45 = vld [vmem:[#allocation2 + $0xb00] sm:$0xff]  ;;  %v6393_v48 = vcombine.high %v788_v37, %v792_v38  ;;  %v6392_v51 = vcombine.low %v788_v37, %v792_v38  ;;  %v6146_v62 = vcombine.low %v541_v47, %v545_v49  ;;  %v593_v37 = vld [vmem:[#allocation2 + $0x4a8] sm:$0xff]  ;;  %v462_v38 = vld [vmem:[#allocation2 + $0x90] sm:$0xff] }
 0x12b   : > { %2945 = vmatpush1.bf16.msra.mxu1 %v6090_v0  ;;  %v800_v46 = vld [vmem:[#allocation2 + $0xb20] sm:$0xff]  ;;  %v6155_v0 = vcombine.high %v549_v57, %v553_v60  ;;  %v474_v47 = vld [vmem:[#allocation2 + $0xf0] sm:$0xff] }
 0x12c   : > { %2946 = vmatprep.subr.bf16.mxu1 %v6099_v2  ;;  %v804_v55 = vld [vmem:[#allocation2 + $0xb40] sm:$0xff]  ;;  %v6401_v59 = vcombine.high %v796_v45, %v800_v46  ;;  %v6400_v63 = vcombine.low %v796_v45, %v800_v46  ;;  %v470_v45 = vld [vmem:[#allocation2 + $0xd0] sm:$0xff] }
 0x12d   : > { %2904 = vmatpush1.bf16.msra.mxu0 %v6344_v1  ;;  %v808_v56 = vld [vmem:[#allocation2 + $0xb60] sm:$0xff] }
 0x12e   : > { %2905 = vmatprep.subr.bf16.mxu0 %v6353_v6  ;;  %v812_v1 = vld [vmem:[#allocation2 + $0xb80] sm:$0xff]  ;;  %v6409_v4 = vcombine.high %v804_v55, %v808_v56  ;;  %v6154_v6 = vcombine.low %v549_v57, %v553_v60  ;;  %v6408_v7 = vcombine.low %v804_v55, %v808_v56  ;;  %v478_v55 = vld [vmem:[#allocation2 + $0x110] sm:$0xff]  ;;  %v6077_v56 = vcombine.high %v470_v45, %v474_v47 }
 0x12f   : > { %2947 = vmatpush1.bf16.msra.mxu1 %v6098_v8  ;;  %v816_v2 = vld [vmem:[#allocation2 + $0xba0] sm:$0xff]  ;;  %v6163_v8 = vcombine.high %v557_v3, %v561_v5  ;;  %v482_v57 = vld [vmem:[#allocation2 + $0x130] sm:$0xff]  ;;  %v6076_v60 = vcombine.low %v470_v45, %v474_v47 }
 0x130   : > { %2948 = vmatprep.subr.bf16.mxu1 %v6107_v10  ;;  %v824_v10 = vld [vmem:[#allocation2 + $0xbe0] sm:$0xff]  ;;  %v6417_v12 = vcombine.high %v812_v1, %v816_v2  ;;  %v6416_v15 = vcombine.low %v812_v1, %v816_v2  ;;  %v486_v1 = vld [vmem:[#allocation2 + $0x150] sm:$0xff]  ;;  %v6085_v2 = vcombine.high %v478_v55, %v482_v57 }
 0x131   : > { %2906 = vmatpush1.bf16.msra.mxu0 %v6352_v9  ;;  %v820_v9 = vld [vmem:[#allocation2 + $0xbc0] sm:$0xff]  ;;  %v530_v45 = vld [vmem:[#allocation2 + $0x2b0] sm:$0xff] }
 0x132   : > { %2907 = vmatprep.subr.bf16.mxu0 %v6361_v14  ;;  %v6162_v14 = vcombine.low %v557_v3, %v561_v5  ;;  %v6425_v23 = vcombine.high %v820_v9, %v824_v10  ;;  %v6424_v26 = vcombine.low %v820_v9, %v824_v10  ;;  %v490_v3 = vld [vmem:[#allocation2 + $0x170] sm:$0xff]  ;;  %v6084_v5 = vcombine.low %v478_v55, %v482_v57 }
 0x133   : > { %2949 = vmatpush1.bf16.msra.mxu1 %v6106_v17  ;;  %v6171_v17 = vcombine.high %v565_v11, %v569_v13  ;;  %v494_v9 = vld [vmem:[#allocation2 + $0x190] sm:$0xff]  ;;  %v6093_v10 = vcombine.high %v486_v1, %v490_v3 }
 0x134   : > { %2950 = vmatprep.subr.bf16.mxu1 %v6115_v20  ;;  %v577_v20 = vld [vmem:[#allocation2 + $0x428] sm:$0xff]  ;;  %v538_v55 = vld [vmem:[#allocation2 + $0x2f0] sm:$0xff] }
 0x135   : > { %2908 = vmatpush1.bf16.msra.mxu0 %v6360_v18  ;;  %v573_v18 = vld [vmem:[#allocation2 + $0x408] sm:$0xff] }
 0x136   : > { %2909 = vmatprep.subr.bf16.mxu0 %v6369_v25  ;;  %v6170_v25 = vcombine.low %v565_v11, %v569_v13  ;;  %v6178_v33 = vcombine.low %v573_v18, %v577_v20  ;;  %v498_v11 = vld [vmem:[#allocation2 + $0x1b0] sm:$0xff]  ;;  %v6092_v13 = vcombine.low %v486_v1, %v490_v3 }
 0x137   : > { %2951 = vmatpush1.bf16.msra.mxu1 %v6114_v53  ;;  %v6179_v53 = vcombine.high %v573_v18, %v577_v20  ;;  %v6101_v18 = vcombine.high %v494_v9, %v498_v11  ;;  %v502_v20 = vld [vmem:[#allocation2 + $0x1d0] sm:$0xff] }
 0x138   : > { %2952 = vmatprep.subr.bf16.mxu1 %v6123_v54  ;;  %v585_v54 = vld [vmem:[#allocation2 + $0x468] sm:$0xff]  ;;  %v546_v1 = vld [vmem:[#allocation2 + $0x330] sm:$0xff] }
 0x139   : > { %2910 = vmatpush1.bf16.msra.mxu0 %v6368_v27  ;;  %v581_v27 = vld [vmem:[#allocation2 + $0x448] sm:$0xff] }
 0x13a   : > { %2911 = vmatprep.subr.bf16.mxu0 %v6377_v32  ;;  %v8054_v32 = vcombine.low %v8038_v19, %v8038_v19  ;;  %v6186_v41 = vcombine.low %v581_v27, %v585_v54  ;;  %v6060_v19 = vcombine.low %v454_v29, %v458_v31  ;;  %v514_v29 = vld [vmem:[#allocation2 + $0x230] sm:$0xff] }
 0x13b   : > { %2953 = vmatpush1.bf16.msra.mxu1 %v6122_v34  ;;  %v6052_v34 = vcombine.low %v446_v22, %v450_v24  ;;  %v506_v22 = vld [vmem:[#allocation2 + $0x1f0] sm:$0xff]  ;;  %v6100_v24 = vcombine.low %v494_v9, %v498_v11 }
 0x13c   : > { %2954 = vmatprep.subr.bf16.mxu1 %v6131_v36  ;;  %v589_v36 = vld [vmem:[#allocation2 + $0x488] sm:$0xff]  ;;  %v6108_v31 = vcombine.low %v502_v20, %v506_v22  ;;  %v554_v9 = vld [vmem:[#allocation2 + $0x370] sm:$0xff] }
 0x13d   : > { %2912 = vmatpush1.bf16.msra.mxu0 %v6376_v35  ;;  %v6187_v35 = vcombine.high %v581_v27, %v585_v54  ;;  %v510_v27 = vld [vmem:[#allocation2 + $0x210] sm:$0xff]  ;;  %v6109_v54 = vcombine.high %v502_v20, %v506_v22 }
 0x13e   : > { %2913 = vmatprep.subr.bf16.mxu0 %v6385_v40  ;;  %v466_v40 = vld [vmem:[#allocation2 + $0xb0] sm:$0xff] }
 0x13f   : > { %2955 = vmatpush1.bf16.msra.mxu1 %v6130_v42  ;;  %v6195_v42 = vcombine.high %v589_v36, %v593_v37  ;;  %v6069_v46 = vcombine.high %v462_v38, %v466_v40  ;;  %v6068_v49 = vcombine.low %v462_v38, %v466_v40  ;;  %v522_v38 = vld [vmem:[#allocation2 + $0x270] sm:$0xff]  ;;  %v6116_v40 = vcombine.low %v510_v27, %v514_v29 }
 0x140   : > { %2956 = vmatprep.subr.bf16.mxu1 %v6139_v44  ;;  %v601_v44 = vld [vmem:[#allocation2 + $0x4e8] sm:$0xff] }
 0x141   : > { %2914 = vmatpush1.bf16.msra.mxu0 %v6384_v43  ;;  %v597_v43 = vld [vmem:[#allocation2 + $0x4c8] sm:$0xff] }
 0x142   : > { %2915 = vmatprep.subr.bf16.mxu0 %v6393_v48  ;;  %v6194_v48 = vcombine.low %v589_v36, %v593_v37  ;;  %v518_v36 = vld [vmem:[#allocation2 + $0x250] sm:$0xff]  ;;  %v6117_v37 = vcombine.high %v510_v27, %v514_v29 }
 0x143   : > { %2957 = vmatpush1.bf16.msra.mxu1 %v6138_v50  ;;  %v6203_v50 = vcombine.high %v597_v43, %v601_v44  ;;  %v6124_v47 = vcombine.low %v518_v36, %v522_v38  ;;  %v570_v27 = vld [vmem:[#allocation2 + $0x3f0] sm:$0xff] }
 0x144   : > { %2958 = vmatprep.subr.bf16.mxu1 %v6147_v52  ;;  %v609_v52 = vld [vmem:[#allocation2 + $0x528] sm:$0xff] }
 0x145   : > { %2916 = vmatpush1.bf16.msra.mxu0 %v6392_v51  ;;  %v605_v51 = vld [vmem:[#allocation2 + $0x508] sm:$0xff] }
 0x146   : > { %2917 = vmatprep.subr.bf16.mxu0 %v6401_v59  ;;  %v6202_v59 = vcombine.low %v597_v43, %v601_v44  ;;  %v526_v43 = vld [vmem:[#allocation2 + $0x290] sm:$0xff]  ;;  %v6125_v44 = vcombine.high %v518_v36, %v522_v38 }
 0x147   : > { %2959 = vmatpush1.bf16.msra.mxu1 %v6146_v62  ;;  %v6211_v62 = vcombine.high %v605_v51, %v609_v52  ;;  %v6132_v57 = vcombine.low %v526_v43, %v530_v45  ;;  %v578_v36 = vld [vmem:[#allocation2 + $0x430] sm:$0xff] }
 0x148   : > { %2960 = vmatprep.subr.bf16.mxu1 %v6155_v0  ;;  %v617_v0 = vld [vmem:[#allocation2 + $0x568] sm:$0xff] }
 0x149   : > { %2918 = vmatpush1.bf16.msra.mxu0 %v6400_v63  ;;  %v613_v63 = vld [vmem:[#allocation2 + $0x548] sm:$0xff] }
 0x14a   : > { %2919 = vmatprep.subr.bf16.mxu0 %v6409_v4  ;;  %v6210_v4 = vcombine.low %v605_v51, %v609_v52  ;;  %v534_v51 = vld [vmem:[#allocation2 + $0x2d0] sm:$0xff]  ;;  %v6133_v52 = vcombine.high %v526_v43, %v530_v45 }
 0x14b   : > { %2961 = vmatpush1.bf16.msra.mxu1 %v6154_v6  ;;  %v6219_v6 = vcombine.high %v613_v63, %v617_v0  ;;  %v6140_v3 = vcombine.low %v534_v51, %v538_v55  ;;  %v586_v43 = vld [vmem:[#allocation2 + $0x470] sm:$0xff] }
 0x14c   : > { %2962 = vmatprep.subr.bf16.mxu1 %v6163_v8  ;;  %v625_v8 = vld [vmem:[#allocation2 + $0x5a8] sm:$0xff] }
 0x14d   : > { %2920 = vmatpush1.bf16.msra.mxu0 %v6408_v7  ;;  %v621_v7 = vld [vmem:[#allocation2 + $0x588] sm:$0xff] }
 0x14e   : > { %2921 = vmatprep.subr.bf16.mxu0 %v6417_v12  ;;  %v6218_v12 = vcombine.low %v613_v63, %v617_v0  ;;  %v542_v63 = vld [vmem:[#allocation2 + $0x310] sm:$0xff]  ;;  %v6141_v0 = vcombine.high %v534_v51, %v538_v55 }
 0x14f   : > { %2963 = vmatpush1.bf16.msra.mxu1 %v6162_v14  ;;  %v6227_v14 = vcombine.high %v621_v7, %v625_v8  ;;  %v6148_v11 = vcombine.low %v542_v63, %v546_v1  ;;  %v594_v51 = vld [vmem:[#allocation2 + $0x4b0] sm:$0xff] }
 0x150   : > { %2964 = vmatprep.subr.bf16.mxu1 %v6171_v17  ;;  %v633_v17 = vld [vmem:[#allocation2 + $0x5e8] sm:$0xff] }
 0x151   : > { %2922 = vmatpush1.bf16.msra.mxu0 %v6416_v15  ;;  %v629_v15 = vld [vmem:[#allocation2 + $0x5c8] sm:$0xff] }
 0x152   : > { %2923 = vmatprep.subr.bf16.mxu0 %v6425_v23  ;;  %v6226_v23 = vcombine.low %v621_v7, %v625_v8  ;;  %v550_v7 = vld [vmem:[#allocation2 + $0x350] sm:$0xff]  ;;  %v6149_v8 = vcombine.high %v542_v63, %v546_v1 }
 0x153   : > { %2965 = vmatpush1.bf16.msra.mxu1 %v6170_v25  ;;  %v6235_v25 = vcombine.high %v629_v15, %v633_v17  ;;  %v6156_v22 = vcombine.low %v550_v7, %v554_v9  ;;  %v602_v63 = vld [vmem:[#allocation2 + $0x4f0] sm:$0xff] }
 0x154   : > { %2975 = vmatprep.subr.bf16.mxu1 %v6179_v53  ;;  %v641_v53 = vld [vmem:[#allocation2 + $0x628] sm:$0xff] }
 0x155   : > { %2924 = vmatpush1.bf16.msra.mxu0 %v6424_v26  ;;  %v637_v26 = vld [vmem:[#allocation2 + $0x608] sm:$0xff] }
 0x156   : > { %3057 = vmatprep.subr.bf16.mxu0 %v6053_v30  ;;  %2967 = vmatmul.mubr.bf16.vlgmr.msra.gmra.mrb[4].mxu1 %v8035_v16  ;;  %v6234_v30 = vcombine.low %v629_v15, %v633_v17  ;;  %v558_v15 = vld [vmem:[#allocation2 + $0x390] sm:$0xff]  ;;  %v6157_v17 = vcombine.high %v550_v7, %v554_v9 }
 0x157   : > { %2976 = vmatpush1.bf16.msra.mxu1 %v6178_v33  ;;  %3007 = vmatprep.mubr.bf16.mxu1 %v8029_v61  ;;  %v6243_v33 = vcombine.high %v637_v26, %v641_v53  ;;  %v610_v7 = vld [vmem:[#allocation2 + $0x530] sm:$0xff] }
 0x158   : > { %2926 = vmatmul.mubr.bf16.vlgmr.msra.gmra.mrb[0].mxu0 %v8054_v32  ;;  %2977 = vmatprep.subr.bf16.mxu1 %v6187_v35  ;;  %v649_v35 = vld [vmem:[#allocation2 + $0x668] sm:$0xff] }
 0x159   : > { %3058 = vmatpush1.bf16.msra.mxu0 %v6052_v34  ;;  %3089 = vmatprep.mubr.bf16.mxu0 %v8025_v58  ;;  %v645_v34 = vld [vmem:[#allocation2 + $0x648] sm:$0xff] }
 0x15a   : > { %3059 = vmatprep.subr.bf16.mxu0 %v6061_v39  ;;  %v6242_v39 = vcombine.low %v637_v26, %v641_v53  ;;  %v566_v26 = vld [vmem:[#allocation2 + $0x3d0] sm:$0xff] }
 0x15b   : > { %2978 = vmatpush1.bf16.msra.mxu1 %v6186_v41  ;;  %v6251_v41 = vcombine.high %v645_v34, %v649_v35  ;;  %v6172_v38 = vcombine.low %v566_v26, %v570_v27 }
 0x15c   : > { %2979 = vmatprep.subr.bf16.mxu1 %v6195_v42  ;;  %v657_v42 = vld [vmem:[#allocation2 + $0x6a8] sm:$0xff] }
 0x15d   : > { %3060 = vmatpush1.bf16.msra.mxu0 %v6060_v19  ;;  %v653_v19 = vld [vmem:[#allocation2 + $0x688] sm:$0xff] }
 0x15e   : > { %3061 = vmatprep.subr.bf16.mxu0 %v6069_v46  ;;  %v6250_v46 = vcombine.low %v645_v34, %v649_v35  ;;  %v574_v34 = vld [vmem:[#allocation2 + $0x410] sm:$0xff]  ;;  %v6173_v35 = vcombine.high %v566_v26, %v570_v27 }
 0x15f   : > { %2980 = vmatpush1.bf16.msra.mxu1 %v6194_v48  ;;  %v6259_v48 = vcombine.high %v653_v19, %v657_v42  ;;  %v6180_v45 = vcombine.low %v574_v34, %v578_v36  ;;  %v626_v26 = vld [vmem:[#allocation2 + $0x5b0] sm:$0xff] }
 0x160   : > { %2981 = vmatprep.subr.bf16.mxu1 %v6203_v50  ;;  %v665_v50 = vld [vmem:[#allocation2 + $0x6e8] sm:$0xff] }
 0x161   : > { %3062 = vmatpush1.bf16.msra.mxu0 %v6068_v49  ;;  %v661_v49 = vld [vmem:[#allocation2 + $0x6c8] sm:$0xff] }
 0x162   : > { %3063 = vmatprep.subr.bf16.mxu0 %v6077_v56  ;;  %v6258_v56 = vcombine.low %v653_v19, %v657_v42  ;;  %v582_v19 = vld [vmem:[#allocation2 + $0x450] sm:$0xff]  ;;  %v6181_v42 = vcombine.high %v574_v34, %v578_v36 }
 0x163   : > { %2982 = vmatpush1.bf16.msra.mxu1 %v6202_v59  ;;  %v6267_v59 = vcombine.high %v661_v49, %v665_v50  ;;  %v6188_v55 = vcombine.low %v582_v19, %v586_v43  ;;  %v634_v34 = vld [vmem:[#allocation2 + $0x5f0] sm:$0xff] }
 0x164   : > { %2983 = vmatprep.subr.bf16.mxu1 %v6211_v62  ;;  %v673_v62 = vld [vmem:[#allocation2 + $0x728] sm:$0xff] }
 0x165   : > { %3064 = vmatpush1.bf16.msra.mxu0 %v6076_v60  ;;  %v669_v60 = vld [vmem:[#allocation2 + $0x708] sm:$0xff] }
 0x166   : > { %3065 = vmatprep.subr.bf16.mxu0 %v6085_v2  ;;  %v6266_v2 = vcombine.low %v661_v49, %v665_v50  ;;  %v6189_v49 = vcombine.high %v582_v19, %v586_v43  ;;  %v590_v50 = vld [vmem:[#allocation2 + $0x490] sm:$0xff] }
 0x167   : > { %2984 = vmatpush1.bf16.msra.mxu1 %v6210_v4  ;;  %v6275_v4 = vcombine.high %v669_v60, %v673_v62  ;;  %v6196_v1 = vcombine.low %v590_v50, %v594_v51  ;;  %v642_v19 = vld [vmem:[#allocation2 + $0x630] sm:$0xff] }
 0x168   : > { %2985 = vmatprep.subr.bf16.mxu1 %v6219_v6  ;;  %v681_v6 = vld [vmem:[#allocation2 + $0x768] sm:$0xff] }
 0x169   : > { %3066 = vmatpush1.bf16.msra.mxu0 %v6084_v5  ;;  %v677_v5 = vld [vmem:[#allocation2 + $0x748] sm:$0xff] }
 0x16a   : > { %3067 = vmatprep.subr.bf16.mxu0 %v6093_v10  ;;  %v6274_v10 = vcombine.low %v669_v60, %v673_v62  ;;  %v6282_v20 = vcombine.low %v677_v5, %v681_v6  ;;  %v598_v60 = vld [vmem:[#allocation2 + $0x4d0] sm:$0xff]  ;;  %v6197_v62 = vcombine.high %v590_v50, %v594_v51 }
 0x16b   : > { %2986 = vmatpush1.bf16.msra.mxu1 %v6218_v12  ;;  %v6283_v12 = vcombine.high %v677_v5, %v681_v6  ;;  %v606_v5 = vld [vmem:[#allocation2 + $0x510] sm:$0xff]  ;;  %v6205_v6 = vcombine.high %v598_v60, %v602_v63  ;;  %v6204_v9 = vcombine.low %v598_v60, %v602_v63 }
 0x16c   : > { %2987 = vmatprep.subr.bf16.mxu1 %v6227_v14  ;;  %v689_v14 = vld [vmem:[#allocation2 + $0x7a8] sm:$0xff]  ;;  %v658_v60 = vld [vmem:[#allocation2 + $0x6b0] sm:$0xff] }
 0x16d   : > { %3068 = vmatpush1.bf16.msra.mxu0 %v6092_v13  ;;  %v685_v13 = vld [vmem:[#allocation2 + $0x788] sm:$0xff] }
 0x16e   : > { %3069 = vmatprep.subr.bf16.mxu0 %v6101_v18  ;;  %v562_v18 = vld [vmem:[#allocation2 + $0x3b0] sm:$0xff] }
 0x16f   : > { %2988 = vmatpush1.bf16.msra.mxu1 %v6226_v23  ;;  %v6291_v23 = vcombine.high %v685_v13, %v689_v14  ;;  %v6165_v53 = vcombine.high %v558_v15, %v562_v18  ;;  %v6164_v29 = vcombine.low %v558_v15, %v562_v18  ;;  %v618_v15 = vld [vmem:[#allocation2 + $0x570] sm:$0xff]  ;;  %v6212_v18 = vcombine.low %v606_v5, %v610_v7 }
 0x170   : > { %2989 = vmatprep.subr.bf16.mxu1 %v6235_v25  ;;  %v697_v25 = vld [vmem:[#allocation2 + $0x7e8] sm:$0xff] }
 0x171   : > { %3070 = vmatpush1.bf16.msra.mxu0 %v6100_v24  ;;  %v693_v24 = vld [vmem:[#allocation2 + $0x7c8] sm:$0xff] }
 0x172   : > { %3071 = vmatprep.subr.bf16.mxu0 %v6109_v54  ;;  %v6290_v54 = vcombine.low %v685_v13, %v689_v14  ;;  %v614_v13 = vld [vmem:[#allocation2 + $0x550] sm:$0xff]  ;;  %v6213_v14 = vcombine.high %v606_v5, %v610_v7 }
 0x173   : > { %2990 = vmatpush1.bf16.msra.mxu1 %v6234_v30  ;;  %v6299_v30 = vcombine.high %v693_v24, %v697_v25  ;;  %v6220_v27 = vcombine.low %v614_v13, %v618_v15  ;;  %v666_v5 = vld [vmem:[#allocation2 + $0x6f0] sm:$0xff] }
 0x174   : > { %2991 = vmatprep.subr.bf16.mxu1 %v6243_v33  ;;  %v705_v33 = vld [vmem:[#allocation2 + $0x828] sm:$0xff] }
 0x175   : > { %3072 = vmatpush1.bf16.msra.mxu0 %v6108_v31  ;;  %v701_v31 = vld [vmem:[#allocation2 + $0x808] sm:$0xff] }
 0x176   : > { %3073 = vmatprep.subr.bf16.mxu0 %v6117_v37  ;;  %v6298_v37 = vcombine.low %v693_v24, %v697_v25  ;;  %v622_v24 = vld [vmem:[#allocation2 + $0x590] sm:$0xff]  ;;  %v6221_v25 = vcombine.high %v614_v13, %v618_v15 }
 0x177   : > { %2992 = vmatpush1.bf16.msra.mxu1 %v6242_v39  ;;  %v6307_v39 = vcombine.high %v701_v31, %v705_v33  ;;  %v6228_v36 = vcombine.low %v622_v24, %v626_v26  ;;  %v674_v13 = vld [vmem:[#allocation2 + $0x730] sm:$0xff] }
 0x178   : > { %2993 = vmatprep.subr.bf16.mxu1 %v6251_v41  ;;  %v713_v41 = vld [vmem:[#allocation2 + $0x868] sm:$0xff] }
 0x179   : > { %3074 = vmatpush1.bf16.msra.mxu0 %v6116_v40  ;;  %v709_v40 = vld [vmem:[#allocation2 + $0x848] sm:$0xff] }
 0x17a   : > { %3075 = vmatprep.subr.bf16.mxu0 %v6125_v44  ;;  %v6306_v44 = vcombine.low %v701_v31, %v705_v33  ;;  %v6229_v31 = vcombine.high %v622_v24, %v626_v26  ;;  %v630_v33 = vld [vmem:[#allocation2 + $0x5d0] sm:$0xff] }
 0x17b   : > { %2994 = vmatpush1.bf16.msra.mxu1 %v6250_v46  ;;  %v6315_v46 = vcombine.high %v709_v40, %v713_v41  ;;  %v6236_v43 = vcombine.low %v630_v33, %v634_v34  ;;  %v682_v24 = vld [vmem:[#allocation2 + $0x770] sm:$0xff] }
 0x17c   : > { %2995 = vmatprep.subr.bf16.mxu1 %v6259_v48  ;;  %v721_v48 = vld [vmem:[#allocation2 + $0x8a8] sm:$0xff] }
 0x17d   : > { %3076 = vmatpush1.bf16.msra.mxu0 %v6124_v47  ;;  %v717_v47 = vld [vmem:[#allocation2 + $0x888] sm:$0xff] }
 0x17e   : > { %3077 = vmatprep.subr.bf16.mxu0 %v6133_v52  ;;  %v6314_v52 = vcombine.low %v709_v40, %v713_v41  ;;  %v6237_v40 = vcombine.high %v630_v33, %v634_v34  ;;  %v638_v41 = vld [vmem:[#allocation2 + $0x610] sm:$0xff] }
 0x17f   : > { %2996 = vmatpush1.bf16.msra.mxu1 %v6258_v56  ;;  %v6323_v56 = vcombine.high %v717_v47, %v721_v48  ;;  %v6244_v51 = vcombine.low %v638_v41, %v642_v19 }
 0x180   : > { %2997 = vmatprep.subr.bf16.mxu1 %v6267_v59  ;;  %v729_v59 = vld [vmem:[#allocation2 + $0x8e8] sm:$0xff] }
 0x181   : > { %3078 = vmatpush1.bf16.msra.mxu0 %v6132_v57  ;;  %v725_v57 = vld [vmem:[#allocation2 + $0x8c8] sm:$0xff] }
 0x182   : > { %3079 = vmatprep.subr.bf16.mxu0 %v6141_v0  ;;  %v6322_v0 = vcombine.low %v717_v47, %v721_v48  ;;  %v6245_v47 = vcombine.high %v638_v41, %v642_v19  ;;  %v646_v48 = vld [vmem:[#allocation2 + $0x650] sm:$0xff] }
 0x183   : > { %2998 = vmatpush1.bf16.msra.mxu1 %v6266_v2  ;;  %v6331_v2 = vcombine.high %v725_v57, %v729_v59 }
 0x184   : > { %2999 = vmatprep.subr.bf16.mxu1 %v6275_v4  ;;  %v737_v4 = vld [vmem:[#allocation2 + $0x928] sm:$0xff] }
 0x185   : > { %3080 = vmatpush1.bf16.msra.mxu0 %v6140_v3  ;;  %v733_v3 = vld [vmem:[#allocation2 + $0x908] sm:$0xff] }
 0x186   : > { %3081 = vmatprep.subr.bf16.mxu0 %v6149_v8  ;;  %v6330_v8 = vcombine.low %v725_v57, %v729_v59  ;;  %v654_v59 = vld [vmem:[#allocation2 + $0x690] sm:$0xff] }
 0x187   : > { %3000 = vmatpush1.bf16.msra.mxu1 %v6274_v10  ;;  %v6339_v10 = vcombine.high %v733_v3, %v737_v4  ;;  %v6260_v7 = vcombine.low %v654_v59, %v658_v60 }
 0x188   : > { %3001 = vmatprep.subr.bf16.mxu1 %v6283_v12  ;;  %v745_v12 = vld [vmem:[#allocation2 + $0x968] sm:$0xff] }
 0x189   : > { %3082 = vmatpush1.bf16.msra.mxu0 %v6148_v11  ;;  %v741_v11 = vld [vmem:[#allocation2 + $0x948] sm:$0xff] }
 0x18a   : > { %3083 = vmatprep.subr.bf16.mxu0 %v6157_v17  ;;  %v6338_v17 = vcombine.low %v733_v3, %v737_v4  ;;  %v662_v3 = vld [vmem:[#allocation2 + $0x6d0] sm:$0xff]  ;;  %v6261_v4 = vcombine.high %v654_v59, %v658_v60 }
 0x18b   : > { %3002 = vmatpush1.bf16.msra.mxu1 %v6282_v20  ;;  %v6347_v20 = vcombine.high %v741_v11, %v745_v12  ;;  %v6268_v15 = vcombine.low %v662_v3, %v666_v5 }
 0x18c   : > { %3003 = vmatprep.subr.bf16.mxu1 %v6291_v23  ;;  %v753_v23 = vld [vmem:[#allocation2 + $0x9a8] sm:$0xff] }
 0x18d   : > { %3084 = vmatpush1.bf16.msra.mxu0 %v6156_v22  ;;  %v749_v22 = vld [vmem:[#allocation2 + $0x988] sm:$0xff] }
 0x18e   : > { %3085 = vmatprep.subr.bf16.mxu0 %v6165_v53  ;;  %v6346_v53 = vcombine.low %v741_v11, %v745_v12  ;;  %v670_v11 = vld [vmem:[#allocation2 + $0x710] sm:$0xff]  ;;  %v6269_v12 = vcombine.high %v662_v3, %v666_v5 }
 0x18f   : > { %3004 = vmatpush1.bf16.msra.mxu1 %v6290_v54  ;;  %v6355_v54 = vcombine.high %v749_v22, %v753_v23  ;;  %v6276_v26 = vcombine.low %v670_v11, %v674_v13  ;;  %v722_v3 = vld [vmem:[#allocation2 + $0x8b0] sm:$0xff] }
 0x190   : > { %3005 = vmatprep.subr.bf16.mxu1 %v6299_v30  ;;  %v761_v30 = vld [vmem:[#allocation2 + $0x9e8] sm:$0xff] }
 0x191   : > { %3086 = vmatpush1.bf16.msra.mxu0 %v6164_v29  ;;  %v757_v29 = vld [vmem:[#allocation2 + $0x9c8] sm:$0xff] }
 0x192   : > { %3087 = vmatprep.subr.bf16.mxu0 %v6173_v35  ;;  %v6354_v35 = vcombine.low %v749_v22, %v753_v23  ;;  %v678_v22 = vld [vmem:[#allocation2 + $0x750] sm:$0xff]  ;;  %v6277_v23 = vcombine.high %v670_v11, %v674_v13 }
 0x193   : > { %3006 = vmatpush1.bf16.msra.mxu1 %v6298_v37  ;;  %v6363_v37 = vcombine.high %v757_v29, %v761_v30  ;;  %v6284_v34 = vcombine.low %v678_v22, %v682_v24  ;;  %v730_v11 = vld [vmem:[#allocation2 + $0x8f0] sm:$0xff] }
 0x194   : > { %3016 = vmatprep.subr.bf16.mxu1 %v6307_v39  ;;  %v769_v39 = vld [vmem:[#allocation2 + $0xa28] sm:$0xff] }
 0x195   : > { %3088 = vmatpush1.bf16.msra.mxu0 %v6172_v38  ;;  %v765_v38 = vld [vmem:[#allocation2 + $0xa08] sm:$0xff] }
 0x196   : > { %3098 = vmatprep.subr.bf16.mxu0 %v6181_v42  ;;  %3008 = vmatmul.mubr.bf16.vlgmr.msra.gmra.mrb[4].mxu1 %v8042_v21  ;;  %v6362_v42 = vcombine.low %v757_v29, %v761_v30  ;;  %v6370_v50 = vcombine.low %v765_v38, %v769_v39  ;;  %v817_v29 = vld [vmem:[#allocation2 + $0xba8] sm:$0xff]  ;;  %v686_v30 = vld [vmem:[#allocation2 + $0x790] sm:$0xff] }
 0x197   : > { %3017 = vmatpush1.bf16.msra.mxu1 %v6306_v44  ;;  %3048 = vmatprep.mubr.bf16.mxu1 %v8046_v28  ;;  %v6371_v44 = vcombine.high %v765_v38, %v769_v39  ;;  %v825_v38 = vld [vmem:[#allocation2 + $0xbe8] sm:$0xff]  ;;  %v694_v39 = vld [vmem:[#allocation2 + $0x7d0] sm:$0xff] }
 0x198   : > { %3090 = vmatmul.mubr.bf16.vlgmr.msra.gmra.mrb[4].mxu0 %v8035_v16  ;;  %3018 = vmatprep.subr.bf16.mxu1 %v6315_v46  ;;  %v777_v46 = vld [vmem:[#allocation2 + $0xa68] sm:$0xff] }
 0x199   : > { %3099 = vmatpush1.bf16.msra.mxu0 %v6180_v45  ;;  %3130 = vmatprep.mubr.bf16.mxu0 %v8029_v61  ;;  %v773_v45 = vld [vmem:[#allocation2 + $0xa48] sm:$0xff] }
 0x19a   : > { %3100 = vmatprep.subr.bf16.mxu0 %v6189_v49  ;;  %v650_v49 = vld [vmem:[#allocation2 + $0x670] sm:$0xff] }
 0x19b   : > { %3019 = vmatpush1.bf16.msra.mxu1 %v6314_v52  ;;  %v6379_v52 = vcombine.high %v773_v45, %v777_v46  ;;  %v6253_v57 = vcombine.high %v646_v48, %v650_v49  ;;  %v6252_v63 = vcombine.low %v646_v48, %v650_v49 }
 0x19c   : > { %3020 = vmatprep.subr.bf16.mxu1 %v6323_v56  ;;  %v785_v56 = vld [vmem:[#allocation2 + $0xaa8] sm:$0xff] }
 0x19d   : > { %3101 = vmatpush1.bf16.msra.mxu0 %v6188_v55  ;;  %v781_v55 = vld [vmem:[#allocation2 + $0xa88] sm:$0xff] }
 0x19e   : > { %3102 = vmatprep.subr.bf16.mxu0 %v6197_v62  ;;  %v6378_v62 = vcombine.low %v773_v45, %v777_v46  ;;  %v451_v45 = vld [vmem:[#allocation2 + $0x38] sm:$0xff]  ;;  %v702_v46 = vld [vmem:[#allocation2 + $0x810] sm:$0xff] }
 0x19f   : > { %3021 = vmatpush1.bf16.msra.mxu1 %v6322_v0  ;;  %v6387_v0 = vcombine.high %v781_v55, %v785_v56 }
 0x1a0   : > { %3022 = vmatprep.subr.bf16.mxu1 %v6331_v2  ;;  %v793_v2 = vld [vmem:[#allocation2 + $0xae8] sm:$0xff] }
 0x1a1   : > { %3103 = vmatpush1.bf16.msra.mxu0 %v6196_v1  ;;  %v789_v1 = vld [vmem:[#allocation2 + $0xac8] sm:$0xff] }
 0x1a2   : > { %3104 = vmatprep.subr.bf16.mxu0 %v6205_v6  ;;  %v6386_v6 = vcombine.low %v781_v55, %v785_v56  ;;  %v459_v55 = vld [vmem:[#allocation2 + $0x78] sm:$0xff]  ;;  %v710_v56 = vld [vmem:[#allocation2 + $0x850] sm:$0xff] }
 0x1a3   : > { %3023 = vmatpush1.bf16.msra.mxu1 %v6330_v8  ;;  %v6395_v8 = vcombine.high %v789_v1, %v793_v2 }
 0x1a4   : > { %3024 = vmatprep.subr.bf16.mxu1 %v6339_v10  ;;  %v801_v10 = vld [vmem:[#allocation2 + $0xb28] sm:$0xff] }
 0x1a5   : > { %3105 = vmatpush1.bf16.msra.mxu0 %v6204_v9  ;;  %v797_v9 = vld [vmem:[#allocation2 + $0xb08] sm:$0xff] }
 0x1a6   : > { %3106 = vmatprep.subr.bf16.mxu0 %v6213_v14  ;;  %v6394_v14 = vcombine.low %v789_v1, %v793_v2  ;;  %v467_v1 = vld [vmem:[#allocation2 + $0xb8] sm:$0xff]  ;;  %v718_v2 = vld [vmem:[#allocation2 + $0x890] sm:$0xff] }
 0x1a7   : > { %3025 = vmatpush1.bf16.msra.mxu1 %v6338_v17  ;;  %v6403_v17 = vcombine.high %v797_v9, %v801_v10  ;;  %v6324_v13 = vcombine.low %v718_v2, %v722_v3 }
 0x1a8   : > { %3026 = vmatprep.subr.bf16.mxu1 %v6347_v20  ;;  %v809_v20 = vld [vmem:[#allocation2 + $0xb68] sm:$0xff] }
 0x1a9   : > { %3107 = vmatpush1.bf16.msra.mxu0 %v6212_v18  ;;  %v805_v18 = vld [vmem:[#allocation2 + $0xb48] sm:$0xff] }
 0x1aa   : > { %3108 = vmatprep.subr.bf16.mxu0 %v6221_v25  ;;  %v6402_v25 = vcombine.low %v797_v9, %v801_v10  ;;  %v6410_v33 = vcombine.low %v805_v18, %v809_v20  ;;  %v475_v9 = vld [vmem:[#allocation2 + $0xf8] sm:$0xff]  ;;  %v726_v10 = vld [vmem:[#allocation2 + $0x8d0] sm:$0xff] }
 0x1ab   : > { %3027 = vmatpush1.bf16.msra.mxu1 %v6346_v53  ;;  %v6411_v53 = vcombine.high %v805_v18, %v809_v20  ;;  %v483_v18 = vld [vmem:[#allocation2 + $0x138] sm:$0xff]  ;;  %v734_v20 = vld [vmem:[#allocation2 + $0x910] sm:$0xff] }
 0x1ac   : > { %3028 = vmatprep.subr.bf16.mxu1 %v6355_v54  ;;  %v813_v54 = vld [vmem:[#allocation2 + $0xb88] sm:$0xff] }
 0x1ad   : > { %3109 = vmatpush1.bf16.msra.mxu0 %v6220_v27  ;;  %v6285_v27 = vcombine.high %v678_v22, %v682_v24  ;;  %v6418_v41 = vcombine.low %v813_v54, %v817_v29  ;;  %v738_v22 = vld [vmem:[#allocation2 + $0x930] sm:$0xff]  ;;  %v6332_v24 = vcombine.low %v726_v10, %v730_v11 }
 0x1ae   : > { %3110 = vmatprep.subr.bf16.mxu0 %v6229_v31  ;;  %v690_v31 = vld [vmem:[#allocation2 + $0x7b0] sm:$0xff] }
 0x1af   : > { %3029 = vmatpush1.bf16.msra.mxu1 %v6354_v35  ;;  %v6419_v35 = vcombine.high %v813_v54, %v817_v29  ;;  %v6292_v19 = vcombine.low %v686_v30, %v690_v31  ;;  %v746_v54 = vld [vmem:[#allocation2 + $0x970] sm:$0xff] }
 0x1b0   : > { %3030 = vmatprep.subr.bf16.mxu1 %v6363_v37  ;;  %v821_v37 = vld [vmem:[#allocation2 + $0xbc8] sm:$0xff] }
 0x1b1   : > { %3111 = vmatpush1.bf16.msra.mxu0 %v6228_v36  ;;  %v6293_v36 = vcombine.high %v686_v30, %v690_v31  ;;  %v6426_v48 = vcombine.low %v821_v37, %v825_v38  ;;  %v6340_v30 = vcombine.low %v734_v20, %v738_v22 }
 0x1b2   : > { %3112 = vmatprep.subr.bf16.mxu0 %v6237_v40  ;;  %v698_v40 = vld [vmem:[#allocation2 + $0x7f0] sm:$0xff] }
 0x1b3   : > { %3031 = vmatpush1.bf16.msra.mxu1 %v6362_v42  ;;  %v6427_v42 = vcombine.high %v821_v37, %v825_v38  ;;  %v6300_v49 = vcombine.low %v694_v39, %v698_v40  ;;  %v754_v37 = vld [vmem:[#allocation2 + $0x9b0] sm:$0xff] }
 0x1b4   : > { %3032 = vmatprep.subr.bf16.mxu1 %v6371_v44  ;;  %v447_v44 = vld [vmem:[#allocation2 + $0x18] sm:$0xff] }
 0x1b5   : > { %3113 = vmatpush1.bf16.msra.mxu0 %v6236_v43  ;;  %v6301_v43 = vcombine.high %v694_v39, %v698_v40  ;;  %v6054_v59 = vcombine.low %v447_v44, %v451_v45 }
 0x1b6   : > { %3114 = vmatprep.subr.bf16.mxu0 %v6245_v47  ;;  %v706_v47 = vld [vmem:[#allocation2 + $0x830] sm:$0xff] }
 0x1b7   : > { %3033 = vmatpush1.bf16.msra.mxu1 %v6370_v50  ;;  %v6055_v50 = vcombine.high %v447_v44, %v451_v45  ;;  %v6308_v60 = vcombine.low %v702_v46, %v706_v47  ;;  %v758_v45 = vld [vmem:[#allocation2 + $0x9d0] sm:$0xff] }
 0x1b8   : > { %3034 = vmatprep.subr.bf16.mxu1 %v6379_v52  ;;  %v455_v52 = vld [vmem:[#allocation2 + $0x58] sm:$0xff] }
 0x1b9   : > { %3115 = vmatpush1.bf16.msra.mxu0 %v6244_v51  ;;  %v6309_v51 = vcombine.high %v702_v46, %v706_v47  ;;  %v762_v46 = vld [vmem:[#allocation2 + $0x9f0] sm:$0xff] }
 0x1ba   : > { %3116 = vmatprep.subr.bf16.mxu0 %v6253_v57  ;;  %v714_v57 = vld [vmem:[#allocation2 + $0x870] sm:$0xff] }
 0x1bb   : > { %3035 = vmatpush1.bf16.msra.mxu1 %v6378_v62  ;;  %v6063_v62 = vcombine.high %v455_v52, %v459_v55  ;;  %v6316_v5 = vcombine.low %v710_v56, %v714_v57 }
 0x1bc   : > { %3036 = vmatprep.subr.bf16.mxu1 %v6387_v0  ;;  %v463_v0 = vld [vmem:[#allocation2 + $0x98] sm:$0xff] }
 0x1bd   : > { %3117 = vmatpush1.bf16.msra.mxu0 %v6252_v63  ;;  %v6317_v63 = vcombine.high %v710_v56, %v714_v57  ;;  %v515_v56 = vld [vmem:[#allocation2 + $0x238] sm:$0xff]  ;;  %v766_v57 = vld [vmem:[#allocation2 + $0xa10] sm:$0xff] }
 0x1be   : > { %3118 = vmatprep.subr.bf16.mxu0 %v6261_v4  ;;  %v6062_v4 = vcombine.low %v455_v52, %v459_v55  ;;  %v6365_v52 = vcombine.high %v758_v45, %v762_v46  ;;  %v511_v55 = vld [vmem:[#allocation2 + $0x218] sm:$0xff] }
 0x1bf   : > { %3037 = vmatpush1.bf16.msra.mxu1 %v6386_v6  ;;  %v6071_v6 = vcombine.high %v463_v0, %v467_v1 }
 0x1c0   : > { %3038 = vmatprep.subr.bf16.mxu1 %v6395_v8  ;;  %v471_v8 = vld [vmem:[#allocation2 + $0xd8] sm:$0xff] }
 0x1c1   : > { %3119 = vmatpush1.bf16.msra.mxu0 %v6260_v7  ;;  %v6325_v7 = vcombine.high %v718_v2, %v722_v3  ;;  %v523_v2 = vld [vmem:[#allocation2 + $0x278] sm:$0xff]  ;;  %v774_v3 = vld [vmem:[#allocation2 + $0xa50] sm:$0xff] }
 0x1c2   : > { %3120 = vmatprep.subr.bf16.mxu0 %v6269_v12  ;;  %v6070_v12 = vcombine.low %v463_v0, %v467_v1  ;;  %v519_v1 = vld [vmem:[#allocation2 + $0x258] sm:$0xff] }
 0x1c3   : > { %3039 = vmatpush1.bf16.msra.mxu1 %v6394_v14  ;;  %v6079_v14 = vcombine.high %v471_v8, %v475_v9 }
 0x1c4   : > { %3040 = vmatprep.subr.bf16.mxu1 %v6403_v17  ;;  %v479_v17 = vld [vmem:[#allocation2 + $0x118] sm:$0xff] }
 0x1c5   : > { %3121 = vmatpush1.bf16.msra.mxu0 %v6268_v15  ;;  %v6333_v15 = vcombine.high %v726_v10, %v730_v11  ;;  %v6086_v29 = vcombine.low %v479_v17, %v483_v18  ;;  %v531_v10 = vld [vmem:[#allocation2 + $0x2b8] sm:$0xff]  ;;  %v782_v11 = vld [vmem:[#allocation2 + $0xa90] sm:$0xff] }
 0x1c6   : > { %3122 = vmatprep.subr.bf16.mxu0 %v6277_v23  ;;  %v6078_v23 = vcombine.low %v471_v8, %v475_v9  ;;  %v527_v9 = vld [vmem:[#allocation2 + $0x298] sm:$0xff] }
 0x1c7   : > { %3041 = vmatpush1.bf16.msra.mxu1 %v6402_v25  ;;  %v6087_v25 = vcombine.high %v479_v17, %v483_v18  ;;  %v535_v18 = vld [vmem:[#allocation2 + $0x2d8] sm:$0xff] }
 0x1c8   : > { %3042 = vmatprep.subr.bf16.mxu1 %v6411_v53  ;;  %v491_v53 = vld [vmem:[#allocation2 + $0x178] sm:$0xff] }
 0x1c9   : > { %3123 = vmatpush1.bf16.msra.mxu0 %v6276_v26  ;;  %v487_v26 = vld [vmem:[#allocation2 + $0x158] sm:$0xff] }
 0x1ca   : > { %3124 = vmatprep.subr.bf16.mxu0 %v6285_v27  ;;  %v742_v27 = vld [vmem:[#allocation2 + $0x950] sm:$0xff]  ;;  %v6095_v31 = vcombine.high %v487_v26, %v491_v53  ;;  %v6094_v38 = vcombine.low %v487_v26, %v491_v53  ;;  %v543_v53 = vld [vmem:[#allocation2 + $0x318] sm:$0xff] }
 0x1cb   : > { %3043 = vmatpush1.bf16.msra.mxu1 %v6410_v33  ;;  %v6349_v33 = vcombine.high %v742_v27, %v746_v54  ;;  %v6348_v39 = vcombine.low %v742_v27, %v746_v54  ;;  %v547_v27 = vld [vmem:[#allocation2 + $0x338] sm:$0xff]  ;;  %v798_v54 = vld [vmem:[#allocation2 + $0xb10] sm:$0xff] }
 0x1cc   : > { %3044 = vmatprep.subr.bf16.mxu1 %v6419_v35  ;;  %v499_v35 = vld [vmem:[#allocation2 + $0x1b8] sm:$0xff] }
 0x1cd   : > { %3125 = vmatpush1.bf16.msra.mxu0 %v6284_v34  ;;  %v495_v34 = vld [vmem:[#allocation2 + $0x198] sm:$0xff] }
 0x1ce   : > { %3126 = vmatprep.subr.bf16.mxu0 %v6293_v36  ;;  %v750_v36 = vld [vmem:[#allocation2 + $0x990] sm:$0xff]  ;;  %v6103_v40 = vcombine.high %v495_v34, %v499_v35 }
 0x1cf   : > { %3045 = vmatpush1.bf16.msra.mxu1 %v6418_v41 }
 0x1d0   : > { %3046 = vmatprep.subr.bf16.mxu1 %v6427_v42  ;;  %v503_v42 = vld [vmem:[#allocation2 + $0x1d8] sm:$0xff] }
 0x1d1   : > { %3127 = vmatpush1.bf16.msra.mxu0 %v6292_v19  ;;  %v6357_v19 = vcombine.high %v750_v36, %v754_v37 }
 0x1d2   : > { %3128 = vmatprep.subr.bf16.mxu0 %v6301_v43  ;;  %v507_v43 = vld [vmem:[#allocation2 + $0x1f8] sm:$0xff] }
 0x1d3   : > { %3047 = vmatpush1.bf16.msra.mxu1 %v6426_v48  ;;  %v6102_v48 = vcombine.low %v495_v34, %v499_v35  ;;  %v551_v35 = vld [vmem:[#allocation2 + $0x358] sm:$0xff] }
 0x1d4   : > { %3180 = vmatprep.subr.bf16.mxu1 %v6055_v50  ;;  %v6356_v50 = vcombine.low %v750_v36, %v754_v37  ;;  %v555_v36 = vld [vmem:[#allocation2 + $0x378] sm:$0xff]  ;;  %v806_v37 = vld [vmem:[#allocation2 + $0xb50] sm:$0xff] }
 0x1d5   : > { %3129 = vmatpush1.bf16.msra.mxu0 %v6300_v49 }
 0x1d6   : > { %3139 = vmatprep.subr.bf16.mxu0 %v6309_v51  ;;  %3049 = vmatmul.mubr.bf16.vlgmr.msra.gmra.mrb[4].mxu1 %v8054_v32  ;;  %v6111_v51 = vcombine.high %v503_v42, %v507_v43 }
 0x1d7   : > { %3181 = vmatpush1.bf16.msra.mxu1 %v6054_v59  ;;  %3212 = vmatprep.mubr.bf16.mxu1 %v8025_v58  ;;  %v6341_v58 = vcombine.high %v734_v20, %v738_v22  ;;  %v770_v59 = vld [vmem:[#allocation2 + $0xa30] sm:$0xff]  ;;  %v539_v20 = vld [vmem:[#allocation2 + $0x2f8] sm:$0xff] }
 0x1d8   : > { %3131 = vmatmul.mubr.bf16.vlgmr.msra.gmra.mrb[4].mxu0 %v8042_v21  ;;  %3182 = vmatprep.subr.bf16.mxu1 %v6063_v62  ;;  %v6364_v62 = vcombine.low %v758_v45, %v762_v46  ;;  %v6373_v0 = vcombine.high %v766_v57, %v770_v59  ;;  %v790_v22 = vld [vmem:[#allocation2 + $0xad0] sm:$0xff]  ;;  %v563_v45 = vld [vmem:[#allocation2 + $0x3b8] sm:$0xff] }
 0x1d9   : > { %3140 = vmatpush1.bf16.msra.mxu0 %v6308_v60  ;;  %3171 = vmatprep.mubr.bf16.mxu0 %v8046_v28  ;;  %v6110_v60 = vcombine.low %v503_v42, %v507_v43  ;;  %v559_v43 = vld [vmem:[#allocation2 + $0x398] sm:$0xff]  ;;  %v814_v46 = vld [vmem:[#allocation2 + $0xb90] sm:$0xff] }
 0x1da   : > { %3141 = vmatprep.subr.bf16.mxu0 %v6317_v63  ;;  %v6119_v63 = vcombine.high %v511_v55, %v515_v56 }
 0x1db   : > { %3183 = vmatpush1.bf16.msra.mxu1 %v6062_v4  ;;  %v778_v4 = vld [vmem:[#allocation2 + $0xa70] sm:$0xff] }
 0x1dc   : > { %3184 = vmatprep.subr.bf16.mxu1 %v6071_v6  ;;  %v6372_v6 = vcombine.low %v766_v57, %v770_v59  ;;  %v6381_v8 = vcombine.high %v774_v3, %v778_v4  ;;  %v826_v57 = vld [vmem:[#allocation2 + $0xbf0] sm:$0xff]  ;;  %v6166_v59 = vcombine.low %v559_v43, %v563_v45 }
 0x1dd   : > { %3142 = vmatpush1.bf16.msra.mxu0 %v6316_v5  ;;  %v6118_v5 = vcombine.low %v511_v55, %v515_v56  ;;  %v571_v55 = vld [vmem:[#allocation2 + $0x3f8] sm:$0xff]  ;;  %v822_v56 = vld [vmem:[#allocation2 + $0xbd0] sm:$0xff] }
 0x1de   : > { %3143 = vmatprep.subr.bf16.mxu0 %v6325_v7  ;;  %v6127_v7 = vcombine.high %v519_v1, %v523_v2 }
 0x1df   : > { %3185 = vmatpush1.bf16.msra.mxu1 %v6070_v12  ;;  %v786_v12 = vld [vmem:[#allocation2 + $0xab0] sm:$0xff] }
 0x1e0   : > { %3186 = vmatprep.subr.bf16.mxu1 %v6079_v14  ;;  %v6380_v14 = vcombine.low %v774_v3, %v778_v4  ;;  %v6389_v17 = vcombine.high %v782_v11, %v786_v12  ;;  %v6428_v3 = vcombine.low %v822_v56, %v826_v57 }
 0x1e1   : > { %3144 = vmatpush1.bf16.msra.mxu0 %v6324_v13  ;;  %v6126_v13 = vcombine.low %v519_v1, %v523_v2  ;;  %v579_v1 = vld [vmem:[#allocation2 + $0x438] sm:$0xff] }
 0x1e2   : > { %3145 = vmatprep.subr.bf16.mxu0 %v6333_v15  ;;  %v6135_v15 = vcombine.high %v527_v9, %v531_v10 }
 0x1e3   : > { %3187 = vmatpush1.bf16.msra.mxu1 %v6078_v23  ;;  %v794_v23 = vld [vmem:[#allocation2 + $0xaf0] sm:$0xff] }
 0x1e4   : > { %3188 = vmatprep.subr.bf16.mxu1 %v6087_v25  ;;  %v6388_v25 = vcombine.low %v782_v11, %v786_v12  ;;  %v6397_v26 = vcombine.high %v790_v22, %v794_v23  ;;  %v6974_v11 = vld [vmem:[#allocation6 + $0x24] ss:$16 sps:$4 sm:$0xff]  }
 0x1e5   : > { %3146 = vmatpush1.bf16.msra.mxu0 %v6332_v24  ;;  %v6134_v24 = vcombine.low %v527_v9, %v531_v10  ;;  %v6969_v9 = vld [vmem:[#allocation6] ss:$16 sps:$4 sm:$0xff]  }
 0x1e6   : > { %3147 = vmatprep.subr.bf16.mxu0 %v6341_v58  ;;  %v6143_v58 = vcombine.high %v535_v18, %v539_v20  ;;  %v591_v12 = vld [vmem:[#allocation2 + $0x498] sm:$0xff] }
 0x1e7   : > { %3189 = vmatpush1.bf16.msra.mxu1 %v6086_v29  ;;  %v802_v29 = vld [vmem:[#allocation2 + $0xb30] sm:$0xff] }
 0x1e8   : > { %3190 = vmatprep.subr.bf16.mxu1 %v6095_v31  ;;  %v6396_v31 = vcombine.low %v790_v22, %v794_v23  ;;  %v6405_v34 = vcombine.high %v798_v54, %v802_v29  ;;  %v599_v22 = vld [vmem:[#allocation2 + $0x4d8] sm:$0xff] }
 0x1e9   : > { %3148 = vmatpush1.bf16.msra.mxu0 %v6340_v30  ;;  %v8068_v41 = vpop.f32.mrb[0].mxu1  ;;  %v6142_v30 = vcombine.low %v535_v18, %v539_v20  ;;  %v830_v18 = vlaneseq  ;;  %v6977_v20 = vld [vmem:[#allocation6 + $0x44] ss:$16 sps:$4 sm:$0xff]  }
 0x1ea   : > { %3149 = vmatprep.subr.bf16.mxu0 %v6349_v33  ;;  %v8070_v44 = vpop.f32.mrb[1].mxu1  ;;  %v6151_v33 = vcombine.high %v543_v53, %v547_v27  ;;  %v603_v23 = vld [vmem:[#allocation2 + $0x4f8] sm:$0xff] }
 0x1eb   : > { %v2849_v47 = vpop.f32.mrb[2].mxu1  ;;  %3191 = vmatpush1.bf16.msra.mxu1 %v6094_v38  ;;  %v810_v38 = vld [vmem:[#allocation2 + $0xb70] sm:$0xff] }
 0x1ec   : > { %v2850_v49 = vpop.f32.mrb[3].mxu1  ;;  %3192 = vmatprep.subr.bf16.mxu1 %v6103_v40  ;;  %v6404_v40 = vcombine.low %v798_v54, %v802_v29  ;;  %v6413_v42 = vcombine.high %v806_v37, %v810_v38  ;;  %v818_v47 = vld [vmem:[#allocation2 + $0xbb0] sm:$0xff]  ;;  %v6206_v54 = vcombine.low %v599_v22, %v603_v23  ;;  %v6978_v29 = vld [vmem:[#allocation6 + $0x60] ss:$16 sps:$4 sm:$0xff]  }
 0x1ed   : > { %3150 = vmatpush1.bf16.msra.mxu0 %v6348_v39  ;;  %v6150_v39 = vcombine.low %v543_v53, %v547_v27  ;;  %v6412_v49 = vcombine.low %v806_v37, %v810_v38  ;;  %v607_v53 = vld [vmem:[#allocation2 + $0x518] sm:$0xff] }
 0x1ee   : > { %3151 = vmatprep.subr.bf16.mxu0 %v6357_v19  ;;  %v6159_v19 = vcombine.high %v551_v35, %v555_v36  ;;  %v611_v27 = vld [vmem:[#allocation2 + $0x538] sm:$0xff] }
 0x1ef   : > { %3193 = vmatpush1.bf16.msra.mxu1 %v6102_v48  ;;  %v6158_v48 = vcombine.low %v551_v35, %v555_v36  ;;  %v8080_v35 = vld [vmem:[#allocation4] sm:$0xff]  ;;  %v6214_v37 = vcombine.low %v607_v53, %v611_v27  ;;  %v6981_v38 = vld [vmem:[#allocation6 + $0x80] ss:$16 sps:$4 sm:$0xff]  }
 0x1f0   : > { %3194 = vmatprep.subr.bf16.mxu1 %v6111_v51  ;;  %v6421_v51 = vcombine.high %v814_v46, %v818_v47 }
 0x1f1   : > { %3152 = vmatpush1.bf16.msra.mxu0 %v6356_v50  ;;  %v6167_v50 = vcombine.high %v559_v43, %v563_v45  ;;  %v627_v43 = vld [vmem:[#allocation2 + $0x5b8] sm:$0xff] }
 0x1f2   : > { %3153 = vmatprep.subr.bf16.mxu0 %v6365_v52  ;;  %v567_v52 = vld [vmem:[#allocation2 + $0x3d8] sm:$0xff] }
 0x1f3   : > { %3195 = vmatpush1.bf16.msra.mxu1 %v6110_v60  ;;  %v6420_v60 = vcombine.low %v814_v46, %v818_v47  ;;  %v6174_v2 = vcombine.low %v567_v52, %v571_v55  ;;  %v6984_v47 = vld [vmem:[#allocation6 + $0xa0] ss:$16 sps:$4 sm:$0xff]  }
 0x1f4   : > { %3196 = vmatprep.subr.bf16.mxu1 %v6119_v63  ;;  %v6429_v63 = vcombine.high %v822_v56, %v826_v57 }
 0x1f5   : > { %3154 = vmatpush1.bf16.msra.mxu0 %v6364_v62  ;;  %v6175_v62 = vcombine.high %v567_v52, %v571_v55  ;;  %v635_v52 = vld [vmem:[#allocation2 + $0x5f8] sm:$0xff] }
 0x1f6   : > { %3155 = vmatprep.subr.bf16.mxu0 %v6373_v0  ;;  %v575_v0 = vld [vmem:[#allocation2 + $0x418] sm:$0xff] }
 0x1f7   : > { %3197 = vmatpush1.bf16.msra.mxu1 %v6118_v5  ;;  %v6183_v4 = vcombine.high %v575_v0, %v579_v1  ;;  %v6971_v5 = vld [vmem:[#allocation6 + $0x4] ss:$16 sps:$4 sm:$0xff]  }
 0x1f8   : > { %3198 = vmatprep.subr.bf16.mxu1 %v6127_v7  ;;  %v587_v7 = vld [vmem:[#allocation2 + $0x478] sm:$0xff] }
 0x1f9   : > { %3156 = vmatpush1.bf16.msra.mxu0 %v6372_v6  ;;  %v583_v6 = vld [vmem:[#allocation2 + $0x458] sm:$0xff] }
 0x1fa   : > { %3157 = vmatprep.subr.bf16.mxu0 %v6381_v8  ;;  %v6182_v8 = vcombine.low %v575_v0, %v579_v1  ;;  %v6191_v10 = vcombine.high %v583_v6, %v587_v7  ;;  %v6987_v0 = vld [vmem:[#allocation6 + $0xc0] ss:$16 sps:$4 sm:$0xff]  }
 0x1fb   : > { %3199 = vmatpush1.bf16.msra.mxu1 %v6126_v13  ;;  %v595_v13 = vld [vmem:[#allocation2 + $0x4b8] sm:$0xff] }
 0x1fc   : > { %3200 = vmatprep.subr.bf16.mxu1 %v6135_v15  ;;  %v6972_v15 = vld [vmem:[#allocation6 + $0x20] ss:$16 sps:$4 sm:$0xff]  }
 0x1fd   : > { %3158 = vmatpush1.bf16.msra.mxu0 %v6380_v14  ;;  %v6190_v14 = vcombine.low %v583_v6, %v587_v7  ;;  %v6990_v7 = vld [vmem:[#allocation6 + $0xe0] ss:$16 sps:$4 sm:$0xff]  }
 0x1fe   : > { %3159 = vmatprep.subr.bf16.mxu0 %v6389_v17  ;;  %v6199_v17 = vcombine.high %v591_v12, %v595_v13 }
 0x1ff   : > { %3201 = vmatpush1.bf16.msra.mxu1 %v6134_v24  ;;  %v6198_v24 = vcombine.low %v591_v12, %v595_v13 }
 0x200   : > { %3202 = vmatprep.subr.bf16.mxu1 %v6143_v58  ;;  %v8075_v58 = vshrl.u32 %v830_v18, 7  ;;  %v655_v18 = vld [vmem:[#allocation2 + $0x698] sm:$0xff] }
 0x201   : > { %3160 = vmatpush1.bf16.msra.mxu0 %v6388_v25  ;;  %v6207_v25 = vcombine.high %v599_v22, %v603_v23  ;;  %v6996_v23 = vld [vmem:[#allocation6 + $0x120] ss:$16 sps:$4 sm:$0xff]  }
 0x202   : > { %3161 = vmatprep.subr.bf16.mxu0 %v6397_v26  ;;  %v6980_v26 = vld [vmem:[#allocation6 + $0x64] ss:$16 sps:$4 sm:$0xff]   ;;  %v8083_v36 = vsub.s32 1, %v8075_v58 }
 0x203   : > { %3203 = vmatpush1.bf16.msra.mxu1 %v6142_v30  ;;  %v6215_v30 = vcombine.high %v607_v53, %v611_v27  ;;  %v6999_v27 = vld [vmem:[#allocation6 + $0x140] ss:$16 sps:$4 sm:$0xff]  }
 0x204   : > { %3204 = vmatprep.subr.bf16.mxu1 %v6151_v33  ;;  %v615_v33 = vld [vmem:[#allocation2 + $0x558] sm:$0xff]  ;;  %v837_v45 = vrot.slane %v8080_v35, %v8083_v36 }
 0x205   : > { %3162 = vmatpush1.bf16.msra.mxu0 %v6396_v31  ;;  %v6983_v31 = vld [vmem:[#allocation6 + $0x84] ss:$16 sps:$4 sm:$0xff]  }
 0x206   : > { %3163 = vmatprep.subr.bf16.mxu0 %v6405_v34  ;;  %v619_v34 = vld [vmem:[#allocation2 + $0x578] sm:$0xff]  ;;  %v2848_v55 = vadd.f32 %v8070_v44, %v837_v45 }
 0x207   : > { %3205 = vmatpush1.bf16.msra.mxu1 %v6150_v39  ;;  %v6223_v39 = vcombine.high %v615_v33, %v619_v34  ;;  %v6222_v46 = vcombine.low %v615_v33, %v619_v34  ;;  %v7002_v34 = vld [vmem:[#allocation6 + $0x160] ss:$16 sps:$4 sm:$0xff]   ;;  %v7010_v45 = vld [vmem:[#allocation6 + $0x1a4] ss:$16 sps:$4 sm:$0xff]  }
 0x208   : > { %3206 = vmatprep.subr.bf16.mxu1 %v6159_v19  ;;  %v6986_v19 = vld [vmem:[#allocation6 + $0xa4] ss:$16 sps:$4 sm:$0xff]  }
 0x209   : > { %3164 = vmatpush1.bf16.msra.mxu0 %v6404_v40 }
 0x20a   : > { %3165 = vmatprep.subr.bf16.mxu0 %v6413_v42  ;;  %v623_v42 = vld [vmem:[#allocation2 + $0x598] sm:$0xff] }
 0x20b   : > { %3207 = vmatpush1.bf16.msra.mxu1 %v6158_v48  ;;  %v6231_v48 = vcombine.high %v623_v42, %v627_v43 }
 0x20c   : > { %3208 = vmatprep.subr.bf16.mxu1 %v6167_v50  ;;  %v6989_v50 = vld [vmem:[#allocation6 + $0xc4] ss:$16 sps:$4 sm:$0xff]  }
 0x20d   : > { %3166 = vmatpush1.bf16.msra.mxu0 %v6412_v49 }
 0x20e   : > { %3167 = vmatprep.subr.bf16.mxu0 %v6421_v51  ;;  %v631_v51 = vld [vmem:[#allocation2 + $0x5d8] sm:$0xff] }
 0x20f   : > { %3209 = vmatpush1.bf16.msra.mxu1 %v6166_v59  ;;  %v6239_v1 = vcombine.high %v631_v51, %v635_v52  ;;  %v6238_v44 = vcombine.low %v631_v51, %v635_v52  ;;  %v7013_v51 = vld [vmem:[#allocation6 + $0x1c4] ss:$16 sps:$4 sm:$0xff]  }
 0x210   : > { %3210 = vmatprep.subr.bf16.mxu1 %v6175_v62  ;;  %v695_v52 = vld [vmem:[#allocation2 + $0x7d8] sm:$0xff] }
 0x211   : > { %3168 = vmatpush1.bf16.msra.mxu0 %v6420_v60  ;;  %v6230_v60 = vcombine.low %v623_v42, %v627_v43  ;;  %v7005_v42 = vld [vmem:[#allocation6 + $0x180] ss:$16 sps:$4 sm:$0xff]  }
 0x212   : > { %3169 = vmatprep.subr.bf16.mxu0 %v6429_v63 }
 0x213   : > { %3211 = vmatpush1.bf16.msra.mxu1 %v6174_v2 }
 0x214   : > { %3221 = vmatprep.subr.bf16.mxu1 %v6183_v4  ;;  %v639_v4 = vld [vmem:[#allocation2 + $0x618] sm:$0xff] }
 0x215   : > { %3170 = vmatpush1.bf16.msra.mxu0 %v6428_v3 }
 0x216   : > { %4885 = vmatprep.subr.bf16.mxu0 %v6971_v5  ;;  %3213 = vmatmul.mubr.bf16.vlgmr.msra.gmra.mrb[8].mxu1 %v8035_v16  ;;  %v6975_v16 = vld [vmem:[#allocation6 + $0x40] ss:$16 sps:$4 sm:$0xff]  }
 0x217   : > { %3222 = vmatpush1.bf16.msra.mxu1 %v6182_v8  ;;  %3253 = vmatprep.mubr.bf16.mxu1 %v8029_v61  ;;  %v8078_v61 = vsub.s32 0, %v8075_v58  ;;  %v643_v5 = vld [vmem:[#allocation2 + $0x638] sm:$0xff] }
 0x218   : > { %3172 = vmatmul.mubr.bf16.vlgmr.msra.gmra.mrb[4].mxu0 %v8054_v32  ;;  %3223 = vmatprep.subr.bf16.mxu1 %v6191_v10  ;;  %v6247_v8 = vcombine.high %v639_v4, %v643_v5  ;;  %v647_v10 = vld [vmem:[#allocation2 + $0x658] sm:$0xff]  ;;  %v6246_v13 = vcombine.low %v639_v4, %v643_v5 }
 0x219   : > { %4886 = vmatpush1.bf16.msra.mxu0 %v6969_v9  ;;  %v833_v40 = vrot.slane %v8080_v35, %v8078_v61  ;;  %v6995_v9 = vld [vmem:[#allocation6 + $0x104] ss:$16 sps:$4 sm:$0xff]  }
 0x21a   : > { %4887 = vmatprep.subr.bf16.mxu0 %v6974_v11  ;;  %v651_v11 = vld [vmem:[#allocation2 + $0x678] sm:$0xff] }
 0x21b   : > { %3224 = vmatpush1.bf16.msra.mxu1 %v6190_v14  ;;  %v2846_v49 = vadd.f32 %v8068_v41, %v833_v40  ;;  %v6992_v41 = vld [vmem:[#allocation6 + $0xe4] ss:$16 sps:$4 sm:$0xff]   ;;  %v6993_v14 = vld [vmem:[#allocation6 + $0x100] ss:$16 sps:$4 sm:$0xff]   ;;  %v6254_v22 = vcombine.low %v647_v10, %v651_v11 }
 0x21c   : > { %3225 = vmatprep.subr.bf16.mxu1 %v6199_v17  ;;  %v6998_v17 = vld [vmem:[#allocation6 + $0x124] ss:$16 sps:$4 sm:$0xff]  }
 0x21d   : > { %4888 = vmatpush1.bf16.msra.mxu0 %v6972_v15  ;;  %v6255_v15 = vcombine.high %v647_v10, %v651_v11  ;;  %v683_v40 = vld [vmem:[#allocation2 + $0x778] sm:$0xff] }
 0x21e   : > { %4889 = vmatprep.subr.bf16.mxu0 %v6977_v20  ;;  %v659_v20 = vld [vmem:[#allocation2 + $0x6b8] sm:$0xff] }
 0x21f   : > { %3226 = vmatpush1.bf16.msra.mxu1 %v6198_v24  ;;  %v6263_v24 = vcombine.high %v655_v18, %v659_v20  ;;  %v6262_v53 = vcombine.low %v655_v18, %v659_v20  ;;  %v711_v5 = vld [vmem:[#allocation2 + $0x858] sm:$0xff] }
 0x220   : > { %3227 = vmatprep.subr.bf16.mxu1 %v6207_v25  ;;  %v663_v25 = vld [vmem:[#allocation2 + $0x6d8] sm:$0xff] }
 0x221   : > { %4890 = vmatpush1.bf16.msra.mxu0 %v6975_v16  ;;  %v7001_v16 = vld [vmem:[#allocation6 + $0x144] ss:$16 sps:$4 sm:$0xff]  }
 0x222   : > { %4891 = vmatprep.subr.bf16.mxu0 %v6980_v26  ;;  %v667_v26 = vld [vmem:[#allocation2 + $0x6f8] sm:$0xff] }
 0x223   : > { %3228 = vmatpush1.bf16.msra.mxu1 %v6206_v54  ;;  %v6271_v54 = vcombine.high %v663_v25, %v667_v26  ;;  %v6270_v33 = vcombine.low %v663_v25, %v667_v26  ;;  %v719_v11 = vld [vmem:[#allocation2 + $0x898] sm:$0xff] }
 0x224   : > { %3229 = vmatprep.subr.bf16.mxu1 %v6215_v30  ;;  %v671_v30 = vld [vmem:[#allocation2 + $0x718] sm:$0xff] }
 0x225   : > { %4892 = vmatpush1.bf16.msra.mxu0 %v6978_v29  ;;  %v7004_v29 = vld [vmem:[#allocation6 + $0x164] ss:$16 sps:$4 sm:$0xff]  }
 0x226   : > { %4893 = vmatprep.subr.bf16.mxu0 %v6983_v31  ;;  %v675_v31 = vld [vmem:[#allocation2 + $0x738] sm:$0xff] }
 0x227   : > { %3230 = vmatpush1.bf16.msra.mxu1 %v6214_v37  ;;  %v6279_v37 = vcombine.high %v671_v30, %v675_v31  ;;  %v727_v18 = vld [vmem:[#allocation2 + $0x8d8] sm:$0xff] }
 0x228   : > { %3231 = vmatprep.subr.bf16.mxu1 %v6223_v39  ;;  %v679_v39 = vld [vmem:[#allocation2 + $0x758] sm:$0xff] }
 0x229   : > { %4894 = vmatpush1.bf16.msra.mxu0 %v6981_v38  ;;  %v7007_v38 = vld [vmem:[#allocation6 + $0x184] ss:$16 sps:$4 sm:$0xff]   ;;  %v6287_v43 = vcombine.high %v679_v39, %v683_v40 }
 0x22a   : > { %4895 = vmatprep.subr.bf16.mxu0 %v6986_v19  ;;  %v6278_v19 = vcombine.low %v671_v30, %v675_v31  ;;  %v731_v20 = vld [vmem:[#allocation2 + $0x8f8] sm:$0xff] }
 0x22b   : > { %v2927_v56 = vpop.f32.mrb[0].mxu0  ;;  %3232 = vmatpush1.bf16.msra.mxu1 %v6222_v46  ;;  %v687_v46 = vld [vmem:[#allocation2 + $0x798] sm:$0xff] }
 0x22c   : > { %v8091_v57 = vadd.f32 %v2927_v56, %v2846_v49  ;;  %v2929_v59 = vpop.f32.mrb[1].mxu0  ;;  %3233 = vmatprep.subr.bf16.mxu1 %v6231_v48  ;;  %v6286_v48 = vcombine.low %v679_v39, %v683_v40  ;;  %v7008_v49 = vld [vmem:[#allocation6 + $0x1a0] ss:$16 sps:$4 sm:$0xff]   ;;  %v7028_v26 = vld [vmem:[#allocation6 + $0x264] ss:$16 sps:$4 sm:$0xff]  }
 0x22d   : > { %v6796_v62 = vadd.f32 %v2929_v59, %v2848_v55  ;;  %v2931_v63 = vpop.f32.mrb[2].mxu0  ;;  %4896 = vmatpush1.bf16.msra.mxu0 %v6984_v47  ;;  %v691_v47 = vld [vmem:[#allocation2 + $0x7b8] sm:$0xff] }
 0x22e   : > { %v2932_v2 = vpop.f32.mrb[3].mxu0  ;;  %4897 = vmatprep.subr.bf16.mxu0 %v6989_v50  ;;  %v6295_v50 = vcombine.high %v687_v46, %v691_v47  ;;  %v699_v55 = vld [vmem:[#allocation2 + $0x7f8] sm:$0xff]  ;;  %v6294_v56 = vcombine.low %v687_v46, %v691_v47 }
 0x22f   : > { %v3304_v3 = vmul.f32 0.2, %v6796_v62  ;;  %3234 = vmatpush1.bf16.msra.mxu1 %v6230_v60  ;;  %v7011_v59 = vld [vmem:[#allocation6 + $0x1c0] ss:$16 sps:$4 sm:$0xff]   ;;  %v6303_v60 = vcombine.high %v695_v52, %v699_v55  ;;  %v7016_v63 = vld [vmem:[#allocation6 + $0x1e4] ss:$16 sps:$4 sm:$0xff]   ;;  %v6302_v2 = vcombine.low %v695_v52, %v699_v55 }
 0x230   : > { %3235 = vmatprep.subr.bf16.mxu1 %v6239_v1  ;;  %v707_v1 = vld [vmem:[#allocation2 + $0x838] sm:$0xff] }
 0x231   : > { %v3312_v6 = vmax.f32 %v6796_v62, %v3304_v3  ;;  %4898 = vmatpush1.bf16.msra.mxu0 %v6987_v0  ;;  %v3303_v62 = vmul.f32 0.2, %v8091_v57  ;;  %v703_v0 = vld [vmem:[#allocation2 + $0x818] sm:$0xff] }
 0x232   : > { %4899 = vmatprep.subr.bf16.mxu0 %v6992_v41  ;;  %v7014_v41 = vld [vmem:[#allocation6 + $0x1e0] ss:$16 sps:$4 sm:$0xff]   ;;  %v6311_v3 = vcombine.high %v703_v0, %v707_v1  ;;  %v7034_v39 = vld [vmem:[#allocation6 + $0x2a4] ss:$16 sps:$4 sm:$0xff]  }
 0x233   : > { %v8093_v12 = vpack.c.bf16 %v3312_v6, %v3312_v6  ;;  %3236 = vmatpush1.bf16.msra.mxu1 %v6238_v44  ;;  %v3311_v4 = vmax.f32 %v8091_v57, %v3303_v62  ;;  %v715_v44 = vld [vmem:[#allocation2 + $0x878] sm:$0xff] }
 0x234   : > { %3237 = vmatprep.subr.bf16.mxu1 %v6247_v8  ;;  %v7019_v6 = vld [vmem:[#allocation6 + $0x204] ss:$16 sps:$4 sm:$0xff]   ;;  %v6319_v8 = vcombine.high %v711_v5, %v715_v44  ;;  %v6318_v57 = vcombine.low %v711_v5, %v715_v44 }
 0x235   : > { %4900 = vmatpush1.bf16.msra.mxu0 %v6990_v7  ;;  %4917 = vmatprep.mubr.bf16.mxu0 %v8093_v12  ;;  %v6310_v7 = vcombine.low %v703_v0, %v707_v1  ;;  %v8098_v10 = vpack.c.bf16 %v3311_v4, %v3311_v4  ;;  %v739_v25 = vld [vmem:[#allocation2 + $0x938] sm:$0xff] }
 0x236   : > { %4901 = vmatprep.subr.bf16.mxu0 %v6995_v9  ;;  %v7017_v9 = vld [vmem:[#allocation6 + $0x200] ss:$16 sps:$4 sm:$0xff]   ;;  %v7037_v46 = vld [vmem:[#allocation6 + $0x2c4] ss:$16 sps:$4 sm:$0xff]  }
 0x237   : > { %3238 = vmatpush1.bf16.msra.mxu1 %v6246_v13  ;;  %v723_v13 = vld [vmem:[#allocation2 + $0x8b8] sm:$0xff] }
 0x238   : > { %3239 = vmatprep.subr.bf16.mxu1 %v6255_v15  ;;  %v6327_v15 = vcombine.high %v719_v11, %v723_v13  ;;  %v747_v30 = vld [vmem:[#allocation2 + $0x978] sm:$0xff] }
 0x239   : > { %4902 = vmatpush1.bf16.msra.mxu0 %v6993_v14  ;;  %v7022_v14 = vld [vmem:[#allocation6 + $0x224] ss:$16 sps:$4 sm:$0xff]  }
 0x23a   : > { %4903 = vmatprep.subr.bf16.mxu0 %v6998_v17  ;;  %v7020_v17 = vld [vmem:[#allocation6 + $0x220] ss:$16 sps:$4 sm:$0xff]   ;;  %v7040_v52 = vld [vmem:[#allocation6 + $0x2e4] ss:$16 sps:$4 sm:$0xff]  }
 0x23b   : > { %3240 = vmatpush1.bf16.msra.mxu1 %v6254_v22  ;;  %v7025_v22 = vld [vmem:[#allocation6 + $0x244] ss:$16 sps:$4 sm:$0xff]  }
 0x23c   : > { %3241 = vmatprep.subr.bf16.mxu1 %v6263_v24  ;;  %v6335_v24 = vcombine.high %v727_v18, %v731_v20  ;;  %v779_v62 = vld [vmem:[#allocation2 + $0xa78] sm:$0xff] }
 0x23d   : > { %4904 = vmatpush1.bf16.msra.mxu0 %v6996_v23  ;;  %v6326_v23 = vcombine.low %v719_v11, %v723_v13  ;;  %v7049_v4 = vld [vmem:[#allocation6 + $0x324] ss:$16 sps:$4 sm:$0xff]  }
 0x23e   : > { %4905 = vmatprep.subr.bf16.mxu0 %v7001_v16  ;;  %v735_v16 = vld [vmem:[#allocation2 + $0x918] sm:$0xff] }
 0x23f   : > { %3242 = vmatpush1.bf16.msra.mxu1 %v6262_v53  ;;  %v6334_v53 = vcombine.low %v727_v18, %v731_v20  ;;  %v6342_v31 = vcombine.low %v735_v16, %v739_v25 }
 0x240   : > { %3243 = vmatprep.subr.bf16.mxu1 %v6271_v54  ;;  %v7026_v54 = vld [vmem:[#allocation6 + $0x260] ss:$16 sps:$4 sm:$0xff]  }
 0x241   : > { %4906 = vmatpush1.bf16.msra.mxu0 %v6999_v27  ;;  %v6343_v27 = vcombine.high %v735_v16, %v739_v25 }
 0x242   : > { %4907 = vmatprep.subr.bf16.mxu0 %v7004_v29  ;;  %v743_v29 = vld [vmem:[#allocation2 + $0x958] sm:$0xff] }
 0x243   : > { %3244 = vmatpush1.bf16.msra.mxu1 %v6270_v33  ;;  %v6351_v33 = vcombine.high %v743_v29, %v747_v30  ;;  %v6350_v40 = vcombine.low %v743_v29, %v747_v30 }
 0x244   : > { %3245 = vmatprep.subr.bf16.mxu1 %v6279_v37  ;;  %v751_v37 = vld [vmem:[#allocation2 + $0x998] sm:$0xff] }
 0x245   : > { %4908 = vmatpush1.bf16.msra.mxu0 %v7002_v34  ;;  %v7029_v34 = vld [vmem:[#allocation6 + $0x280] ss:$16 sps:$4 sm:$0xff]  }
 0x246   : > { %4909 = vmatprep.subr.bf16.mxu0 %v7007_v38  ;;  %v755_v38 = vld [vmem:[#allocation2 + $0x9b8] sm:$0xff] }
 0x247   : > { %3246 = vmatpush1.bf16.msra.mxu1 %v6278_v19  ;;  %v6359_v19 = vcombine.high %v751_v37, %v755_v38  ;;  %v6358_v47 = vcombine.low %v751_v37, %v755_v38 }
 0x248   : > { %3247 = vmatprep.subr.bf16.mxu1 %v6287_v43  ;;  %v759_v43 = vld [vmem:[#allocation2 + $0x9d8] sm:$0xff] }
 0x249   : > { %4910 = vmatpush1.bf16.msra.mxu0 %v7005_v42  ;;  %v7032_v42 = vld [vmem:[#allocation6 + $0x2a0] ss:$16 sps:$4 sm:$0xff]  }
 0x24a   : > { %4911 = vmatprep.subr.bf16.mxu0 %v7010_v45  ;;  %v763_v45 = vld [vmem:[#allocation2 + $0x9f8] sm:$0xff] }
 0x24b   : > { %3248 = vmatpush1.bf16.msra.mxu1 %v6286_v48  ;;  %v6367_v48 = vcombine.high %v759_v43, %v763_v45  ;;  %v6366_v55 = vcombine.low %v759_v43, %v763_v45  ;;  %v7083_v43 = vld [vmem:[#allocation6 + $0x3e0] ss:$16 sps:$4 sm:$0xff]   ;;  %v7091_v45 = vld [vmem:[#allocation6 + $0x404] ss:$16 sps:$4 sm:$0xff]  }
 0x24c   : > { %3249 = vmatprep.subr.bf16.mxu1 %v6295_v50  ;;  %v767_v50 = vld [vmem:[#allocation2 + $0xa18] sm:$0xff] }
 0x24d   : > { %4912 = vmatpush1.bf16.msra.mxu0 %v7008_v49  ;;  %v7035_v49 = vld [vmem:[#allocation6 + $0x2c0] ss:$16 sps:$4 sm:$0xff]  }
 0x24e   : > { %4913 = vmatprep.subr.bf16.mxu0 %v7013_v51  ;;  %v771_v51 = vld [vmem:[#allocation2 + $0xa38] sm:$0xff] }
 0x24f   : > { %3250 = vmatpush1.bf16.msra.mxu1 %v6294_v56  ;;  %v6375_v56 = vcombine.high %v767_v50, %v771_v51  ;;  %v6374_v0 = vcombine.low %v767_v50, %v771_v51  ;;  %v7056_v50 = vld [vmem:[#allocation6 + $0x48] ss:$16 sps:$4 sm:$0xff]   ;;  %v7064_v51 = vld [vmem:[#allocation6 + $0x6c] ss:$16 sps:$4 sm:$0xff]  }
 0x250   : > { %3251 = vmatprep.subr.bf16.mxu1 %v6303_v60  ;;  %v775_v60 = vld [vmem:[#allocation2 + $0xa58] sm:$0xff] }
 0x251   : > { %4914 = vmatpush1.bf16.msra.mxu0 %v7011_v59  ;;  %v7038_v59 = vld [vmem:[#allocation6 + $0x2e0] ss:$16 sps:$4 sm:$0xff]   ;;  %v6383_v1 = vcombine.high %v775_v60, %v779_v62  ;;  %v6382_v5 = vcombine.low %v775_v60, %v779_v62  ;;  %v7076_v60 = vld [vmem:[#allocation6 + $0xac] ss:$16 sps:$4 sm:$0xff]  }
 0x252   : > { %4915 = vmatprep.subr.bf16.mxu0 %v7016_v63  ;;  %v7043_v63 = vld [vmem:[#allocation6 + $0x304] ss:$16 sps:$4 sm:$0xff]  }
 0x253   : > { %3252 = vmatpush1.bf16.msra.mxu1 %v6302_v2  ;;  %v7041_v2 = vld [vmem:[#allocation6 + $0x300] ss:$16 sps:$4 sm:$0xff]  }
 0x254   : > { %3262 = vmatprep.subr.bf16.mxu1 %v6311_v3  ;;  %v787_v3 = vld [vmem:[#allocation2 + $0xab8] sm:$0xff] }
 0x255   : > { %4916 = vmatpush1.bf16.msra.mxu0 %v7014_v41  ;;  %v783_v41 = vld [vmem:[#allocation2 + $0xa98] sm:$0xff] }
 0x256   : > { %4926 = vmatprep.subr.bf16.mxu0 %v7019_v6  ;;  %3254 = vmatmul.mubr.bf16.vlgmr.msra.gmra.mrb[8].mxu1 %v8042_v21  ;;  %v7023_v21 = vld [vmem:[#allocation6 + $0x240] ss:$16 sps:$4 sm:$0xff]   ;;  %v6391_v44 = vcombine.high %v783_v41, %v787_v3  ;;  %v6390_v11 = vcombine.low %v783_v41, %v787_v3 }
 0x257   : > { %3263 = vmatpush1.bf16.msra.mxu1 %v6310_v7  ;;  %3294 = vmatprep.mubr.bf16.mxu1 %v8046_v28  ;;  %v7031_v28 = vld [vmem:[#allocation6 + $0x284] ss:$16 sps:$4 sm:$0xff]   ;;  %v7047_v6 = vld [vmem:[#allocation6 + $0x320] ss:$16 sps:$4 sm:$0xff]  }
 0x258   : > { %4918 = vmatmul.mubr.bf16.vlgmr.msra.gmra.mrb[8].mxu0 %v8098_v10  ;;  %3264 = vmatprep.subr.bf16.mxu1 %v6319_v8  ;;  %v791_v7 = vld [vmem:[#allocation2 + $0xad8] sm:$0xff] }
 0x259   : > { %4927 = vmatpush1.bf16.msra.mxu0 %v7017_v9  ;;  %v795_v8 = vld [vmem:[#allocation2 + $0xaf8] sm:$0xff] }
 0x25a   : > { %4928 = vmatprep.subr.bf16.mxu0 %v7022_v14  ;;  %v7055_v9 = vld [vmem:[#allocation6 + $0x344] ss:$16 sps:$4 sm:$0xff]   ;;  %v6399_v13 = vcombine.high %v791_v7, %v795_v8  ;;  %v7053_v14 = vld [vmem:[#allocation6 + $0x340] ss:$16 sps:$4 sm:$0xff]   ;;  %v6398_v18 = vcombine.low %v791_v7, %v795_v8  ;;  %v7088_v7 = vld [vmem:[#allocation6 + $0xec] ss:$16 sps:$4 sm:$0xff]  }
 0x25b   : > { %3265 = vmatpush1.bf16.msra.mxu1 %v6318_v57  ;;  %v799_v57 = vld [vmem:[#allocation2 + $0xb18] sm:$0xff] }
 0x25c   : > { %3266 = vmatprep.subr.bf16.mxu1 %v6327_v15  ;;  %v803_v15 = vld [vmem:[#allocation2 + $0xb38] sm:$0xff] }
 0x25d   : > { %4929 = vmatpush1.bf16.msra.mxu0 %v7020_v17  ;;  %v7061_v17 = vld [vmem:[#allocation6 + $0x364] ss:$16 sps:$4 sm:$0xff]   ;;  %v6407_v20 = vcombine.high %v799_v57, %v803_v15  ;;  %v6406_v16 = vcombine.low %v799_v57, %v803_v15  ;;  %v7089_v15 = vld [vmem:[#allocation6 + $0x400] ss:$16 sps:$4 sm:$0xff]  }
 0x25e   : > { %4930 = vmatprep.subr.bf16.mxu0 %v7025_v22  ;;  %v7059_v22 = vld [vmem:[#allocation6 + $0x360] ss:$16 sps:$4 sm:$0xff]  }
 0x25f   : > { %3267 = vmatpush1.bf16.msra.mxu1 %v6326_v23  ;;  %v807_v23 = vld [vmem:[#allocation2 + $0xb58] sm:$0xff] }
 0x260   : > { %3268 = vmatprep.subr.bf16.mxu1 %v6335_v24  ;;  %v811_v24 = vld [vmem:[#allocation2 + $0xb78] sm:$0xff] }
 0x261   : > { %4931 = vmatpush1.bf16.msra.mxu0 %v7023_v21  ;;  %v7067_v21 = vld [vmem:[#allocation6 + $0x384] ss:$16 sps:$4 sm:$0xff]   ;;  %v6415_v25 = vcombine.high %v807_v23, %v811_v24  ;;  %v6414_v29 = vcombine.low %v807_v23, %v811_v24  ;;  %v7095_v23 = vld [vmem:[#allocation6 + $0x420] ss:$16 sps:$4 sm:$0xff]  }
 0x262   : > { %4932 = vmatprep.subr.bf16.mxu0 %v7028_v26  ;;  %v7065_v26 = vld [vmem:[#allocation6 + $0x380] ss:$16 sps:$4 sm:$0xff]   ;;  %v7103_v24 = vld [vmem:[#allocation6 + $0x444] ss:$16 sps:$4 sm:$0xff]  }
 0x263   : > { %3269 = vmatpush1.bf16.msra.mxu1 %v6334_v53  ;;  %v815_v53 = vld [vmem:[#allocation2 + $0xb98] sm:$0xff] }
 0x264   : > { %3270 = vmatprep.subr.bf16.mxu1 %v6343_v27  ;;  %v819_v27 = vld [vmem:[#allocation2 + $0xbb8] sm:$0xff] }
 0x265   : > { %4933 = vmatpush1.bf16.msra.mxu0 %v7026_v54  ;;  %v7073_v54 = vld [vmem:[#allocation6 + $0x3a4] ss:$16 sps:$4 sm:$0xff]   ;;  %v6423_v30 = vcombine.high %v815_v53, %v819_v27  ;;  %v6422_v37 = vcombine.low %v815_v53, %v819_v27  ;;  %v7104_v53 = vld [vmem:[#allocation6 + $0x148] ss:$16 sps:$4 sm:$0xff]   ;;  %v7112_v27 = vld [vmem:[#allocation6 + $0x16c] ss:$16 sps:$4 sm:$0xff]  }
 0x266   : > { %4934 = vmatprep.subr.bf16.mxu0 %v7031_v28  ;;  %v7071_v28 = vld [vmem:[#allocation6 + $0x3a0] ss:$16 sps:$4 sm:$0xff]  }
 0x267   : > { %3271 = vmatpush1.bf16.msra.mxu1 %v6342_v31  ;;  %v823_v31 = vld [vmem:[#allocation2 + $0xbd8] sm:$0xff] }
 0x268   : > { %3272 = vmatprep.subr.bf16.mxu1 %v6351_v33  ;;  %v827_v33 = vld [vmem:[#allocation2 + $0xbf8] sm:$0xff] }
 0x269   : > { %4935 = vmatpush1.bf16.msra.mxu0 %v7029_v34  ;;  %v7079_v34 = vld [vmem:[#allocation6 + $0x3c4] ss:$16 sps:$4 sm:$0xff]   ;;  %v6431_v38 = vcombine.high %v823_v31, %v827_v33 }
 0x26a   : > { %4936 = vmatprep.subr.bf16.mxu0 %v7034_v39  ;;  %v7077_v39 = vld [vmem:[#allocation6 + $0x3c0] ss:$16 sps:$4 sm:$0xff]  }
 0x26b   : > { %3273 = vmatpush1.bf16.msra.mxu1 %v6350_v40  ;;  %v7085_v40 = vld [vmem:[#allocation6 + $0x3e4] ss:$16 sps:$4 sm:$0xff]  }
 0x26c   : > { %3274 = vmatprep.subr.bf16.mxu1 %v6359_v19  ;;  %v6430_v19 = vcombine.low %v823_v31, %v827_v33  ;;  %v7113_v31 = vld [vmem:[#allocation6 + $0x480] ss:$16 sps:$4 sm:$0xff]   ;;  %v7121_v33 = vld [vmem:[#allocation6 + $0x4a4] ss:$16 sps:$4 sm:$0xff]  }
 0x26d   : > { %4937 = vmatpush1.bf16.msra.mxu0 %v7032_v42  ;;  %v7046_v42 = vld [vmem:[#allocation6 + $0xc] ss:$16 sps:$4 sm:$0xff]  }
 0x26e   : > { %4938 = vmatprep.subr.bf16.mxu0 %v7037_v46  ;;  %v7044_v46 = vld [vmem:[#allocation6 + $0x8] ss:$16 sps:$4 sm:$0xff]  }
 0x26f   : > { %3275 = vmatpush1.bf16.msra.mxu1 %v6358_v47  ;;  %v7052_v47 = vld [vmem:[#allocation6 + $0x2c] ss:$16 sps:$4 sm:$0xff]  }
 0x270   : > { %3276 = vmatprep.subr.bf16.mxu1 %v6367_v48  ;;  %v7050_v48 = vld [vmem:[#allocation6 + $0x28] ss:$16 sps:$4 sm:$0xff]  }
 0x271   : > { %4939 = vmatpush1.bf16.msra.mxu0 %v7035_v49  ;;  %v7058_v49 = vld [vmem:[#allocation6 + $0x4c] ss:$16 sps:$4 sm:$0xff]  }
 0x272   : > { %4940 = vmatprep.subr.bf16.mxu0 %v7040_v52  ;;  %v7062_v52 = vld [vmem:[#allocation6 + $0x68] ss:$16 sps:$4 sm:$0xff]  }
 0x273   : > { %3277 = vmatpush1.bf16.msra.mxu1 %v6366_v55  ;;  %v7070_v55 = vld [vmem:[#allocation6 + $0x8c] ss:$16 sps:$4 sm:$0xff]  }
 0x274   : > { %3278 = vmatprep.subr.bf16.mxu1 %v6375_v56  ;;  %v840_v56 = vsub.s32 2, %v8075_v58 }
 0x275   : > { %4941 = vmatpush1.bf16.msra.mxu0 %v7038_v59  ;;  %v7068_v59 = vld [vmem:[#allocation6 + $0x88] ss:$16 sps:$4 sm:$0xff]  }
 0x276   : > { %4942 = vmatprep.subr.bf16.mxu0 %v7043_v63  ;;  %v7074_v63 = vld [vmem:[#allocation6 + $0xa8] ss:$16 sps:$4 sm:$0xff]  }
 0x277   : > { %3279 = vmatpush1.bf16.msra.mxu1 %v6374_v0  ;;  %v7082_v0 = vld [vmem:[#allocation6 + $0xcc] ss:$16 sps:$4 sm:$0xff]  }
 0x278   : > { %3280 = vmatprep.subr.bf16.mxu1 %v6383_v1 }
 0x279   : > { %4943 = vmatpush1.bf16.msra.mxu0 %v7041_v2 }
 0x27a   : > { %4944 = vmatprep.subr.bf16.mxu0 %v7049_v4 }
 0x27b   : > { %3281 = vmatpush1.bf16.msra.mxu1 %v6382_v5  ;;  %v7080_v5 = vld [vmem:[#allocation6 + $0xc8] ss:$16 sps:$4 sm:$0xff]  }
 0x27c   : > { %3282 = vmatprep.subr.bf16.mxu1 %v6391_v44 }
 0x27d   : > { %4945 = vmatpush1.bf16.msra.mxu0 %v7047_v6 }
 0x27e   : > { %4946 = vmatprep.subr.bf16.mxu0 %v7055_v9 }
 0x27f   : > { %3283 = vmatpush1.bf16.msra.mxu1 %v6390_v11 }
 0x280   : > { %3284 = vmatprep.subr.bf16.mxu1 %v6399_v13  ;;  %v7086_v13 = vld [vmem:[#allocation6 + $0xe8] ss:$16 sps:$4 sm:$0xff]  }
 0x281   : > { %4947 = vmatpush1.bf16.msra.mxu0 %v7053_v14  ;;  %v7094_v14 = vld [vmem:[#allocation6 + $0x10c] ss:$16 sps:$4 sm:$0xff]  }
 0x282   : > { %4948 = vmatprep.subr.bf16.mxu0 %v7061_v17 }
 0x283   : > { %3285 = vmatpush1.bf16.msra.mxu1 %v6398_v18  ;;  %v7097_v18 = vld [vmem:[#allocation6 + $0x424] ss:$16 sps:$4 sm:$0xff]  }
 0x284   : > { %3286 = vmatprep.subr.bf16.mxu1 %v6407_v20  ;;  %v7092_v20 = vld [vmem:[#allocation6 + $0x108] ss:$16 sps:$4 sm:$0xff]  }
 0x285   : > { %4949 = vmatpush1.bf16.msra.mxu0 %v7059_v22  ;;  %v7100_v22 = vld [vmem:[#allocation6 + $0x12c] ss:$16 sps:$4 sm:$0xff]  }
 0x286   : > { %4950 = vmatprep.subr.bf16.mxu0 %v7067_v21  ;;  %v7098_v21 = vld [vmem:[#allocation6 + $0x128] ss:$16 sps:$4 sm:$0xff]  }
 0x287   : > { %3287 = vmatpush1.bf16.msra.mxu1 %v6406_v16  ;;  %v7106_v16 = vld [vmem:[#allocation6 + $0x14c] ss:$16 sps:$4 sm:$0xff]  }
 0x288   : > { %3288 = vmatprep.subr.bf16.mxu1 %v6415_v25  ;;  %v7101_v25 = vld [vmem:[#allocation6 + $0x440] ss:$16 sps:$4 sm:$0xff]  }
 0x289   : > { %4951 = vmatpush1.bf16.msra.mxu0 %v7065_v26  ;;  %v7109_v26 = vld [vmem:[#allocation6 + $0x464] ss:$16 sps:$4 sm:$0xff]  }
 0x28a   : > { %4952 = vmatprep.subr.bf16.mxu0 %v7073_v54  ;;  %v7107_v54 = vld [vmem:[#allocation6 + $0x460] ss:$16 sps:$4 sm:$0xff]  }
 0x28b   : > { %3289 = vmatpush1.bf16.msra.mxu1 %v6414_v29  ;;  %v7115_v29 = vld [vmem:[#allocation6 + $0x484] ss:$16 sps:$4 sm:$0xff]  }
 0x28c   : > { %3290 = vmatprep.subr.bf16.mxu1 %v6423_v30  ;;  %v7110_v30 = vld [vmem:[#allocation6 + $0x168] ss:$16 sps:$4 sm:$0xff]  }
 0x28d   : > { %4953 = vmatpush1.bf16.msra.mxu0 %v7071_v28  ;;  %v7118_v28 = vld [vmem:[#allocation6 + $0x18c] ss:$16 sps:$4 sm:$0xff]  }
 0x28e   : > { %4954 = vmatprep.subr.bf16.mxu0 %v7079_v34  ;;  %v7116_v34 = vld [vmem:[#allocation6 + $0x188] ss:$16 sps:$4 sm:$0xff]  }
 0x28f   : > { %3291 = vmatpush1.bf16.msra.mxu1 %v6422_v37  ;;  %v7124_v37 = vld [vmem:[#allocation6 + $0x1ac] ss:$16 sps:$4 sm:$0xff]  }
 0x290   : > { %3292 = vmatprep.subr.bf16.mxu1 %v6431_v38  ;;  %v7119_v38 = vld [vmem:[#allocation6 + $0x4a0] ss:$16 sps:$4 sm:$0xff]  }
 0x291   : > { %4955 = vmatpush1.bf16.msra.mxu0 %v7077_v39  ;;  %v7127_v39 = vld [vmem:[#allocation6 + $0x4c4] ss:$16 sps:$4 sm:$0xff]  }
 0x292   : > { %4956 = vmatprep.subr.bf16.mxu0 %v7085_v40  ;;  %v7122_v40 = vld [vmem:[#allocation6 + $0x1a8] ss:$16 sps:$4 sm:$0xff]  }
 0x293   : > { %3293 = vmatpush1.bf16.msra.mxu1 %v6430_v19  ;;  %v7130_v19 = vld [vmem:[#allocation6 + $0x1cc] ss:$16 sps:$4 sm:$0xff]  }
 0x294   : > { %5049 = vmatprep.subr.bf16.mxu1 %v7046_v42  ;;  %v7125_v42 = vld [vmem:[#allocation6 + $0x4c0] ss:$16 sps:$4 sm:$0xff]  }
 0x295   : > { %4957 = vmatpush1.bf16.msra.mxu0 %v7083_v43  ;;  %v7133_v43 = vld [vmem:[#allocation6 + $0x4e4] ss:$16 sps:$4 sm:$0xff]  }
 0x296   : > { %4967 = vmatprep.subr.bf16.mxu0 %v7091_v45  ;;  %3295 = vmatmul.mubr.bf16.vlgmr.msra.gmra.mrb[8].mxu1 %v8054_v32  ;;  %v844_v32 = vsub.s32 3, %v8075_v58  ;;  %v7128_v45 = vld [vmem:[#allocation6 + $0x1c8] ss:$16 sps:$4 sm:$0xff]  }
 0x297   : > { %5050 = vmatpush1.bf16.msra.mxu1 %v7044_v46  ;;  %5081 = vmatprep.mubr.bf16.mxu1 %v8093_v12  ;;  %v841_v12 = vrot.slane %v8080_v35, %v840_v56  ;;  %v7136_v46 = vld [vmem:[#allocation6 + $0x1ec] ss:$16 sps:$4 sm:$0xff]  }
 0x298   : > { %5051 = vmatprep.subr.bf16.mxu1 %v7052_v47  ;;  %v845_v62 = vrot.slane %v8080_v35, %v844_v32  ;;  %v7131_v47 = vld [vmem:[#allocation6 + $0x4e0] ss:$16 sps:$4 sm:$0xff]  }
 0x29b   : > { %5052 = vmatpush1.bf16.msra.mxu1 %v7050_v48  ;;  %v7139_v48 = vld [vmem:[#allocation6 + $0x504] ss:$16 sps:$4 sm:$0xff]  }
 0x29c   : > { %5053 = vmatprep.subr.bf16.mxu1 %v7058_v49  ;;  %v7134_v49 = vld [vmem:[#allocation6 + $0x1e8] ss:$16 sps:$4 sm:$0xff]  }
 0x29f   : > { %5054 = vmatpush1.bf16.msra.mxu1 %v7056_v50  ;;  %v7142_v50 = vld [vmem:[#allocation6 + $0x20c] ss:$16 sps:$4 sm:$0xff]  }
 0x2a0   : > { %5055 = vmatprep.subr.bf16.mxu1 %v7064_v51  ;;  %v7137_v51 = vld [vmem:[#allocation6 + $0x500] ss:$16 sps:$4 sm:$0xff]  }
 0x2a3   : > { %5056 = vmatpush1.bf16.msra.mxu1 %v7062_v52  ;;  %v7145_v52 = vld [vmem:[#allocation6 + $0x524] ss:$16 sps:$4 sm:$0xff]  }
 0x2a4   : > { %5057 = vmatprep.subr.bf16.mxu1 %v7070_v55  ;;  %v7140_v55 = vld [vmem:[#allocation6 + $0x208] ss:$16 sps:$4 sm:$0xff]  }
 0x2a7   : > { %5058 = vmatpush1.bf16.msra.mxu1 %v7068_v59  ;;  %v7148_v59 = vld [vmem:[#allocation6 + $0x22c] ss:$16 sps:$4 sm:$0xff]  }
 0x2a8   : > { %5059 = vmatprep.subr.bf16.mxu1 %v7076_v60  ;;  %v7143_v60 = vld [vmem:[#allocation6 + $0x520] ss:$16 sps:$4 sm:$0xff]  }
 0x2a9   : > { %v3050_v1 = vpop.f32.mrb[4].mxu1 }
 0x2aa   : > { %v6797_v2 = vadd.f32 %v3050_v1, %v841_v12  ;;  %v3052_v41 = vpop.f32.mrb[5].mxu1  ;;  %v7151_v12 = vld [vmem:[#allocation6 + $0x544] ss:$16 sps:$4 sm:$0xff]  }
 0x2ab   : > { %v6798_v3 = vadd.f32 %v3052_v41, %v845_v62  ;;  %v3054_v4 = vpop.f32.mrb[6].mxu1  ;;  %5060 = vmatpush1.bf16.msra.mxu1 %v7074_v63  ;;  %v7146_v62 = vld [vmem:[#allocation6 + $0x228] ss:$16 sps:$4 sm:$0xff]   ;;  %v7154_v63 = vld [vmem:[#allocation6 + $0x24c] ss:$16 sps:$4 sm:$0xff]  }
 0x2ac   : > { %v3305_v44 = vmul.f32 0.2, %v6797_v2  ;;  %v3055_v6 = vpop.f32.mrb[7].mxu1  ;;  %5061 = vmatprep.subr.bf16.mxu1 %v7082_v0  ;;  %v7149_v0 = vld [vmem:[#allocation6 + $0x540] ss:$16 sps:$4 sm:$0xff]  }
 0x2ad   : > { %v3306_v8 = vmul.f32 0.2, %v6798_v3  ;;  %v7157_v1 = vld [vmem:[#allocation6 + $0x564] ss:$16 sps:$4 sm:$0xff]   ;;  %v7160_v41 = vld [vmem:[#allocation6 + $0x26c] ss:$16 sps:$4 sm:$0xff]  }
 0x2ae   : > { %v3313_v9 = vmax.f32 %v6797_v2, %v3305_v44  ;;  %v7152_v2 = vld [vmem:[#allocation6 + $0x248] ss:$16 sps:$4 sm:$0xff]   ;;  %v7161_v44 = vld [vmem:[#allocation6 + $0x580] ss:$16 sps:$4 sm:$0xff]   ;;  %v7169_v6 = vld [vmem:[#allocation6 + $0x5a4] ss:$16 sps:$4 sm:$0xff]  }
 0x2af   : > { %v3314_v11 = vmax.f32 %v6798_v3, %v3306_v8  ;;  %5062 = vmatpush1.bf16.msra.mxu1 %v7080_v5  ;;  %v7155_v3 = vld [vmem:[#allocation6 + $0x560] ss:$16 sps:$4 sm:$0xff]   ;;  %v7158_v4 = vld [vmem:[#allocation6 + $0x268] ss:$16 sps:$4 sm:$0xff]   ;;  %v7166_v5 = vld [vmem:[#allocation6 + $0x28c] ss:$16 sps:$4 sm:$0xff]  }
 0x2b0   : > { %5063 = vmatprep.subr.bf16.mxu1 %v7088_v7  ;;  %v8115_v17 = vpack.c.bf16 %v3313_v9, %v3313_v9  ;;  %v7164_v7 = vld [vmem:[#allocation6 + $0x288] ss:$16 sps:$4 sm:$0xff]   ;;  %v848_v8 = vsub.s32 4, %v8075_v58  ;;  %v852_v9 = vsub.s32 5, %v8075_v58 }
 0x2b1   : > { %v8113_v57 = vpack.c.bf16 %v3314_v11, %v3314_v11  ;;  %v7172_v11 = vld [vmem:[#allocation6 + $0x2ac] ss:$16 sps:$4 sm:$0xff]  }
 0x2b3   : > { %4958 = vmatprep.mubr.bf16.mxu0 %v8113_v57  ;;  %5064 = vmatpush1.bf16.msra.mxu1 %v7086_v13  ;;  %v7167_v13 = vld [vmem:[#allocation6 + $0x5a0] ss:$16 sps:$4 sm:$0xff]  }
 0x2b4   : > { %4959 = vmatmul.mubr.bf16.vlgmr.msra.gmra.mrb[8].mxu0 %v8115_v17  ;;  %5065 = vmatprep.subr.bf16.mxu1 %v7094_v14  ;;  %v7175_v14 = vld [vmem:[#allocation6 + $0x5c4] ss:$16 sps:$4 sm:$0xff]  }
 0x2b5   : > { %4968 = vmatpush1.bf16.msra.mxu0 %v7089_v15  ;;  %v7170_v15 = vld [vmem:[#allocation6 + $0x2a8] ss:$16 sps:$4 sm:$0xff]  }
 0x2b6   : > { %4969 = vmatprep.subr.bf16.mxu0 %v7097_v18  ;;  %v853_v18 = vrot.slane %v8080_v35, %v852_v9  ;;  %v7283_v9 = vld [vmem:[#allocation6 + $0x704] ss:$16 sps:$4 sm:$0xff]  }
 0x2b7   : > { %5066 = vmatpush1.bf16.msra.mxu1 %v7092_v20  ;;  %v7178_v20 = vld [vmem:[#allocation6 + $0x2cc] ss:$16 sps:$4 sm:$0xff]  }
 0x2b8   : > { %5067 = vmatprep.subr.bf16.mxu1 %v7100_v22  ;;  %v7173_v22 = vld [vmem:[#allocation6 + $0x5c0] ss:$16 sps:$4 sm:$0xff]  }
 0x2b9   : > { %4970 = vmatpush1.bf16.msra.mxu0 %v7095_v23 }
 0x2ba   : > { %4971 = vmatprep.subr.bf16.mxu0 %v7103_v24  ;;  %v7181_v24 = vld [vmem:[#allocation6 + $0x5e4] ss:$16 sps:$4 sm:$0xff]  }
 0x2bb   : > { %5068 = vmatpush1.bf16.msra.mxu1 %v7098_v21 }
 0x2bc   : > { %5069 = vmatprep.subr.bf16.mxu1 %v7106_v16 }
 0x2bd   : > { %4972 = vmatpush1.bf16.msra.mxu0 %v7101_v25  ;;  %v7176_v25 = vld [vmem:[#allocation6 + $0x2c8] ss:$16 sps:$4 sm:$0xff]  }
 0x2be   : > { %4973 = vmatprep.subr.bf16.mxu0 %v7109_v26 }
 0x2bf   : > { %5070 = vmatpush1.bf16.msra.mxu1 %v7104_v53 }
 0x2c0   : > { %5071 = vmatprep.subr.bf16.mxu1 %v7112_v27  ;;  %v7184_v27 = vld [vmem:[#allocation6 + $0x2ec] ss:$16 sps:$4 sm:$0xff]  }
 0x2c1   : > { %4974 = vmatpush1.bf16.msra.mxu0 %v7107_v54 }
 0x2c2   : > { %4975 = vmatprep.subr.bf16.mxu0 %v7115_v29 }
 0x2c3   : > { %5072 = vmatpush1.bf16.msra.mxu1 %v7110_v30  ;;  %v7179_v30 = vld [vmem:[#allocation6 + $0x5e0] ss:$16 sps:$4 sm:$0xff]  }
 0x2c4   : > { %5073 = vmatprep.subr.bf16.mxu1 %v7118_v28  ;;  %v7235_v28 = vld [vmem:[#allocation6 + $0x604] ss:$16 sps:$4 sm:$0xff]  }
 0x2c5   : > { %4976 = vmatpush1.bf16.msra.mxu0 %v7113_v31 }
 0x2c6   : > { %4977 = vmatprep.subr.bf16.mxu0 %v7121_v33  ;;  %v7182_v33 = vld [vmem:[#allocation6 + $0x2e8] ss:$16 sps:$4 sm:$0xff]  }
 0x2c7   : > { %5074 = vmatpush1.bf16.msra.mxu1 %v7116_v34 }
 0x2c8   : > { %5075 = vmatprep.subr.bf16.mxu1 %v7124_v37  ;;  %v7187_v37 = vld [vmem:[#allocation6 + $0x30c] ss:$16 sps:$4 sm:$0xff]  }
 0x2c9   : > { %4978 = vmatpush1.bf16.msra.mxu0 %v7119_v38 }
 0x2ca   : > { %4979 = vmatprep.subr.bf16.mxu0 %v7127_v39  ;;  %v7233_v39 = vld [vmem:[#allocation6 + $0x600] ss:$16 sps:$4 sm:$0xff]  }
 0x2cb   : > { %5076 = vmatpush1.bf16.msra.mxu1 %v7122_v40 }
 0x2cc   : > { %5077 = vmatprep.subr.bf16.mxu1 %v7130_v19  ;;  %v7185_v19 = vld [vmem:[#allocation6 + $0x308] ss:$16 sps:$4 sm:$0xff]  }
 0x2cd   : > { %4980 = vmatpush1.bf16.msra.mxu0 %v7125_v42  ;;  %v7241_v42 = vld [vmem:[#allocation6 + $0x624] ss:$16 sps:$4 sm:$0xff]  }
 0x2ce   : > { %4981 = vmatprep.subr.bf16.mxu0 %v7133_v43  ;;  %v7190_v43 = vld [vmem:[#allocation6 + $0x32c] ss:$16 sps:$4 sm:$0xff]  }
 0x2cf   : > { %5078 = vmatpush1.bf16.msra.mxu1 %v7128_v45  ;;  %v7239_v45 = vld [vmem:[#allocation6 + $0x620] ss:$16 sps:$4 sm:$0xff]  }
 0x2d0   : > { %5079 = vmatprep.subr.bf16.mxu1 %v7136_v46  ;;  %v7188_v46 = vld [vmem:[#allocation6 + $0x328] ss:$16 sps:$4 sm:$0xff]  }
 0x2d1   : > { %4982 = vmatpush1.bf16.msra.mxu0 %v7131_v47  ;;  %v7247_v47 = vld [vmem:[#allocation6 + $0x644] ss:$16 sps:$4 sm:$0xff]  }
 0x2d2   : > { %4983 = vmatprep.subr.bf16.mxu0 %v7139_v48  ;;  %v7193_v48 = vld [vmem:[#allocation6 + $0x34c] ss:$16 sps:$4 sm:$0xff]  }
 0x2d3   : > { %5080 = vmatpush1.bf16.msra.mxu1 %v7134_v49  ;;  %v7245_v49 = vld [vmem:[#allocation6 + $0x640] ss:$16 sps:$4 sm:$0xff]  }
 0x2d4   : > { %5090 = vmatprep.subr.bf16.mxu1 %v7142_v50  ;;  %v7191_v50 = vld [vmem:[#allocation6 + $0x348] ss:$16 sps:$4 sm:$0xff]  }
 0x2d5   : > { %4984 = vmatpush1.bf16.msra.mxu0 %v7137_v51  ;;  %v7253_v51 = vld [vmem:[#allocation6 + $0x664] ss:$16 sps:$4 sm:$0xff]  }
 0x2d6   : > { %5082 = vmatmul.mubr.bf16.vlgmr.msra.gmra.mrb[12].mxu1 %v8098_v10  ;;  %4985 = vmatprep.subr.bf16.mxu0 %v7145_v52  ;;  %v7163_v10 = vld [vmem:[#allocation6 + $0x584] ss:$16 sps:$4 sm:$0xff]   ;;  %v7196_v52 = vld [vmem:[#allocation6 + $0x36c] ss:$16 sps:$4 sm:$0xff]  }
 0x2d7   : > { %5091 = vmatpush1.bf16.msra.mxu1 %v7140_v55  ;;  %5122 = vmatprep.mubr.bf16.mxu1 %v8113_v57  ;;  %v849_v57 = vrot.slane %v8080_v35, %v848_v8  ;;  %v7251_v55 = vld [vmem:[#allocation6 + $0x660] ss:$16 sps:$4 sm:$0xff]   ;;  %v7206_v8 = vld [vmem:[#allocation6 + $0x3e8] ss:$16 sps:$4 sm:$0xff]  }
 0x2d8   : > { %5092 = vmatprep.subr.bf16.mxu1 %v7148_v59  ;;  %v7194_v59 = vld [vmem:[#allocation6 + $0x368] ss:$16 sps:$4 sm:$0xff]  }
 0x2d9   : > { %4986 = vmatpush1.bf16.msra.mxu0 %v7143_v60  ;;  %v7259_v60 = vld [vmem:[#allocation6 + $0x684] ss:$16 sps:$4 sm:$0xff]  }
 0x2da   : > { %4987 = vmatprep.subr.bf16.mxu0 %v7151_v12  ;;  %v7199_v12 = vld [vmem:[#allocation6 + $0x38c] ss:$16 sps:$4 sm:$0xff]  }
 0x2db   : > { %5093 = vmatpush1.bf16.msra.mxu1 %v7146_v62  ;;  %v7257_v62 = vld [vmem:[#allocation6 + $0x680] ss:$16 sps:$4 sm:$0xff]  }
 0x2dc   : > { %5094 = vmatprep.subr.bf16.mxu1 %v7154_v63  ;;  %v7197_v63 = vld [vmem:[#allocation6 + $0x388] ss:$16 sps:$4 sm:$0xff]  }
 0x2dd   : > { %4988 = vmatpush1.bf16.msra.mxu0 %v7149_v0  ;;  %v7265_v0 = vld [vmem:[#allocation6 + $0x6a4] ss:$16 sps:$4 sm:$0xff]  }
 0x2de   : > { %4989 = vmatprep.subr.bf16.mxu0 %v7157_v1  ;;  %v7202_v1 = vld [vmem:[#allocation6 + $0x3ac] ss:$16 sps:$4 sm:$0xff]  }
 0x2df   : > { %5095 = vmatpush1.bf16.msra.mxu1 %v7152_v2  ;;  %v7263_v2 = vld [vmem:[#allocation6 + $0x6a0] ss:$16 sps:$4 sm:$0xff]  }
 0x2e0   : > { %5096 = vmatprep.subr.bf16.mxu1 %v7160_v41  ;;  %v7200_v41 = vld [vmem:[#allocation6 + $0x3a8] ss:$16 sps:$4 sm:$0xff]  }
 0x2e1   : > { %4990 = vmatpush1.bf16.msra.mxu0 %v7155_v3  ;;  %v7271_v3 = vld [vmem:[#allocation6 + $0x6c4] ss:$16 sps:$4 sm:$0xff]  }
 0x2e2   : > { %4991 = vmatprep.subr.bf16.mxu0 %v7163_v10  ;;  %v7205_v10 = vld [vmem:[#allocation6 + $0x3cc] ss:$16 sps:$4 sm:$0xff]  }
 0x2e3   : > { %5097 = vmatpush1.bf16.msra.mxu1 %v7158_v4  ;;  %v7269_v4 = vld [vmem:[#allocation6 + $0x6c0] ss:$16 sps:$4 sm:$0xff]  }
 0x2e4   : > { %5098 = vmatprep.subr.bf16.mxu1 %v7166_v5  ;;  %v7203_v5 = vld [vmem:[#allocation6 + $0x3c8] ss:$16 sps:$4 sm:$0xff]  }
 0x2e5   : > { %4992 = vmatpush1.bf16.msra.mxu0 %v7161_v44  ;;  %v7277_v44 = vld [vmem:[#allocation6 + $0x6e4] ss:$16 sps:$4 sm:$0xff]  }
 0x2e6   : > { %4993 = vmatprep.subr.bf16.mxu0 %v7169_v6  ;;  %v7208_v6 = vld [vmem:[#allocation6 + $0x3ec] ss:$16 sps:$4 sm:$0xff]  }
 0x2e7   : > { %5099 = vmatpush1.bf16.msra.mxu1 %v7164_v7  ;;  %v7275_v7 = vld [vmem:[#allocation6 + $0x6e0] ss:$16 sps:$4 sm:$0xff]  }
 0x2e8   : > { %5100 = vmatprep.subr.bf16.mxu1 %v7172_v11  ;;  %v7211_v11 = vld [vmem:[#allocation6 + $0x40c] ss:$16 sps:$4 sm:$0xff]  }
 0x2e9   : > { %4994 = vmatpush1.bf16.msra.mxu0 %v7167_v13  ;;  %v7281_v13 = vld [vmem:[#allocation6 + $0x700] ss:$16 sps:$4 sm:$0xff]  }
 0x2ea   : > { %4995 = vmatprep.subr.bf16.mxu0 %v7175_v14  ;;  %v7209_v14 = vld [vmem:[#allocation6 + $0x408] ss:$16 sps:$4 sm:$0xff]  }
 0x2eb   : > { %v3173_v23 = vpop.f32.mrb[4].mxu0  ;;  %5101 = vmatpush1.bf16.msra.mxu1 %v7170_v15  ;;  %v7289_v15 = vld [vmem:[#allocation6 + $0x724] ss:$16 sps:$4 sm:$0xff]  }
 0x2ec   : > { %v6799_v21 = vadd.f32 %v3173_v23, %v849_v57  ;;  %v3175_v16 = vpop.f32.mrb[5].mxu0  ;;  %5102 = vmatprep.subr.bf16.mxu1 %v7178_v20  ;;  %v7214_v57 = vld [vmem:[#allocation6 + $0x42c] ss:$16 sps:$4 sm:$0xff]   ;;  %v7212_v20 = vld [vmem:[#allocation6 + $0x428] ss:$16 sps:$4 sm:$0xff]  }
 0x2ed   : > { %v6800_v26 = vadd.f32 %v3175_v16, %v853_v18  ;;  %v3177_v53 = vpop.f32.mrb[6].mxu0  ;;  %4996 = vmatpush1.bf16.msra.mxu0 %v7173_v22  ;;  %v7287_v18 = vld [vmem:[#allocation6 + $0x720] ss:$16 sps:$4 sm:$0xff]   ;;  %v7295_v22 = vld [vmem:[#allocation6 + $0x744] ss:$16 sps:$4 sm:$0xff]  }
 0x2ee   : > { %v3307_v54 = vmul.f32 0.2, %v6799_v21  ;;  %v3178_v29 = vpop.f32.mrb[7].mxu0  ;;  %4997 = vmatprep.subr.bf16.mxu0 %v7181_v24  ;;  %v7217_v23 = vld [vmem:[#allocation6 + $0x44c] ss:$16 sps:$4 sm:$0xff]  }
 0x2ef   : > { %v3308_v35 = vmul.f32 0.2, %v6800_v26  ;;  %5103 = vmatpush1.bf16.msra.mxu1 %v7176_v25  ;;  %v7293_v24 = vld [vmem:[#allocation6 + $0x740] ss:$16 sps:$4 sm:$0xff]   ;;  %v7301_v16 = vld [vmem:[#allocation6 + $0x764] ss:$16 sps:$4 sm:$0xff]  }
 0x2f0   : > { %v3315_v31 = vmax.f32 %v6799_v21, %v3307_v54  ;;  %5104 = vmatprep.subr.bf16.mxu1 %v7184_v27  ;;  %v7215_v21 = vld [vmem:[#allocation6 + $0x448] ss:$16 sps:$4 sm:$0xff]   ;;  %v7220_v25 = vld [vmem:[#allocation6 + $0x46c] ss:$16 sps:$4 sm:$0xff]   ;;  %v7307_v53 = vld [vmem:[#allocation6 + $0x784] ss:$16 sps:$4 sm:$0xff]  }
 0x2f1   : > { %v3316_v34 = vmax.f32 %v6800_v26, %v3308_v35  ;;  %4998 = vmatpush1.bf16.msra.mxu0 %v7179_v30  ;;  %v7218_v26 = vld [vmem:[#allocation6 + $0x468] ss:$16 sps:$4 sm:$0xff]   ;;  %v7223_v27 = vld [vmem:[#allocation6 + $0x48c] ss:$16 sps:$4 sm:$0xff]   ;;  %v7305_v54 = vld [vmem:[#allocation6 + $0x780] ss:$16 sps:$4 sm:$0xff]  }
 0x2f2   : > { %5008 = vmatprep.subr.bf16.mxu0 %v7235_v28  ;;  %v8127_v40 = vpack.c.bf16 %v3315_v31, %v3315_v31  ;;  %v7221_v29 = vld [vmem:[#allocation6 + $0x488] ss:$16 sps:$4 sm:$0xff]   ;;  %v7313_v30 = vld [vmem:[#allocation6 + $0x7a4] ss:$16 sps:$4 sm:$0xff]   ;;  %v7226_v35 = vld [vmem:[#allocation6 + $0x4ac] ss:$16 sps:$4 sm:$0xff]  }
 0x2f3   : > { %v8125_v38 = vpack.c.bf16 %v3316_v34, %v3316_v34  ;;  %5105 = vmatpush1.bf16.msra.mxu1 %v7182_v33  ;;  %v7311_v28 = vld [vmem:[#allocation6 + $0x7a0] ss:$16 sps:$4 sm:$0xff]   ;;  %v7224_v31 = vld [vmem:[#allocation6 + $0x4a8] ss:$16 sps:$4 sm:$0xff]   ;;  %v7319_v33 = vld [vmem:[#allocation6 + $0x7c4] ss:$16 sps:$4 sm:$0xff]  }
 0x2f4   : > { %5106 = vmatprep.subr.bf16.mxu1 %v7187_v37  ;;  %v7229_v34 = vld [vmem:[#allocation6 + $0x4cc] ss:$16 sps:$4 sm:$0xff]   ;;  %v7317_v37 = vld [vmem:[#allocation6 + $0x7c0] ss:$16 sps:$4 sm:$0xff]  }
 0x2f5   : > { %4999 = vmatprep.mubr.bf16.mxu0 %v8125_v38 }
 0x2f6   : > { %5000 = vmatmul.mubr.bf16.vlgmr.msra.gmra.mrb[8].mxu0 %v8127_v40 }
 0x2f7   : > { %5009 = vmatpush1.bf16.msra.mxu0 %v7233_v39  ;;  %5107 = vmatpush1.bf16.msra.mxu1 %v7185_v19  ;;  %v7325_v39 = vld [vmem:[#allocation6 + $0x7e4] ss:$16 sps:$4 sm:$0xff]   ;;  %v7232_v19 = vld [vmem:[#allocation6 + $0x4ec] ss:$16 sps:$4 sm:$0xff]  }
 0x2f8   : > { %5010 = vmatprep.subr.bf16.mxu0 %v7241_v42  ;;  %5108 = vmatprep.subr.bf16.mxu1 %v7190_v43  ;;  %v7323_v42 = vld [vmem:[#allocation6 + $0x7e0] ss:$16 sps:$4 sm:$0xff]   ;;  %v7230_v43 = vld [vmem:[#allocation6 + $0x4e8] ss:$16 sps:$4 sm:$0xff]  }
 0x2fb   : > { %5011 = vmatpush1.bf16.msra.mxu0 %v7239_v45  ;;  %5109 = vmatpush1.bf16.msra.mxu1 %v7188_v46  ;;  %v7355_v45 = vld [vmem:[#allocation9 + $0x4] ss:$8 sps:$4 sm:$0xff]   ;;  %v7238_v46 = vld [vmem:[#allocation6 + $0x50c] ss:$16 sps:$4 sm:$0xff]  }
 0x2fc   : > { %5012 = vmatprep.subr.bf16.mxu0 %v7247_v47  ;;  %5110 = vmatprep.subr.bf16.mxu1 %v7193_v48  ;;  %v7236_v47 = vld [vmem:[#allocation6 + $0x508] ss:$16 sps:$4 sm:$0xff]   ;;  %v7244_v48 = vld [vmem:[#allocation6 + $0x52c] ss:$16 sps:$4 sm:$0xff]  }
 0x2ff   : > { %5013 = vmatpush1.bf16.msra.mxu0 %v7245_v49  ;;  %5111 = vmatpush1.bf16.msra.mxu1 %v7191_v50  ;;  %v7242_v49 = vld [vmem:[#allocation6 + $0x528] ss:$16 sps:$4 sm:$0xff]   ;;  %v7250_v50 = vld [vmem:[#allocation6 + $0x54c] ss:$16 sps:$4 sm:$0xff]  }
 0x300   : > { %5014 = vmatprep.subr.bf16.mxu0 %v7253_v51  ;;  %5112 = vmatprep.subr.bf16.mxu1 %v7196_v52  ;;  %v7248_v51 = vld [vmem:[#allocation6 + $0x548] ss:$16 sps:$4 sm:$0xff]   ;;  %v7256_v52 = vld [vmem:[#allocation6 + $0x56c] ss:$16 sps:$4 sm:$0xff]  }
 0x303   : > { %5015 = vmatpush1.bf16.msra.mxu0 %v7251_v55  ;;  %5113 = vmatpush1.bf16.msra.mxu1 %v7194_v59  ;;  %v7254_v55 = vld [vmem:[#allocation6 + $0x568] ss:$16 sps:$4 sm:$0xff]   ;;  %v7262_v59 = vld [vmem:[#allocation6 + $0x58c] ss:$16 sps:$4 sm:$0xff]  }
 0x304   : > { %5016 = vmatprep.subr.bf16.mxu0 %v7259_v60  ;;  %5114 = vmatprep.subr.bf16.mxu1 %v7199_v12  ;;  %v7260_v60 = vld [vmem:[#allocation6 + $0x588] ss:$16 sps:$4 sm:$0xff]   ;;  %v7268_v12 = vld [vmem:[#allocation6 + $0x5ac] ss:$16 sps:$4 sm:$0xff]  }
 0x307   : > { %5017 = vmatpush1.bf16.msra.mxu0 %v7257_v62  ;;  %5115 = vmatpush1.bf16.msra.mxu1 %v7197_v63  ;;  %v7266_v62 = vld [vmem:[#allocation6 + $0x5a8] ss:$16 sps:$4 sm:$0xff]   ;;  %v7274_v63 = vld [vmem:[#allocation6 + $0x5cc] ss:$16 sps:$4 sm:$0xff]  }
 0x308   : > { %5018 = vmatprep.subr.bf16.mxu0 %v7265_v0  ;;  %5116 = vmatprep.subr.bf16.mxu1 %v7202_v1  ;;  %v7272_v0 = vld [vmem:[#allocation6 + $0x5c8] ss:$16 sps:$4 sm:$0xff]   ;;  %v7280_v1 = vld [vmem:[#allocation6 + $0x5ec] ss:$16 sps:$4 sm:$0xff]  }
 0x30b   : > { %5019 = vmatpush1.bf16.msra.mxu0 %v7263_v2  ;;  %5117 = vmatpush1.bf16.msra.mxu1 %v7200_v41  ;;  %v7278_v2 = vld [vmem:[#allocation6 + $0x5e8] ss:$16 sps:$4 sm:$0xff]   ;;  %v7286_v41 = vld [vmem:[#allocation6 + $0x60c] ss:$16 sps:$4 sm:$0xff]  }
 0x30c   : > { %5020 = vmatprep.subr.bf16.mxu0 %v7271_v3  ;;  %5118 = vmatprep.subr.bf16.mxu1 %v7205_v10  ;;  %v7284_v3 = vld [vmem:[#allocation6 + $0x608] ss:$16 sps:$4 sm:$0xff]   ;;  %v7292_v10 = vld [vmem:[#allocation6 + $0x62c] ss:$16 sps:$4 sm:$0xff]  }
 0x30f   : > { %5021 = vmatpush1.bf16.msra.mxu0 %v7269_v4  ;;  %5119 = vmatpush1.bf16.msra.mxu1 %v7203_v5  ;;  %v7290_v4 = vld [vmem:[#allocation6 + $0x628] ss:$16 sps:$4 sm:$0xff]   ;;  %v7298_v5 = vld [vmem:[#allocation6 + $0x64c] ss:$16 sps:$4 sm:$0xff]  }
 0x310   : > { %5022 = vmatprep.subr.bf16.mxu0 %v7277_v44  ;;  %5120 = vmatprep.subr.bf16.mxu1 %v7208_v6  ;;  %v7296_v44 = vld [vmem:[#allocation6 + $0x648] ss:$16 sps:$4 sm:$0xff]   ;;  %v7304_v6 = vld [vmem:[#allocation6 + $0x66c] ss:$16 sps:$4 sm:$0xff]  }
 0x313   : > { %5023 = vmatpush1.bf16.msra.mxu0 %v7275_v7  ;;  %5121 = vmatpush1.bf16.msra.mxu1 %v7206_v8  ;;  %v7302_v7 = vld [vmem:[#allocation6 + $0x668] ss:$16 sps:$4 sm:$0xff]   ;;  %v7310_v8 = vld [vmem:[#allocation6 + $0x68c] ss:$16 sps:$4 sm:$0xff]  }
 0x314   : > { %5024 = vmatprep.subr.bf16.mxu0 %v7283_v9  ;;  %5131 = vmatprep.subr.bf16.mxu1 %v7211_v11  ;;  %v856_v9 = vsub.s32 6, %v8075_v58  ;;  %v7308_v11 = vld [vmem:[#allocation6 + $0x688] ss:$16 sps:$4 sm:$0xff]  }
 0x316   : > { %5123 = vmatmul.mubr.bf16.vlgmr.msra.gmra.mrb[12].mxu1 %v8115_v17  ;;  %v7299_v17 = vld [vmem:[#allocation6 + $0x760] ss:$16 sps:$4 sm:$0xff]  }
 0x317   : > { %5025 = vmatpush1.bf16.msra.mxu0 %v7281_v13  ;;  %5132 = vmatpush1.bf16.msra.mxu1 %v7209_v14  ;;  %v860_v13 = vsub.s32 7, %v8075_v58  ;;  %v7465_v14 = vld [vmem:[#allocation4] sm:$0xff] }
 0x318   : > { %5163 = vmatprep.mubr.bf16.mxu1 %v8125_v38  ;;  %5133 = vmatprep.subr.bf16.mxu1 %v7214_v57  ;;  %v7227_v38 = vld [vmem:[#allocation6 + $0x4c8] ss:$16 sps:$4 sm:$0xff]   ;;  %v857_v57 = vrot.slane %v7465_v14, %v856_v9 }
 0x319   : > { %5026 = vmatprep.subr.bf16.mxu0 %v7289_v15  ;;  %v861_v15 = vrot.slane %v7465_v14, %v860_v13  ;;  %v7385_v9 = vld [vmem:[#allocation9 + $0xa4] ss:$8 sps:$4 sm:$0xff]   ;;  %v7388_v13 = vld [vmem:[#allocation9 + $0xb4] ss:$8 sps:$4 sm:$0xff]  }
 0x31a   : > { %v7391_v14 = vld [vmem:[#allocation9 + $0xc4] ss:$8 sps:$4 sm:$0xff]  }
 0x31b   : > { %5027 = vmatpush1.bf16.msra.mxu0 %v7287_v18  ;;  %5134 = vmatpush1.bf16.msra.mxu1 %v7212_v20  ;;  %v7314_v18 = vld [vmem:[#allocation6 + $0x6a8] ss:$16 sps:$4 sm:$0xff]   ;;  %v7322_v20 = vld [vmem:[#allocation6 + $0x6cc] ss:$16 sps:$4 sm:$0xff]  }
 0x31c   : > { %5028 = vmatprep.subr.bf16.mxu0 %v7295_v22  ;;  %5135 = vmatprep.subr.bf16.mxu1 %v7217_v23 }
 0x31f   : > { %5029 = vmatpush1.bf16.msra.mxu0 %v7293_v24  ;;  %5136 = vmatpush1.bf16.msra.mxu1 %v7215_v21 }
 0x320   : > { %5030 = vmatprep.subr.bf16.mxu0 %v7301_v16  ;;  %5137 = vmatprep.subr.bf16.mxu1 %v7220_v25  ;;  %v7320_v25 = vld [vmem:[#allocation6 + $0x6c8] ss:$16 sps:$4 sm:$0xff]  }
 0x323   : > { %5031 = vmatpush1.bf16.msra.mxu0 %v7299_v17  ;;  %5138 = vmatpush1.bf16.msra.mxu1 %v7218_v26 }
 0x324   : > { %5032 = vmatprep.subr.bf16.mxu0 %v7307_v53  ;;  %5139 = vmatprep.subr.bf16.mxu1 %v7223_v27  ;;  %v7328_v53 = vld [vmem:[#allocation6 + $0x6ec] ss:$16 sps:$4 sm:$0xff]  }
 0x327   : > { %5033 = vmatpush1.bf16.msra.mxu0 %v7305_v54  ;;  %5140 = vmatpush1.bf16.msra.mxu1 %v7221_v29 }
 0x328   : > { %5034 = vmatprep.subr.bf16.mxu0 %v7313_v30  ;;  %5141 = vmatprep.subr.bf16.mxu1 %v7226_v35  ;;  %v7326_v30 = vld [vmem:[#allocation6 + $0x6e8] ss:$16 sps:$4 sm:$0xff]  }
 0x32b   : > { %5035 = vmatpush1.bf16.msra.mxu0 %v7311_v28  ;;  %5142 = vmatpush1.bf16.msra.mxu1 %v7224_v31  ;;  %v7331_v28 = vld [vmem:[#allocation6 + $0x70c] ss:$16 sps:$4 sm:$0xff]  }
 0x32c   : > { %5036 = vmatprep.subr.bf16.mxu0 %v7319_v33  ;;  %5143 = vmatprep.subr.bf16.mxu1 %v7229_v34  ;;  %v7353_v31 = vld [vmem:[#allocation9] ss:$8 sps:$4 sm:$0xff]   ;;  %v7358_v34 = vld [vmem:[#allocation9 + $0x14] ss:$8 sps:$4 sm:$0xff]  }
 0x32f   : > { %5037 = vmatpush1.bf16.msra.mxu0 %v7317_v37  ;;  %5144 = vmatpush1.bf16.msra.mxu1 %v7227_v38  ;;  %v7329_v37 = vld [vmem:[#allocation6 + $0x708] ss:$16 sps:$4 sm:$0xff]   ;;  %v7334_v38 = vld [vmem:[#allocation6 + $0x72c] ss:$16 sps:$4 sm:$0xff]  }
 0x330   : > { %5038 = vmatprep.subr.bf16.mxu0 %v7325_v39  ;;  %5145 = vmatprep.subr.bf16.mxu1 %v7232_v19  ;;  %v7356_v39 = vld [vmem:[#allocation9 + $0x10] ss:$8 sps:$4 sm:$0xff]   ;;  %v7361_v19 = vld [vmem:[#allocation9 + $0x24] ss:$8 sps:$4 sm:$0xff]  }
 0x333   : > { %5039 = vmatpush1.bf16.msra.mxu0 %v7323_v42  ;;  %5146 = vmatpush1.bf16.msra.mxu1 %v7230_v43  ;;  %v7332_v42 = vld [vmem:[#allocation6 + $0x728] ss:$16 sps:$4 sm:$0xff]   ;;  %v7337_v43 = vld [vmem:[#allocation6 + $0x74c] ss:$16 sps:$4 sm:$0xff]  }
 0x334   : > { %5621 = vmatprep.subr.bf16.mxu0 %v7355_v45  ;;  %5147 = vmatprep.subr.bf16.mxu1 %v7238_v46  ;;  %v7359_v45 = vld [vmem:[#allocation9 + $0x20] ss:$8 sps:$4 sm:$0xff]   ;;  %v7364_v46 = vld [vmem:[#allocation9 + $0x34] ss:$8 sps:$4 sm:$0xff]  }
 0x337   : > { %5148 = vmatpush1.bf16.msra.mxu1 %v7236_v47  ;;  %v7335_v47 = vld [vmem:[#allocation6 + $0x748] ss:$16 sps:$4 sm:$0xff]  }
 0x338   : > { %5149 = vmatprep.subr.bf16.mxu1 %v7244_v48  ;;  %v7340_v48 = vld [vmem:[#allocation6 + $0x76c] ss:$16 sps:$4 sm:$0xff]  }
 0x33b   : > { %5150 = vmatpush1.bf16.msra.mxu1 %v7242_v49  ;;  %v7362_v49 = vld [vmem:[#allocation9 + $0x30] ss:$8 sps:$4 sm:$0xff]  }
 0x33c   : > { %5151 = vmatprep.subr.bf16.mxu1 %v7250_v50  ;;  %v7367_v50 = vld [vmem:[#allocation9 + $0x44] ss:$8 sps:$4 sm:$0xff]  }
 0x33f   : > { %5152 = vmatpush1.bf16.msra.mxu1 %v7248_v51  ;;  %v7338_v51 = vld [vmem:[#allocation6 + $0x768] ss:$16 sps:$4 sm:$0xff]  }
 0x340   : > { %5153 = vmatprep.subr.bf16.mxu1 %v7256_v52  ;;  %v7343_v52 = vld [vmem:[#allocation6 + $0x78c] ss:$16 sps:$4 sm:$0xff]  }
 0x343   : > { %5154 = vmatpush1.bf16.msra.mxu1 %v7254_v55  ;;  %v7365_v55 = vld [vmem:[#allocation9 + $0x40] ss:$8 sps:$4 sm:$0xff]  }
 0x344   : > { %5155 = vmatprep.subr.bf16.mxu1 %v7262_v59  ;;  %v7370_v59 = vld [vmem:[#allocation9 + $0x54] ss:$8 sps:$4 sm:$0xff]  }
 0x347   : > { %5156 = vmatpush1.bf16.msra.mxu1 %v7260_v60  ;;  %v7341_v60 = vld [vmem:[#allocation6 + $0x788] ss:$16 sps:$4 sm:$0xff]  }
 0x348   : > { %5157 = vmatprep.subr.bf16.mxu1 %v7268_v12  ;;  %v7346_v12 = vld [vmem:[#allocation6 + $0x7ac] ss:$16 sps:$4 sm:$0xff]  }
 0x34b   : > { %5158 = vmatpush1.bf16.msra.mxu1 %v7266_v62  ;;  %v7368_v62 = vld [vmem:[#allocation9 + $0x50] ss:$8 sps:$4 sm:$0xff]  }
 0x34c   : > { %5159 = vmatprep.subr.bf16.mxu1 %v7274_v63  ;;  %v7373_v63 = vld [vmem:[#allocation9 + $0x64] ss:$8 sps:$4 sm:$0xff]  }
 0x34f   : > { %5160 = vmatpush1.bf16.msra.mxu1 %v7272_v0  ;;  %v7344_v0 = vld [vmem:[#allocation6 + $0x7a8] ss:$16 sps:$4 sm:$0xff]  }
 0x350   : > { %5161 = vmatprep.subr.bf16.mxu1 %v7280_v1  ;;  %v7349_v1 = vld [vmem:[#allocation6 + $0x7cc] ss:$16 sps:$4 sm:$0xff]  }
 0x353   : > { %5162 = vmatpush1.bf16.msra.mxu1 %v7278_v2  ;;  %v7371_v2 = vld [vmem:[#allocation9 + $0x60] ss:$8 sps:$4 sm:$0xff]  }
 0x354   : > { %5172 = vmatprep.subr.bf16.mxu1 %v7286_v41  ;;  %v7376_v41 = vld [vmem:[#allocation9 + $0x74] ss:$8 sps:$4 sm:$0xff]  }
 0x356   : > { %5164 = vmatmul.mubr.bf16.vlgmr.msra.gmra.mrb[12].mxu1 %v8127_v40  ;;  %v7316_v40 = vld [vmem:[#allocation6 + $0x6ac] ss:$16 sps:$4 sm:$0xff]  }
 0x357   : > { %5173 = vmatpush1.bf16.msra.mxu1 %v7284_v3  ;;  %v7347_v3 = vld [vmem:[#allocation6 + $0x7c8] ss:$16 sps:$4 sm:$0xff]  }
 0x358   : > { %5174 = vmatprep.subr.bf16.mxu1 %v7292_v10  ;;  %v7352_v10 = vld [vmem:[#allocation6 + $0x7ec] ss:$16 sps:$4 sm:$0xff]  }
 0x35b   : > { %5175 = vmatpush1.bf16.msra.mxu1 %v7290_v4  ;;  %v7374_v4 = vld [vmem:[#allocation9 + $0x70] ss:$8 sps:$4 sm:$0xff]  }
 0x35c   : > { %5176 = vmatprep.subr.bf16.mxu1 %v7298_v5  ;;  %v7379_v5 = vld [vmem:[#allocation9 + $0x84] ss:$8 sps:$4 sm:$0xff]  }
 0x35f   : > { %5177 = vmatpush1.bf16.msra.mxu1 %v7296_v44  ;;  %v7350_v44 = vld [vmem:[#allocation6 + $0x7e8] ss:$16 sps:$4 sm:$0xff]  }
 0x360   : > { %5178 = vmatprep.subr.bf16.mxu1 %v7304_v6  ;;  %v7377_v6 = vld [vmem:[#allocation9 + $0x80] ss:$8 sps:$4 sm:$0xff]  }
 0x363   : > { %5179 = vmatpush1.bf16.msra.mxu1 %v7302_v7  ;;  %v7382_v7 = vld [vmem:[#allocation9 + $0x94] ss:$8 sps:$4 sm:$0xff]  }
 0x364   : > { %5180 = vmatprep.subr.bf16.mxu1 %v7310_v8  ;;  %v7380_v8 = vld [vmem:[#allocation9 + $0x90] ss:$8 sps:$4 sm:$0xff]  }
 0x367   : > { %5181 = vmatpush1.bf16.msra.mxu1 %v7308_v11  ;;  %v7383_v11 = vld [vmem:[#allocation9 + $0xa0] ss:$8 sps:$4 sm:$0xff]  }
 0x368   : > { %5182 = vmatprep.subr.bf16.mxu1 %v7316_v40  ;;  %v7386_v40 = vld [vmem:[#allocation9 + $0xb0] ss:$8 sps:$4 sm:$0xff]  }
 0x369   : > { %v3296_v22 = vpop.f32.mrb[8].mxu1 }
 0x36a   : > { %v6801_v23 = vadd.f32 %v3296_v22, %v857_v57  ;;  %v3298_v24 = vpop.f32.mrb[9].mxu1  ;;  %v7389_v57 = vld [vmem:[#allocation9 + $0xc0] ss:$8 sps:$4 sm:$0xff]  }
 0x36b   : > { %v6802_v21 = vadd.f32 %v3298_v24, %v861_v15  ;;  %v3300_v16 = vpop.f32.mrb[10].mxu1  ;;  %5183 = vmatpush1.bf16.msra.mxu1 %v7314_v18  ;;  %v7394_v15 = vld [vmem:[#allocation9 + $0xd4] ss:$8 sps:$4 sm:$0xff]   ;;  %v7392_v18 = vld [vmem:[#allocation9 + $0xd0] ss:$8 sps:$4 sm:$0xff]  }
 0x36c   : > { %v3309_v17 = vmul.f32 0.2, %v6801_v23  ;;  %v3301_v26 = vpop.f32.mrb[11].mxu1  ;;  %5184 = vmatprep.subr.bf16.mxu1 %v7322_v20  ;;  %v7397_v20 = vld [vmem:[#allocation9 + $0xe4] ss:$8 sps:$4 sm:$0xff]  }
 0x36d   : > { %v3310_v27 = vmul.f32 0.2, %v6802_v21  ;;  %v7395_v22 = vld [vmem:[#allocation9 + $0xe0] ss:$8 sps:$4 sm:$0xff]   ;;  %v7398_v24 = vld [vmem:[#allocation9 + $0xf0] ss:$8 sps:$4 sm:$0xff]  }
 0x36e   : > { %v3317_v54 = vmax.f32 %v6801_v23, %v3309_v17  ;;  %v7400_v23 = vld [vmem:[#allocation9 + $0xf4] ss:$8 sps:$4 sm:$0xff]   ;;  %v7449_v16 = vld [vmem:[#allocation12 + $0x40] sm:$0xff]   ;;  %v7451_v17 = vld [vmem:[#allocation12 + $0x48] sm:$0xff]  }
 0x36f   : > { %v3318_v29 = vmax.f32 %v6802_v21, %v3310_v27  ;;  %5185 = vmatpush1.bf16.msra.mxu1 %v7320_v25  ;;  %v7403_v21 = vld [vmem:[#allocation9 + $0x104] ss:$8 sps:$4 sm:$0xff]   ;;  %v7454_v27 = vld [vmem:[#allocation12 + $0x10] sm:$0xff]  }
 0x370   : > { %5186 = vmatprep.subr.bf16.mxu1 %v7328_v53  ;;  %v8136_v33 = vpack.c.bf16 %v3317_v54, %v3317_v54  ;;  %v7450_v25 = vld [vmem:[#allocation12] sm:$0xff]   ;;  %v7452_v26 = vld [vmem:[#allocation12 + $0x8] sm:$0xff]   ;;  %v7453_v53 = vld [vmem:[#allocation12 + $0x50] sm:$0xff]  }
 0x371   : > { %v3326_v35 = vpack.c.bf16 %v3318_v29, %v3318_v29  ;;  %v7455_v54 = vld [vmem:[#allocation12 + $0x58] sm:$0xff]  }
 0x372   : > { %v7456_v29 = vld [vmem:[#allocation12 + $0x18] sm:$0xff]  }
 0x373   : > { %5040 = vmatprep.mubr.bf16.mxu0 %v3326_v35  ;;  %5187 = vmatpush1.bf16.msra.mxu1 %v7326_v30  ;;  %v7457_v30 = vld [vmem:[#allocation12 + $0x60] sm:$0xff]  }
 0x374   : > { %5204 = vmatprep.mubr.bf16.mxu1 %v3326_v35  ;;  %5041 = vmatmul.mubr.bf16.vlgmr.msra.gmra.mrb[8].mxu0 %v8136_v33  ;;  %v7458_v35 = vld [vmem:[#allocation12 + $0x20] sm:$0xff]  }
 0x375   : > { %5188 = vmatprep.subr.bf16.mxu1 %v7331_v28  ;;  %5622 = vmatpush1.bf16.msra.mxu0 %v7353_v31  ;;  %v7459_v28 = vld [vmem:[#allocation12 + $0x68] sm:$0xff]   ;;  %v8140_v31 = vld [vmem:[#allocation7] sm:$0xf] }
 0x376   : > { %5623 = vmatprep.subr.bf16.mxu0 %v7358_v34  ;;  %v3592_v34 = vrot.slane %v8140_v31, %v8083_v36 }
 0x377   : > { %5189 = vmatpush1.bf16.msra.mxu1 %v7329_v37 }
 0x378   : > { %5190 = vmatprep.subr.bf16.mxu1 %v7334_v38 }
 0x379   : > { %5624 = vmatpush1.bf16.msra.mxu0 %v7356_v39 }
 0x37a   : > { %5625 = vmatprep.subr.bf16.mxu0 %v7361_v19 }
 0x37b   : > { %5191 = vmatpush1.bf16.msra.mxu1 %v7332_v42 }
 0x37c   : > { %5192 = vmatprep.subr.bf16.mxu1 %v7337_v43 }
 0x37d   : > { %5626 = vmatpush1.bf16.msra.mxu0 %v7359_v45 }
 0x37e   : > { %5627 = vmatprep.subr.bf16.mxu0 %v7364_v46 }
 0x37f   : > { %5193 = vmatpush1.bf16.msra.mxu1 %v7335_v47 }
 0x380   : > { %5194 = vmatprep.subr.bf16.mxu1 %v7340_v48 }
 0x381   : > { %5628 = vmatpush1.bf16.msra.mxu0 %v7362_v49 }
 0x382   : > { %5629 = vmatprep.subr.bf16.mxu0 %v7367_v50  ;;  %v7401_v50 = vld [vmem:[#allocation9 + $0x100] ss:$8 sps:$4 sm:$0xff]  }
 0x383   : > { %5195 = vmatpush1.bf16.msra.mxu1 %v7338_v51 }
 0x384   : > { %5196 = vmatprep.subr.bf16.mxu1 %v7343_v52  ;;  %v7406_v52 = vld [vmem:[#allocation9 + $0x114] ss:$8 sps:$4 sm:$0xff]  }
 0x385   : > { %5630 = vmatpush1.bf16.msra.mxu0 %v7365_v55  ;;  %v7404_v55 = vld [vmem:[#allocation9 + $0x110] ss:$8 sps:$4 sm:$0xff]  }
 0x386   : > { %5631 = vmatprep.subr.bf16.mxu0 %v7370_v59  ;;  %v7409_v59 = vld [vmem:[#allocation9 + $0x124] ss:$8 sps:$4 sm:$0xff]  }
 0x387   : > { %5197 = vmatpush1.bf16.msra.mxu1 %v7341_v60  ;;  %v7407_v60 = vld [vmem:[#allocation9 + $0x120] ss:$8 sps:$4 sm:$0xff]  }
 0x388   : > { %5198 = vmatprep.subr.bf16.mxu1 %v7346_v12  ;;  %v7412_v12 = vld [vmem:[#allocation9 + $0x134] ss:$8 sps:$4 sm:$0xff]  }
 0x389   : > { %5632 = vmatpush1.bf16.msra.mxu0 %v7368_v62  ;;  %v7410_v62 = vld [vmem:[#allocation9 + $0x130] ss:$8 sps:$4 sm:$0xff]  }
 0x38a   : > { %5633 = vmatprep.subr.bf16.mxu0 %v7373_v63  ;;  %v7415_v63 = vld [vmem:[#allocation9 + $0x144] ss:$8 sps:$4 sm:$0xff]  }
 0x38b   : > { %5199 = vmatpush1.bf16.msra.mxu1 %v7344_v0  ;;  %v7413_v0 = vld [vmem:[#allocation9 + $0x140] ss:$8 sps:$4 sm:$0xff]  }
 0x38c   : > { %5200 = vmatprep.subr.bf16.mxu1 %v7349_v1  ;;  %v7418_v1 = vld [vmem:[#allocation9 + $0x154] ss:$8 sps:$4 sm:$0xff]  }
 0x38d   : > { %5634 = vmatpush1.bf16.msra.mxu0 %v7371_v2  ;;  %v7416_v2 = vld [vmem:[#allocation9 + $0x150] ss:$8 sps:$4 sm:$0xff]  }
 0x38e   : > { %5635 = vmatprep.subr.bf16.mxu0 %v7376_v41  ;;  %v7421_v41 = vld [vmem:[#allocation9 + $0x164] ss:$8 sps:$4 sm:$0xff]  }
 0x38f   : > { %5201 = vmatpush1.bf16.msra.mxu1 %v7347_v3  ;;  %v7419_v3 = vld [vmem:[#allocation9 + $0x160] ss:$8 sps:$4 sm:$0xff]  }
 0x390   : > { %5202 = vmatprep.subr.bf16.mxu1 %v7352_v10  ;;  %v3600_v10 = vrot.slane %v8140_v31, %v844_v32  ;;  %v7428_v32 = vld [vmem:[#allocation9 + $0x190] ss:$8 sps:$4 sm:$0xff]  }
 0x391   : > { %5636 = vmatpush1.bf16.msra.mxu0 %v7374_v4  ;;  %v7424_v4 = vld [vmem:[#allocation9 + $0x174] ss:$8 sps:$4 sm:$0xff]  }
 0x392   : > { %5637 = vmatprep.subr.bf16.mxu0 %v7379_v5 }
 0x393   : > { %5203 = vmatpush1.bf16.msra.mxu1 %v7350_v44 }
 0x394   : > { %6771 = vmatprep.subr.bf16.mxu1 %v7449_v16  ;;  %v3596_v16 = vrot.slane %v8140_v31, %v840_v56  ;;  %v7460_v56 = vld [vmem:[#allocation12 + $0x28] sm:$0xff]  }
 0x395   : > { %5638 = vmatpush1.bf16.msra.mxu0 %v7377_v6 }
 0x396   : > { %5205 = vmatmul.mubr.bf16.vlgmr.msra.gmra.mrb[12].mxu1 %v8136_v33  ;;  %5639 = vmatprep.subr.bf16.mxu0 %v7382_v7  ;;  %v3588_v33 = vrot.slane %v8140_v31, %v8078_v61  ;;  %v7462_v31 = vld [vmem:[#allocation12 + $0x30] sm:$0xff]  }
 0x397   : > { %6772 = vmatpush3.bf16.msra.mxu1 %v7450_v25  ;;  %v7442_v25 = vld [vmem:[#allocation9 + $0x1d4] ss:$8 sps:$4 sm:$0xff]  }
 0x398   : > { %6773 = vmatprep.subr.bf16.mxu1 %v7451_v17  ;;  %v7440_v17 = vld [vmem:[#allocation9 + $0x1d0] ss:$8 sps:$4 sm:$0xff]  }
 0x399   : > { %5640 = vmatpush1.bf16.msra.mxu0 %v7380_v8  ;;  %v7422_v8 = vld [vmem:[#allocation9 + $0x170] ss:$8 sps:$4 sm:$0xff]  }
 0x39a   : > { %5641 = vmatprep.subr.bf16.mxu0 %v7385_v9 }
 0x39b   : > { %6774 = vmatpush3.bf16.msra.mxu1 %v7452_v26 }
 0x39c   : > { %6775 = vmatprep.subr.bf16.mxu1 %v7453_v53  ;;  %v7445_v53 = vld [vmem:[#allocation9 + $0x1e4] ss:$8 sps:$4 sm:$0xff]  }
 0x39d   : > { %5642 = vmatpush1.bf16.msra.mxu0 %v7383_v11  ;;  %v7427_v11 = vld [vmem:[#allocation9 + $0x184] ss:$8 sps:$4 sm:$0xff]  }
 0x39e   : > { %5643 = vmatprep.subr.bf16.mxu0 %v7388_v13 }
 0x39f   : > { %6776 = vmatpush3.bf16.msra.mxu1 %v7454_v27  ;;  %v7443_v27 = vld [vmem:[#allocation9 + $0x1e0] ss:$8 sps:$4 sm:$0xff]  }
 0x3a0   : > { %6777 = vmatprep.subr.bf16.mxu1 %v7455_v54 }
 0x3a1   : > { %5644 = vmatpush1.bf16.msra.mxu0 %v7386_v40 }
 0x3a2   : > { %5645 = vmatprep.subr.bf16.mxu0 %v7391_v14  ;;  %v7425_v14 = vld [vmem:[#allocation9 + $0x180] ss:$8 sps:$4 sm:$0xff]  }
 0x3a3   : > { %6778 = vmatpush3.bf16.msra.mxu1 %v7456_v29  ;;  %v7448_v29 = vld [vmem:[#allocation9 + $0x1f4] ss:$8 sps:$4 sm:$0xff]  }
 0x3a4   : > { %6779 = vmatprep.subr.bf16.mxu1 %v7457_v30  ;;  %v7446_v30 = vld [vmem:[#allocation9 + $0x1f0] ss:$8 sps:$4 sm:$0xff]  }
 0x3a5   : > { %5646 = vmatpush1.bf16.msra.mxu0 %v7389_v57  ;;  %v7430_v57 = vld [vmem:[#allocation9 + $0x194] ss:$8 sps:$4 sm:$0xff]  }
 0x3a6   : > { %5647 = vmatprep.subr.bf16.mxu0 %v7394_v15 }
 0x3a7   : > { %6780 = vmatpush3.bf16.msra.mxu1 %v7458_v35 }
 0x3a8   : > { %6781 = vmatprep.subr.bf16.mxu1 %v7459_v28  ;;  %v7461_v28 = vld [vmem:[#allocation12 + $0x70] sm:$0xff]  }
 0x3a9   : > { %5648 = vmatpush1.bf16.msra.mxu0 %v7392_v18  ;;  %v7433_v18 = vld [vmem:[#allocation9 + $0x1a4] ss:$8 sps:$4 sm:$0xff]  }
 0x3aa   : > { %5649 = vmatprep.subr.bf16.mxu0 %v7397_v20  ;;  %v7431_v20 = vld [vmem:[#allocation9 + $0x1a0] ss:$8 sps:$4 sm:$0xff]  }
 0x3ab   : > { %6782 = vmatpush3.bf16.msra.mxu1 %v7460_v56 }
 0x3ac   : > { %6783 = vmatprep.subr.bf16.mxu1 %v7461_v28 }
 0x3ad   : > { %5650 = vmatpush1.bf16.msra.mxu0 %v7395_v22  ;;  %v7436_v22 = vld [vmem:[#allocation9 + $0x1b4] ss:$8 sps:$4 sm:$0xff]  }
 0x3ae   : > { %5651 = vmatprep.subr.bf16.mxu0 %v7400_v23  ;;  %v7434_v23 = vld [vmem:[#allocation9 + $0x1b0] ss:$8 sps:$4 sm:$0xff]  }
 0x3af   : > { %6784 = vmatpush3.bf16.msra.mxu1 %v7462_v31 }
 0x3b1   : > { %5652 = vmatpush1.bf16.msra.mxu0 %v7398_v24  ;;  %v7439_v24 = vld [vmem:[#allocation9 + $0x1c4] ss:$8 sps:$4 sm:$0xff]  }
 0x3b2   : > { %5662 = vmatprep.subr.bf16.mxu0 %v7403_v21  ;;  %v7437_v21 = vld [vmem:[#allocation9 + $0x1c0] ss:$8 sps:$4 sm:$0xff]  }
 0x447   : > { %v5042_v37 = vpop.f32.mrb[8].mxu0 }
 0x448   : > { %v6803_v38 = vadd.f32 %v5042_v37, %v3588_v33  ;;  %v5044_v39 = vpop.f32.mrb[9].mxu0  ;;  %v7463_v33 = vld [vmem:[#allocation12 + $0x78] sm:$0xff]  }
 0x449   : > { %v6804_v19 = vadd.f32 %v5044_v39, %v3592_v34  ;;  %v5046_v42 = vpop.f32.mrb[10].mxu0  ;;  %v7464_v34 = vld [vmem:[#allocation12 + $0x38] sm:$0xff]   ;;  %6785 = vmatprep.subr.bf16.mxu1 %v7463_v33 }
 0x44a   : > { %v5213_v43 = vmul.f32 0.2, %v6803_v38  ;;  %v5047_v45 = vpop.f32.mrb[11].mxu0  ;;  %6786 = vmatpush3.bf16.msra.mxu1 %v7464_v34  ;;  %v5289_v37 = vld [vmem:[#allocation10] sm:$0x3] }
 0x44b   : > { %v5214_v46 = vmul.f32 0.2, %v6804_v19  ;;  %v5298_v39 = vrot.slane %v5289_v37, %v8083_v36 }
 0x44c   : > { %v5217_v47 = vmax.f32 %v6803_v38, %v5213_v43  ;;  %v5294_v38 = vrot.slane %v5289_v37, %v8078_v61 }
 0x44d   : > { %v5218_v48 = vmax.f32 %v6804_v19, %v5214_v46 }
 0x44e   : > { %v5221_v51 = vpack.c.bf16 %v5217_v47, %v5217_v47 }
 0x44f   : > { %v5222_v49 = vpack.c.bf16 %v5218_v48, %v5218_v48 }
 0x451   : > { %5653 = vmatprep.mubr.bf16.mxu0 %v5222_v49 }
 0x452   : > { %5654 = vmatmul.mubr.bf16.vlgmr.msra.gmra.mrb[12].mxu0 %v5221_v51 }
 0x453   : > { %5663 = vmatpush1.bf16.msra.mxu0 %v7401_v50 }
 0x454   : > { %5664 = vmatprep.subr.bf16.mxu0 %v7406_v52 }
 0x457   : > { %5665 = vmatpush1.bf16.msra.mxu0 %v7404_v55 }
 0x458   : > { %5666 = vmatprep.subr.bf16.mxu0 %v7409_v59 }
 0x45b   : > { %5667 = vmatpush1.bf16.msra.mxu0 %v7407_v60  ;;  %v6752_v60 = vld [vmem:[#allocation13] ss:$0 sm:$0xff] }
 0x45c   : > { %5668 = vmatprep.subr.bf16.mxu0 %v7412_v12 }
 0x45f   : > { %5669 = vmatpush1.bf16.msra.mxu0 %v7410_v62 }
 0x460   : > { %5670 = vmatprep.subr.bf16.mxu0 %v7415_v63 }
 0x463   : > { %5671 = vmatpush1.bf16.msra.mxu0 %v7413_v0 }
 0x464   : > { %5672 = vmatprep.subr.bf16.mxu0 %v7418_v1 }
 0x467   : > { %5673 = vmatpush1.bf16.msra.mxu0 %v7416_v2 }
 0x468   : > { %5674 = vmatprep.subr.bf16.mxu0 %v7421_v41 }
 0x469   : > { %v5206_v5 = vpop.f32.mrb[12].mxu1 }
 0x46a   : > { %v5208_v44 = vpop.f32.mrb[13].mxu1  ;;  %v6805_v26 = vadd.f32 %v5206_v5, %v3596_v16 }
 0x46b   : > { %v6806_v6 = vadd.f32 %v5208_v44, %v3600_v10  ;;  %5675 = vmatpush1.bf16.msra.mxu0 %v7419_v3  ;;  %v5210_v7 = vpop.f32.mrb[14].mxu1 }
 0x46c   : > { %v5211_v9 = vpop.f32.mrb[15].mxu1  ;;  %5676 = vmatprep.subr.bf16.mxu0 %v7424_v4  ;;  %v5215_v54 = vmul.f32 0.2, %v6805_v26 }
 0x46d   : > { %v5216_v13 = vmul.f32 0.2, %v6806_v6 }
 0x46e   : > { %v5219_v35 = vmax.f32 %v6805_v26, %v5215_v54 }
 0x46f   : > { %v5220_v40 = vmax.f32 %v6806_v6, %v5216_v13  ;;  %5677 = vmatpush1.bf16.msra.mxu0 %v7422_v8 }
 0x470   : > { %5678 = vmatprep.subr.bf16.mxu0 %v7427_v11  ;;  %v5223_v58 = vpack.c.bf16 %v5219_v35, %v5219_v35 }
 0x471   : > { %v5224_v15 = vpack.c.bf16 %v5220_v40, %v5220_v40 }
 0x473   : > { %5679 = vmatpush1.bf16.msra.mxu0 %v7425_v14  ;;  %5694 = vmatprep.mubr.bf16.mxu0 %v5224_v15 }
 0x474   : > { %5680 = vmatprep.subr.bf16.mxu0 %v7430_v57 }
 0x477   : > { %5681 = vmatpush1.bf16.msra.mxu0 %v7428_v32 }
 0x478   : > { %5682 = vmatprep.subr.bf16.mxu0 %v7433_v18 }
 0x47b   : > { %5683 = vmatpush1.bf16.msra.mxu0 %v7431_v20 }
 0x47c   : > { %5684 = vmatprep.subr.bf16.mxu0 %v7436_v22 }
 0x47f   : > { %5685 = vmatpush1.bf16.msra.mxu0 %v7434_v23 }
 0x480   : > { %5686 = vmatprep.subr.bf16.mxu0 %v7439_v24 }
 0x483   : > { %5687 = vmatpush1.bf16.msra.mxu0 %v7437_v21 }
 0x484   : > { %5688 = vmatprep.subr.bf16.mxu0 %v7442_v25 }
 0x487   : > { %5689 = vmatpush1.bf16.msra.mxu0 %v7440_v17 }
 0x488   : > { %5690 = vmatprep.subr.bf16.mxu0 %v7445_v53 }
 0x48b   : > { %5691 = vmatpush1.bf16.msra.mxu0 %v7443_v27 }
 0x48c   : > { %5692 = vmatprep.subr.bf16.mxu0 %v7448_v29 }
 0x48f   : > { %5693 = vmatpush1.bf16.msra.mxu0 %v7446_v30 }
 0x492   : > { %5695 = vmatmul.mubr.bf16.vlgmr.msra.gmra.mrb[12].mxu0 %v5223_v58 }
 0x565   : > { %v5696_v19 = vpop.f32.mrb[12].mxu0 }
 0x566   : > { %v6807_v42 = vadd.f32 %v5696_v19, %v5294_v38  ;;  %v5698_v43 = vpop.f32.mrb[13].mxu0 }
 0x567   : > { %v6808_v45 = vadd.f32 %v5698_v43, %v5298_v39  ;;  %v5700_v46 = vpop.f32.mrb[14].mxu0 }
 0x568   : > { %v5703_v47 = vmul.f32 0.2, %v6807_v42  ;;  %v5701_v48 = vpop.f32.mrb[15].mxu0 }
 0x569   : > { %v5704_v49 = vmul.f32 0.2, %v6808_v45 }
 0x56a   : > { %v5705_v50 = vmax.f32 %v6807_v42, %v5703_v47 }
 0x56b   : > { %v5706_v51 = vmax.f32 %v6808_v45, %v5704_v49 }
 0x56c   : > { %v5707_v55 = vpack.c.bf16 %v5705_v50, %v5705_v50 }
 0x56d   : > { %v5708_v52 = vpack.c.bf16 %v5706_v51, %v5706_v51 }
 0x56f   : > { %5876 = vmatprep.mubr.bf16.mxu1 %v5708_v52 }
 0x570   : > { %5877 = vmatmul.mubr.bf16.vlgmr.msra.gmra.mrb[16].mxu1 %v5707_v55 }
 0x643   : > { %v6787_v59 = vpop.f32.mrb[16].mxu1 }
 0x644   : > { %v6788_v61 = vpop.f32.mrb[17].mxu1 }
 0x645   : > { %v6789_v12 = vadd.f32 %v6788_v61, %v6787_v59  ;;  %v6790_v36 = vpop.f32.mrb[18].mxu1 }
 0x646   : > { %v6791_v62 = vpop.f32.mrb[19].mxu1 }
 0x647   : > { %v5879_v63 = vadd.f32 %v6789_v12, %v6752_v60 }
 0x649   : > { %v5884_v0 = vmul.f32 0.2, %v5879_v63 }
 0x64b   : > { %v5885_v1 = vmax.f32 %v5879_v63, %v5884_v0 }
 0x64d   : > { %5886 = vst [vmem:[%s439_s17] sm:$0xff] %v5885_v1 }
 0x64e PF: > { %s24_s30 = sadd.s32 1, %s7716_s30  }
 0x64f   : > { %p21_p13 = scmp.ge.s32.totalorder %s24_s30, 4  }
 0x651   :  { %23 = sbr.rel (!%p21_p13) target bundleno = 5 (0x5), region = 119 }
 0x658   :  { %5906 = vsyncpa [#allocation3], 1 }
 0x659   :  { %5908 = vsyncpa [#allocation3 + $0x1], 1 }
 0x65a   :  { %5909 = vsyncpa [#allocation5], 1 }
 0x65b   :  { %5910 = vsyncpa [#allocation8], 1 }
 0x65c   :  { %5911 = vsyncpa [#allocation11], 1 }
 0x65d   :  { %5912 = vsyncpa [#allocation14], 1 }

</bundles_post_ra>
